<compile_context>
chip_gen: v6e
topology: v6e:2x2x1
jax: 0.10.0
libtpu: 0.0.40
codegen_flags: <defaults>
</compile_context>

<pallas_src>
import numpy as np
import jax
import jax.numpy as jnp
from jax import lax
from jax.experimental import pallas as pl
from jax.experimental.pallas import tpu as pltpu


def _round_up(x, m):
    return ((x + m - 1) // m) * m


def _bspec(shape):
    n = len(shape) - 1
    return pl.BlockSpec(shape, lambda b, _n=n: (b,) + (0,) * _n)


def _wspec(shape):
    n = len(shape)
    return pl.BlockSpec(shape, lambda b, _n=n: (0,) * _n)


_VMEM_LIMIT = 32 * 1024 * 1024  # explicit scoped-VMEM limit (safe on v5e/v6e/v7x)


# ----------------------------- generic M-tiled linear ----------------------------
def _linear_kernel(x_ref, w_ref, b_ref, o_ref):
    o_ref[...] = (jnp.dot(x_ref[...].astype(w_ref.dtype), w_ref[...],
                          preferred_element_type=jnp.float32) + b_ref[...])


def tiled_linear(x, w, b, *, tile_m=256):
    """x: (..., K) f32; w: (K, N) pre-transposed (bf16 or f32); b: (1, N) f32."""
    lead = x.shape[:-1]
    K = x.shape[-1]
    N = w.shape[1]
    M = int(np.prod(lead)) if lead else 1
    x2 = x.reshape(M, K).astype(jnp.float32)
    tm = min(tile_m, _round_up(M, 8))
    Mp = _round_up(M, tm)
    if Mp != M:
        x2 = jnp.pad(x2, ((0, Mp - M), (0, 0)))
    out = pl.pallas_call(
        _linear_kernel,
        out_shape=jax.ShapeDtypeStruct((Mp, N), jnp.float32),
        grid=(Mp // tm,),
        in_specs=[pl.BlockSpec((tm, K), lambda i: (i, 0)),
                  pl.BlockSpec((K, N), lambda i: (0, 0)),
                  pl.BlockSpec((1, N), lambda i: (0, 0))],
        out_specs=pl.BlockSpec((tm, N), lambda i: (i, 0)),
        compiler_params=pltpu.CompilerParams(
            dimension_semantics=("parallel",), vmem_limit_bytes=_VMEM_LIMIT),
    )(x2, w, b)
    return out[:M].reshape(lead + (N,))


# ------------------- fused front end: iso_transform + residual + MLP -------------
def _frontend_kernel(e_ref, tok_ref, wi_ref, bi_ref, w1_ref, b1_ref, w2_ref, b2_ref,
                     o_ref):
    x = (jnp.dot(e_ref[...].astype(wi_ref.dtype), wi_ref[...],
                 preferred_element_type=jnp.float32) + bi_ref[...])
    x = x + tok_ref[...]
    h = (jnp.dot(x.astype(w1_ref.dtype), w1_ref[...],
                 preferred_element_type=jnp.float32) + b1_ref[...])
    h = jnp.maximum(h, 0.0)
    o_ref[...] = (jnp.dot(h.astype(w2_ref.dtype), w2_ref[...],
                          preferred_element_type=jnp.float32) + b2_ref[...])


def frontend(emb_tok, tokens, p, *, tile_m=256):
    B, T, H = tokens.shape
    D = emb_tok.shape[-1]
    M = B * T
    e2 = emb_tok.reshape(M, D).astype(jnp.float32)
    t2 = tokens.reshape(M, H).astype(jnp.float32)
    tm = min(tile_m, _round_up(M, 8))
    Mp = _round_up(M, tm)
    if Mp != M:
        e2 = jnp.pad(e2, ((0, Mp - M), (0, 0)))
        t2 = jnp.pad(t2, ((0, Mp - M), (0, 0)))
    out = pl.pallas_call(
        _frontend_kernel,
        out_shape=jax.ShapeDtypeStruct((Mp, H), jnp.float32),
        grid=(Mp // tm,),
        in_specs=[pl.BlockSpec((tm, D), lambda i: (i, 0)),
                  pl.BlockSpec((tm, H), lambda i: (i, 0)),
                  pl.BlockSpec((D, H), lambda i: (0, 0)),
                  pl.BlockSpec((1, H), lambda i: (0, 0)),
                  pl.BlockSpec((H, H), lambda i: (0, 0)),
                  pl.BlockSpec((1, H), lambda i: (0, 0)),
                  pl.BlockSpec((H, H), lambda i: (0, 0)),
                  pl.BlockSpec((1, H), lambda i: (0, 0))],
        out_specs=pl.BlockSpec((tm, H), lambda i: (i, 0)),
        compiler_params=pltpu.CompilerParams(
            dimension_semantics=("parallel",), vmem_limit_bytes=_VMEM_LIMIT),
    )(e2, t2, p["iso_w"], p["iso_b"], p["mlp_w1"], p["mlp_b1"],
      p["mlp_w2"], p["mlp_b2"])
    return out[:M].reshape(B, T, H)


# -------------------- LSTM recurrence (input projection hoisted out) -------------
def _lstm_rec_kernel(gx_ref, whh_ref, h0_ref, c0_ref, out_ref):
    H = whh_ref.shape[0]
    O = gx_ref.shape[0]

    def step(t, carry):
        h, c = carry
        gates = gx_ref[t] + jnp.dot(h, whh_ref[...],
                                    preferred_element_type=jnp.float32)
        i = jax.nn.sigmoid(gates[:, 0:H])
        f = jax.nn.sigmoid(gates[:, H:2 * H])
        g = jnp.tanh(gates[:, 2 * H:3 * H])
        o = jax.nn.sigmoid(gates[:, 3 * H:4 * H])
        c = f * c + i * g
        h = o * jnp.tanh(c)
        out_ref[t] = h
        return (h, c)

    lax.fori_loop(0, O, step, (h0_ref[...], c0_ref[...]), unroll=True)


def lstm_recurrence(gx_tm, whh, h0, c0):
    """gx_tm: (O, B, 4H) precomputed x@W_ih + b; returns st time-major (O, B, H)."""
    O, B, H4 = gx_tm.shape
    H = whh.shape[0]
    return pl.pallas_call(
        _lstm_rec_kernel,
        out_shape=jax.ShapeDtypeStruct((O, B, H), jnp.float32),
        grid=(1,),
        in_specs=[pl.BlockSpec((O, B, H4), lambda i: (0, 0, 0)),
                  pl.BlockSpec((H, H4), lambda i: (0, 0)),
                  pl.BlockSpec((B, H), lambda i: (0, 0)),
                  pl.BlockSpec((B, H), lambda i: (0, 0))],
        out_specs=pl.BlockSpec((O, B, H), lambda i: (0, 0, 0)),
        compiler_params=pltpu.CompilerParams(
            dimension_semantics=("arbitrary",), vmem_limit_bytes=_VMEM_LIMIT),
    )(gx_tm, whh, h0, c0)


# -------------- fused attention + pointer gate + copy/generate mix + loss --------
def _attn_mix_kernel(tok_ref, st_ref, yzt_ref, mask_ref, ids_ref, ys_ref, omask_ref,
                     wk_ref, bk_ref, wq_ref, bq_ref, wa_ref, ba_ref,
                     wpy_ref, wps_ref, wpv_ref, bp_ref,
                     wdec_ref, bdec_ref, watt_ref, batt_ref,
                     pt_ref, gt_ref, loss_ref):
    tokens = tok_ref[0]                                  # (T, H) f32
    st = st_ref[0]                                       # (O, H)
    yzt = yzt_ref[0]                                     # (O, H)
    mask = mask_ref[0]                                   # (1, T)
    ids_col = ids_ref[0]                                 # (T, 1) int32
    T = tokens.shape[0]
    V = wdec_ref.shape[1]

    # additive attention (bf16 MXU for the projections, f32 accumulation)
    kt = (jnp.dot(tokens.astype(wk_ref.dtype), wk_ref[...],
                  preferred_element_type=jnp.float32) + bk_ref[...])   # (T, H)
    qt = (jnp.dot(st.astype(wq_ref.dtype), wq_ref[...],
                  preferred_element_type=jnp.float32) + bq_ref[...])   # (O, H)
    # TODO(synk): tile this (O,T,H) intermediate over T chunks for long inputs.
    e = jnp.tanh(kt[None, :, :] + qt[:, None, :])                      # (O, T, H)
    scores = jnp.sum(e * wa_ref[...][None, :, :], axis=-1) + ba_ref[...]  # (O, T)

    m = jnp.max(scores, axis=-1, keepdims=True)
    pexp = jnp.exp(scores - m)
    p = pexp / jnp.sum(pexp, axis=-1, keepdims=True)     # softmax over tokens
    p = p * mask                                         # mask padded tokens
    at = p / jnp.sum(p, axis=-1, keepdims=True)          # renormalize (O, T)

    vt = jnp.dot(at, tokens, preferred_element_type=jnp.float32)       # (O, H)

    # pointer gate: VPU mul + lane reduce instead of three (H,1) MXU matmuls
    g = (jnp.sum(yzt * wpy_ref[...], axis=-1, keepdims=True)
         + jnp.sum(st * wps_ref[...], axis=-1, keepdims=True)
         + jnp.sum(vt * wpv_ref[...], axis=-1, keepdims=True)
         + bp_ref[...])                                  # (O, 1)
    gt = jax.nn.sigmoid(g)
    gt_ref[0] = gt

    # generate distribution
    # TODO(synk): for realistic vocab sizes, add a V grid axis with a two-pass
    # softmax/loss so the (H,V)/(O,V) blocks stay within v7x's 64 MiB VMEM.
    logits = (jnp.dot(st.astype(wdec_ref.dtype), wdec_ref[...],
                      preferred_element_type=jnp.float32) + bdec_ref[...]
              + jnp.dot(vt.astype(watt_ref.dtype), watt_ref[...],
                        preferred_element_type=jnp.float32) + batt_ref[...])
    lm = jnp.max(logits, axis=-1, keepdims=True)
    le = jnp.exp(logits - lm)
    p_gen = le / jnp.sum(le, axis=-1, keepdims=True)     # (O, V)

    # copy distribution: one-hot built in-kernel from int32 ids (no HBM one-hot)
    # TODO(synk): one-hot matmul accumulates duplicate token ids; the torch
    # advanced-index `+=` does not (last-write-wins) — differs only on repeats.
    onehot = (lax.broadcasted_iota(jnp.int32, (T, V), 1) == ids_col
              ).astype(jnp.float32)                      # (T, V)
    p_copy = jnp.dot(at, onehot, preferred_element_type=jnp.float32)   # (O, V)

    pt = gt * p_gen + (1.0 - gt) * p_copy
    pt_ref[0] = pt

    # masked NLL, normalized per example (matches torch: sum/mask.sum per row)
    log_pt = jnp.log(pt + 1e-9)
    ys = ys_ref[0]                                       # (O, V)
    omask = omask_ref[0]                                 # (O, 1)
    per_step = -jnp.sum(log_pt * ys, axis=-1, keepdims=True)           # (O, 1)
    loss_ref[0] = jnp.reshape(jnp.sum(per_step * omask) / jnp.sum(omask), (1, 1))


def attn_mix_loss(tokens_h, st, yzt, token_mask, token_ids, out_smooth, out_mask, p):
    B, T, H = tokens_h.shape
    O = st.shape[1]
    V = p["dec_w"].shape[1]
    mask3 = token_mask.reshape(B, 1, T).astype(jnp.float32)
    ids3 = token_ids.reshape(B, T, 1).astype(jnp.int32)
    omask3 = out_mask.reshape(B, O, 1).astype(jnp.float32)

    pt, gt, loss_b = pl.pallas_call(
        _attn_mix_kernel,
        out_shape=(jax.ShapeDtypeStruct((B, O, V), jnp.float32),
                   jax.ShapeDtypeStruct((B, O, 1), jnp.float32),
                   jax.ShapeDtypeStruct((B, 1, 1), jnp.float32)),
        grid=(B,),
        in_specs=[_bspec((1, T, H)), _bspec((1, O, H)), _bspec((1, O, H)),
                  _bspec((1, 1, T)), _bspec((1, T, 1)),
                  _bspec((1, O, V)), _bspec((1, O, 1)),
                  _wspec((H, H)), _wspec((1, H)),
                  _wspec((H, H)), _wspec((1, H)),
                  _wspec((1, H)), _wspec((1, 1)),
                  _wspec((1, H)), _wspec((1, H)), _wspec((1, H)), _wspec((1, 1)),
                  _wspec((H, V)), _wspec((1, V)),
                  _wspec((H, V)), _wspec((1, V))],
        out_specs=(_bspec((1, O, V)), _bspec((1, O, 1)), _bspec((1, 1, 1))),
        compiler_params=pltpu.CompilerParams(
            dimension_semantics=("parallel",), vmem_limit_bytes=_VMEM_LIMIT),
    )(tokens_h, st, yzt, mask3, ids3, out_smooth, omask3,
      p["attend_key_w"], p["attend_key_b"],
      p["attend_query_w"], p["attend_query_b"],
      p["attend_weight_w"], p["attend_weight_b"],
      p["pointer_wy"], p["pointer_ws"], p["pointer_wv"], p["pointer_b"],
      p["dec_w"], p["dec_b"], p["att_w"], p["att_b"])
    return pt, gt, loss_b


# ----------------------------- full Abstract.forward -----------------------------
def abstract_forward(p, tokens, token_ids, token_mask, aspect, sentiment,
                     output, output_smooth, output_mask):
    B, T, H = tokens.shape
    O = output.shape[1] - 1
    emb = p["embedding"]

    # encoder side: embed + iso_transform + residual + iso_mlp (fused kernel)
    emb_tok = emb[token_ids]                                           # (B, T, D)
    tokens_h = frontend(emb_tok, tokens, p)                            # (B, T, H)

    # decoder-side inputs
    zt = jnp.concatenate([aspect, sentiment], axis=-1)                 # (B, H)
    yt = emb[output[:, :-1]]                                           # (B, O, D)
    # TODO(synk): nn.Dropout(0.5) treated as identity (eval mode / deterministic).
    zt_exp = jnp.broadcast_to(zt[:, None, :], (B, O, zt.shape[-1]))
    yzt = tiled_linear(jnp.concatenate([yt, zt_exp], axis=-1),
                       p["yt_w"], p["yt_b"])                           # (B, O, H)

    # initial LSTM state from masked token mean
    masked_sum = (tokens_h * token_mask[..., None]).sum(axis=1)
    input_ = masked_sum / jnp.mean(token_mask, axis=1, keepdims=True)
    hc = tiled_linear(input_, p["ht_w"], p["ht_b"])                    # (B, 2H)
    h0, c0 = hc[:, :H], hc[:, H:]

    # LSTM: input projection batched over all timesteps, recurrence kept minimal
    gx = tiled_linear(yzt, p["lstm_wih"], p["lstm_b"])                 # (B, O, 4H)
    gx_tm = jnp.transpose(gx, (1, 0, 2))                               # (O, B, 4H)
    st = jnp.transpose(lstm_recurrence(gx_tm, p["lstm_whh"], h0, c0),
                       (1, 0, 2))                                      # (B, O, H)

    # fused attention + pointer + mix + loss
    pt, gt, loss_b = attn_mix_loss(tokens_h, st, yzt, token_mask, token_ids,
                                   output_smooth[:, 1:], output_mask[:, 1:], p)
    loss = jnp.mean(loss_b[:, 0, 0])
    return pt, gt, loss


# ----------------------------- parameter init / prep -----------------------------
def init_params(key, vocab_size, input_dim, hidden_dim):
    """PyTorch-layout parameters (out, in) for fidelity with the reference."""
    specs = {
        "embedding": (vocab_size, input_dim),
        "iso_transform_w": (hidden_dim, input_dim), "iso_transform_b": (hidden_dim,),
        "iso_mlp_w1": (hidden_dim, hidden_dim), "iso_mlp_b1": (hidden_dim,),
        "iso_mlp_w2": (hidden_dim, hidden_dim), "iso_mlp_b2": (hidden_dim,),
        "ht_transform_w": (2 * hidden_dim, hidden_dim), "ht_transform_b": (2 * hidden_dim,),
        "yt_transform_w": (hidden_dim, input_dim + hidden_dim), "yt_transform_b": (hidden_dim,),
        "lstm_w_ih": (4 * hidden_dim, hidden_dim), "lstm_w_hh": (4 * hidden_dim, hidden_dim),
        "lstm_b_ih": (4 * hidden_dim,), "lstm_b_hh": (4 * hidden_dim,),
        "attend_key_w": (hidden_dim, hidden_dim), "attend_key_b": (hidden_dim,),
        "attend_query_w": (hidden_dim, hidden_dim), "attend_query_b": (hidden_dim,),
        "attend_weight_w": (1, hidden_dim), "attend_weight_b": (1,),
        "pointer_w": (1, 3 * hidden_dim), "pointer_b": (1,),
        "dec_classifier_w": (vocab_size, hidden_dim), "dec_classifier_b": (vocab_size,),
        "att_classifier_w": (vocab_size, hidden_dim), "att_classifier_b": (vocab_size,),
    }
    keys = jax.random.split(key, len(specs))
    return {name: (0.1 * jax.random.normal(k, shape)).astype(jnp.float32)
            for (name, shape), k in zip(specs.items(), keys)}


def prepare_params(raw):
    """Pre-transpose weights to (in, out) once and cast MXU operands to bf16."""
    H = raw["iso_mlp_w1"].shape[0]
    wp = raw["pointer_w"]                                # (1, 3H)
    bf = jnp.bfloat16
    f32 = jnp.float32
    return {
        "embedding": raw["embedding"].astype(f32),
        "iso_w": jnp.transpose(raw["iso_transform_w"]).astype(bf),
        "iso_b": raw["iso_transform_b"].reshape(1, -1).astype(f32),
        "mlp_w1": jnp.transpose(raw["iso_mlp_w1"]).astype(bf),
        "mlp_b1": raw["iso_mlp_b1"].reshape(1, -1).astype(f32),
        "mlp_w2": jnp.transpose(raw["iso_mlp_w2"]).astype(bf),
        "mlp_b2": raw["iso_mlp_b2"].reshape(1, -1).astype(f32),
        "ht_w": jnp.transpose(raw["ht_transform_w"]).astype(bf),
        "ht_b": raw["ht_transform_b"].reshape(1, -1).astype(f32),
        "yt_w": jnp.transpose(raw["yt_transform_w"]).astype(bf),
        "yt_b": raw["yt_transform_b"].reshape(1, -1).astype(f32),
        "lstm_wih": jnp.transpose(raw["lstm_w_ih"]).astype(bf),
        "lstm_whh": jnp.transpose(raw["lstm_w_hh"]).astype(f32),
        "lstm_b": (raw["lstm_b_ih"] + raw["lstm_b_hh"]).reshape(1, -1).astype(f32),
        "attend_key_w": jnp.transpose(raw["attend_key_w"]).astype(bf),
        "attend_key_b": raw["attend_key_b"].reshape(1, -1).astype(f32),
        "attend_query_w": jnp.transpose(raw["attend_query_w"]).astype(bf),
        "attend_query_b": raw["attend_query_b"].reshape(1, -1).astype(f32),
        "attend_weight_w": raw["attend_weight_w"].reshape(1, -1).astype(f32),
        "attend_weight_b": raw["attend_weight_b"].reshape(1, 1).astype(f32),
        "pointer_wy": wp[:, 0:H].astype(f32),
        "pointer_ws": wp[:, H:2 * H].astype(f32),
        "pointer_wv": wp[:, 2 * H:3 * H].astype(f32),
        "pointer_b": raw["pointer_b"].reshape(1, 1).astype(f32),
        "dec_w": jnp.transpose(raw["dec_classifier_w"]).astype(bf),
        "dec_b": raw["dec_classifier_b"].reshape(1, -1).astype(f32),
        "att_w": jnp.transpose(raw["att_classifier_w"]).astype(bf),
        "att_b": raw["att_classifier_b"].reshape(1, -1).astype(f32),
    }


if __name__ == "__main__":
    V, D, H = 128, 16, 32          # vocab_size, input_dim, hidden_dim
    B, T, OUT_LEN = 2, 8, 9        # batch, token_len, output length incl. BOS

    key = jax.random.PRNGKey(0)
    kp, k1, k2, k3, k4, k5, k6 = jax.random.split(key, 7)
    params = prepare_params(init_params(kp, V, D, H))

    tokens = 0.1 * jax.random.normal(k1, (B, T, H), dtype=jnp.float32)
    # unique token ids per row -> torch's non-accumulating `+=` scatter and the
    # accumulating one-hot matmul agree exactly
    token_ids = jnp.stack([jax.random.permutation(jax.random.fold_in(k2, b), V)[:T]
                           for b in range(B)]).astype(jnp.int32)
    token_mask = jnp.ones((B, T), dtype=jnp.float32).at[:, -2:].set(0.0)
    aspect = 0.1 * jax.random.normal(k3, (B, H // 2), dtype=jnp.float32)
    sentiment = 0.1 * jax.random.normal(k4, (B, H // 2), dtype=jnp.float32)
    output = jax.random.randint(k5, (B, OUT_LEN), 0, V, dtype=jnp.int32)
    output_smooth = jax.nn.softmax(
        jax.random.normal(k6, (B, OUT_LEN, V), dtype=jnp.float32), axis=-1)
    output_mask = jnp.ones((B, OUT_LEN), dtype=jnp.float32)

    pt, gt, loss = jax.jit(abstract_forward)(
        params, tokens, token_ids, token_mask, aspect, sentiment,
        output, output_smooth, output_mask)
    jax.block_until_ready((pt, gt, loss))

    assert pt.shape == (B, OUT_LEN - 1, V) and gt.shape == (B, OUT_LEN - 1, 1)
    assert bool(jnp.isfinite(loss)) and bool(jnp.all(jnp.isfinite(pt)))
    # pt is a convex mix of two probability distributions -> rows sum to 1
    assert bool(jnp.allclose(jnp.sum(pt, axis=-1), 1.0, atol=1e-3))
    print("KERNEL_OK")
</pallas_src>

<mosaic_0001>
module attributes {stable_mosaic.version = 11 : i64} {
  func.func @_frontend_kernel(%arg0: i32, %arg1: memref<16x16xf32, #tpu.memory_space<vmem>>, %arg2: memref<16x32xf32, #tpu.memory_space<vmem>>, %arg3: memref<16x32xbf16, #tpu.memory_space<vmem>>, %arg4: memref<1x32xf32, #tpu.memory_space<vmem>>, %arg5: memref<32x32xbf16, #tpu.memory_space<vmem>>, %arg6: memref<1x32xf32, #tpu.memory_space<vmem>>, %arg7: memref<32x32xbf16, #tpu.memory_space<vmem>>, %arg8: memref<1x32xf32, #tpu.memory_space<vmem>>, %arg9: memref<16x32xf32, #tpu.memory_space<vmem>>) attributes {dimension_semantics = [#tpu.dimension_semantics<parallel>], iteration_bounds = array<i64: 1>, scalar_prefetch = 0 : i64, scratch_operands = 0 : i64, tpu.core_type = #tpu.core_type<tc>, window_params = [{transform_indices = @transform_0, window_bounds = array<i64: 16, 16>}, {transform_indices = @transform_1, window_bounds = array<i64: 16, 32>}, {pipeline_mode = #tpu.pipeline_mode<synchronous>, transform_indices = @transform_2, window_bounds = array<i64: 16, 32>}, {pipeline_mode = #tpu.pipeline_mode<synchronous>, transform_indices = @transform_3, window_bounds = array<i64: 1, 32>}, {pipeline_mode = #tpu.pipeline_mode<synchronous>, transform_indices = @transform_4, window_bounds = array<i64: 32, 32>}, {pipeline_mode = #tpu.pipeline_mode<synchronous>, transform_indices = @transform_5, window_bounds = array<i64: 1, 32>}, {pipeline_mode = #tpu.pipeline_mode<synchronous>, transform_indices = @transform_6, window_bounds = array<i64: 32, 32>}, {pipeline_mode = #tpu.pipeline_mode<synchronous>, transform_indices = @transform_7, window_bounds = array<i64: 1, 32>}, {transform_indices = @transform_8, window_bounds = array<i64: 16, 32>}]} {
    %c0 = arith.constant 0 : index
    %c0_0 = arith.constant 0 : index
    %0 = vector.load %arg1[%c0, %c0_0] : memref<16x16xf32, #tpu.memory_space<vmem>>, vector<16x16xf32>
    %1 = arith.truncf %0 : vector<16x16xf32> to vector<16x16xbf16>
    %c0_1 = arith.constant 0 : index
    %c0_2 = arith.constant 0 : index
    %2 = vector.load %arg3[%c0_1, %c0_2] : memref<16x32xbf16, #tpu.memory_space<vmem>>, vector<16x32xbf16>
    %cst = arith.constant dense<0.000000e+00> : vector<16x32xf32>
    %3 = tpu.matmul %1, %2, %cst {dimension_numbers = #tpu.dot_dimension_numbers<[1], [0], [0], [1], [0, 0, 1, 1], [], []>} : vector<16x16xbf16>, vector<16x32xbf16>, vector<16x32xf32> -> vector<16x32xf32>
    %c0_3 = arith.constant 0 : index
    %c0_4 = arith.constant 0 : index
    %4 = vector.load %arg4[%c0_3, %c0_4] : memref<1x32xf32, #tpu.memory_space<vmem>>, vector<1x32xf32>
    %5 = vector.broadcast %4 : vector<1x32xf32> to vector<16x32xf32>
    %6 = arith.addf %3, %5 : vector<16x32xf32>
    %c0_5 = arith.constant 0 : index
    %c0_6 = arith.constant 0 : index
    %7 = vector.load %arg2[%c0_5, %c0_6] : memref<16x32xf32, #tpu.memory_space<vmem>>, vector<16x32xf32>
    %8 = arith.addf %6, %7 : vector<16x32xf32>
    %9 = arith.truncf %8 : vector<16x32xf32> to vector<16x32xbf16>
    %c0_7 = arith.constant 0 : index
    %c0_8 = arith.constant 0 : index
    %10 = vector.load %arg5[%c0_7, %c0_8] : memref<32x32xbf16, #tpu.memory_space<vmem>>, vector<32x32xbf16>
    %cst_9 = arith.constant dense<0.000000e+00> : vector<16x32xf32>
    %11 = tpu.matmul %9, %10, %cst_9 {dimension_numbers = #tpu.dot_dimension_numbers<[1], [0], [0], [1], [0, 0, 1, 1], [], []>} : vector<16x32xbf16>, vector<32x32xbf16>, vector<16x32xf32> -> vector<16x32xf32>
    %c0_10 = arith.constant 0 : index
    %c0_11 = arith.constant 0 : index
    %12 = vector.load %arg6[%c0_10, %c0_11] : memref<1x32xf32, #tpu.memory_space<vmem>>, vector<1x32xf32>
    %13 = vector.broadcast %12 : vector<1x32xf32> to vector<16x32xf32>
    %14 = arith.addf %11, %13 : vector<16x32xf32>
    %cst_12 = arith.constant 0.000000e+00 : f32
    %15 = vector.broadcast %cst_12 : f32 to vector<16x32xf32>
    %16 = arith.maximumf %14, %15 : vector<16x32xf32>
    %17 = arith.truncf %16 : vector<16x32xf32> to vector<16x32xbf16>
    %c0_13 = arith.constant 0 : index
    %c0_14 = arith.constant 0 : index
    %18 = vector.load %arg7[%c0_13, %c0_14] : memref<32x32xbf16, #tpu.memory_space<vmem>>, vector<32x32xbf16>
    %cst_15 = arith.constant dense<0.000000e+00> : vector<16x32xf32>
    %19 = tpu.matmul %17, %18, %cst_15 {dimension_numbers = #tpu.dot_dimension_numbers<[1], [0], [0], [1], [0, 0, 1, 1], [], []>} : vector<16x32xbf16>, vector<32x32xbf16>, vector<16x32xf32> -> vector<16x32xf32>
    %c0_16 = arith.constant 0 : index
    %c0_17 = arith.constant 0 : index
    %20 = vector.load %arg8[%c0_16, %c0_17] : memref<1x32xf32, #tpu.memory_space<vmem>>, vector<1x32xf32>
    %21 = vector.broadcast %20 : vector<1x32xf32> to vector<16x32xf32>
    %22 = arith.addf %19, %21 : vector<16x32xf32>
    %c0_18 = arith.constant 0 : index
    %c0_19 = arith.constant 0 : index
    %23 = vector.load %arg9[%c0_18, %c0_19] : memref<16x32xf32, #tpu.memory_space<vmem>>, vector<16x32xf32>
    tpu.vector_store %arg9[%c0_18, %c0_19], %22 {strides = array<i32>} : memref<16x32xf32, #tpu.memory_space<vmem>>, vector<16x32xf32>,
    return
  }
  func.func @transform_0(%arg0: i32) -> (i32, i32) {
    %c0_i32 = arith.constant 0 : i32
    %c0_i32_0 = arith.constant 0 : i32
    return %arg0, %c0_i32 : i32, i32
  }
  func.func @transform_1(%arg0: i32) -> (i32, i32) {
    %c0_i32 = arith.constant 0 : i32
    %c0_i32_0 = arith.constant 0 : i32
    return %arg0, %c0_i32 : i32, i32
  }
  func.func @transform_2(%arg0: i32) -> (i32, i32) {
    %c0_i32 = arith.constant 0 : i32
    %c0_i32_0 = arith.constant 0 : i32
    %c0_i32_1 = arith.constant 0 : i32
    return %c0_i32, %c0_i32_0 : i32, i32
  }
  func.func @transform_3(%arg0: i32) -> (i32, i32) {
    %c0_i32 = arith.constant 0 : i32
    %c0_i32_0 = arith.constant 0 : i32
    %c0_i32_1 = arith.constant 0 : i32
    return %c0_i32, %c0_i32_0 : i32, i32
  }
  func.func @transform_4(%arg0: i32) -> (i32, i32) {
    %c0_i32 = arith.constant 0 : i32
    %c0_i32_0 = arith.constant 0 : i32
    %c0_i32_1 = arith.constant 0 : i32
    return %c0_i32, %c0_i32_0 : i32, i32
  }
  func.func @transform_5(%arg0: i32) -> (i32, i32) {
    %c0_i32 = arith.constant 0 : i32
    %c0_i32_0 = arith.constant 0 : i32
    %c0_i32_1 = arith.constant 0 : i32
    return %c0_i32, %c0_i32_0 : i32, i32
  }
  func.func @transform_6(%arg0: i32) -> (i32, i32) {
    %c0_i32 = arith.constant 0 : i32
    %c0_i32_0 = arith.constant 0 : i32
    %c0_i32_1 = arith.constant 0 : i32
    return %c0_i32, %c0_i32_0 : i32, i32
  }
  func.func @transform_7(%arg0: i32) -> (i32, i32) {
    %c0_i32 = arith.constant 0 : i32
    %c0_i32_0 = arith.constant 0 : i32
    %c0_i32_1 = arith.constant 0 : i32
    return %c0_i32, %c0_i32_0 : i32, i32
  }
  func.func @transform_8(%arg0: i32) -> (i32, i32) {
    %c0_i32 = arith.constant 0 : i32
    %c0_i32_0 = arith.constant 0 : i32
    return %arg0, %c0_i32 : i32, i32
  }
}

module attributes {stable_mosaic.version = 11 : i64} {
  func.func @_linear_kernel(%arg0: i32, %arg1: memref<8x32xf32, #tpu.memory_space<vmem>>, %arg2: memref<32x64xbf16, #tpu.memory_space<vmem>>, %arg3: memref<1x64xf32, #tpu.memory_space<vmem>>, %arg4: memref<8x64xf32, #tpu.memory_space<vmem>>) attributes {dimension_semantics = [#tpu.dimension_semantics<parallel>], iteration_bounds = array<i64: 1>, scalar_prefetch = 0 : i64, scratch_operands = 0 : i64, tpu.core_type = #tpu.core_type<tc>, window_params = [{transform_indices = @transform_0, window_bounds = array<i64: 8, 32>}, {pipeline_mode = #tpu.pipeline_mode<synchronous>, transform_indices = @transform_1, window_bounds = array<i64: 32, 64>}, {pipeline_mode = #tpu.pipeline_mode<synchronous>, transform_indices = @transform_2, window_bounds = array<i64: 1, 64>}, {transform_indices = @transform_3, window_bounds = array<i64: 8, 64>}]} {
    %c0 = arith.constant 0 : index
    %c0_0 = arith.constant 0 : index
    %0 = vector.load %arg1[%c0, %c0_0] : memref<8x32xf32, #tpu.memory_space<vmem>>, vector<8x32xf32>
    %1 = arith.truncf %0 : vector<8x32xf32> to vector<8x32xbf16>
    %c0_1 = arith.constant 0 : index
    %c0_2 = arith.constant 0 : index
    %2 = vector.load %arg2[%c0_1, %c0_2] : memref<32x64xbf16, #tpu.memory_space<vmem>>, vector<32x64xbf16>
    %cst = arith.constant dense<0.000000e+00> : vector<8x64xf32>
    %3 = tpu.matmul %1, %2, %cst {dimension_numbers = #tpu.dot_dimension_numbers<[1], [0], [0], [1], [0, 0, 1, 1], [], []>} : vector<8x32xbf16>, vector<32x64xbf16>, vector<8x64xf32> -> vector<8x64xf32>
    %c0_3 = arith.constant 0 : index
    %c0_4 = arith.constant 0 : index
    %4 = vector.load %arg3[%c0_3, %c0_4] : memref<1x64xf32, #tpu.memory_space<vmem>>, vector<1x64xf32>
    %5 = vector.broadcast %4 : vector<1x64xf32> to vector<8x64xf32>
    %6 = arith.addf %3, %5 : vector<8x64xf32>
    %c0_5 = arith.constant 0 : index
    %c0_6 = arith.constant 0 : index
    %7 = vector.load %arg4[%c0_5, %c0_6] : memref<8x64xf32, #tpu.memory_space<vmem>>, vector<8x64xf32>
    tpu.vector_store %arg4[%c0_5, %c0_6], %6 {strides = array<i32>} : memref<8x64xf32, #tpu.memory_space<vmem>>, vector<8x64xf32>,
    return
  }
  func.func @transform_0(%arg0: i32) -> (i32, i32) {
    %c0_i32 = arith.constant 0 : i32
    %c0_i32_0 = arith.constant 0 : i32
    return %arg0, %c0_i32 : i32, i32
  }
  func.func @transform_1(%arg0: i32) -> (i32, i32) {
    %c0_i32 = arith.constant 0 : i32
    %c0_i32_0 = arith.constant 0 : i32
    %c0_i32_1 = arith.constant 0 : i32
    return %c0_i32, %c0_i32_0 : i32, i32
  }
  func.func @transform_2(%arg0: i32) -> (i32, i32) {
    %c0_i32 = arith.constant 0 : i32
    %c0_i32_0 = arith.constant 0 : i32
    %c0_i32_1 = arith.constant 0 : i32
    return %c0_i32, %c0_i32_0 : i32, i32
  }
  func.func @transform_3(%arg0: i32) -> (i32, i32) {
    %c0_i32 = arith.constant 0 : i32
    %c0_i32_0 = arith.constant 0 : i32
    return %arg0, %c0_i32 : i32, i32
  }
}

module attributes {stable_mosaic.version = 11 : i64} {
  func.func @_linear_kernel(%arg0: i32, %arg1: memref<16x32xf32, #tpu.memory_space<vmem>>, %arg2: memref<32x128xbf16, #tpu.memory_space<vmem>>, %arg3: memref<1x128xf32, #tpu.memory_space<vmem>>, %arg4: memref<16x128xf32, #tpu.memory_space<vmem>>) attributes {dimension_semantics = [#tpu.dimension_semantics<parallel>], iteration_bounds = array<i64: 1>, scalar_prefetch = 0 : i64, scratch_operands = 0 : i64, tpu.core_type = #tpu.core_type<tc>, window_params = [{transform_indices = @transform_0, window_bounds = array<i64: 16, 32>}, {pipeline_mode = #tpu.pipeline_mode<synchronous>, transform_indices = @transform_1, window_bounds = array<i64: 32, 128>}, {pipeline_mode = #tpu.pipeline_mode<synchronous>, transform_indices = @transform_2, window_bounds = array<i64: 1, 128>}, {transform_indices = @transform_3, window_bounds = array<i64: 16, 128>}]} {
    %c0 = arith.constant 0 : index
    %c0_0 = arith.constant 0 : index
    %0 = vector.load %arg1[%c0, %c0_0] : memref<16x32xf32, #tpu.memory_space<vmem>>, vector<16x32xf32>
    %1 = arith.truncf %0 : vector<16x32xf32> to vector<16x32xbf16>
    %c0_1 = arith.constant 0 : index
    %c0_2 = arith.constant 0 : index
    %2 = vector.load %arg2[%c0_1, %c0_2] : memref<32x128xbf16, #tpu.memory_space<vmem>>, vector<32x128xbf16>
    %cst = arith.constant dense<0.000000e+00> : vector<16x128xf32>
    %3 = tpu.matmul %1, %2, %cst {dimension_numbers = #tpu.dot_dimension_numbers<[1], [0], [0], [1], [0, 0, 1, 1], [], []>} : vector<16x32xbf16>, vector<32x128xbf16>, vector<16x128xf32> -> vector<16x128xf32>
    %c0_3 = arith.constant 0 : index
    %c0_4 = arith.constant 0 : index
    %4 = vector.load %arg3[%c0_3, %c0_4] : memref<1x128xf32, #tpu.memory_space<vmem>>, vector<1x128xf32>
    %5 = vector.broadcast %4 : vector<1x128xf32> to vector<16x128xf32>
    %6 = arith.addf %3, %5 : vector<16x128xf32>
    %c0_5 = arith.constant 0 : index
    %c0_6 = arith.constant 0 : index
    %7 = vector.load %arg4[%c0_5, %c0_6] : memref<16x128xf32, #tpu.memory_space<vmem>>, vector<16x128xf32>
    tpu.vector_store %arg4[%c0_5, %c0_6], %6 {strides = array<i32>} : memref<16x128xf32, #tpu.memory_space<vmem>>, vector<16x128xf32>,
    return
  }
  func.func @transform_0(%arg0: i32) -> (i32, i32) {
    %c0_i32 = arith.constant 0 : i32
    %c0_i32_0 = arith.constant 0 : i32
    return %arg0, %c0_i32 : i32, i32
  }
  func.func @transform_1(%arg0: i32) -> (i32, i32) {
    %c0_i32 = arith.constant 0 : i32
    %c0_i32_0 = arith.constant 0 : i32
    %c0_i32_1 = arith.constant 0 : i32
    return %c0_i32, %c0_i32_0 : i32, i32
  }
  func.func @transform_2(%arg0: i32) -> (i32, i32) {
    %c0_i32 = arith.constant 0 : i32
    %c0_i32_0 = arith.constant 0 : i32
    %c0_i32_1 = arith.constant 0 : i32
    return %c0_i32, %c0_i32_0 : i32, i32
  }
  func.func @transform_3(%arg0: i32) -> (i32, i32) {
    %c0_i32 = arith.constant 0 : i32
    %c0_i32_0 = arith.constant 0 : i32
    return %arg0, %c0_i32 : i32, i32
  }
}

module attributes {stable_mosaic.version = 11 : i64} {
  func.func @_linear_kernel(%arg0: i32, %arg1: memref<16x48xf32, #tpu.memory_space<vmem>>, %arg2: memref<48x32xbf16, #tpu.memory_space<vmem>>, %arg3: memref<1x32xf32, #tpu.memory_space<vmem>>, %arg4: memref<16x32xf32, #tpu.memory_space<vmem>>) attributes {dimension_semantics = [#tpu.dimension_semantics<parallel>], iteration_bounds = array<i64: 1>, scalar_prefetch = 0 : i64, scratch_operands = 0 : i64, tpu.core_type = #tpu.core_type<tc>, window_params = [{transform_indices = @transform_0, window_bounds = array<i64: 16, 48>}, {pipeline_mode = #tpu.pipeline_mode<synchronous>, transform_indices = @transform_1, window_bounds = array<i64: 48, 32>}, {pipeline_mode = #tpu.pipeline_mode<synchronous>, transform_indices = @transform_2, window_bounds = array<i64: 1, 32>}, {transform_indices = @transform_3, window_bounds = array<i64: 16, 32>}]} {
    %c0 = arith.constant 0 : index
    %c0_0 = arith.constant 0 : index
    %0 = vector.load %arg1[%c0, %c0_0] : memref<16x48xf32, #tpu.memory_space<vmem>>, vector<16x48xf32>
    %1 = arith.truncf %0 : vector<16x48xf32> to vector<16x48xbf16>
    %c0_1 = arith.constant 0 : index
    %c0_2 = arith.constant 0 : index
    %2 = vector.load %arg2[%c0_1, %c0_2] : memref<48x32xbf16, #tpu.memory_space<vmem>>, vector<48x32xbf16>
    %cst = arith.constant dense<0.000000e+00> : vector<16x32xf32>
    %3 = tpu.matmul %1, %2, %cst {dimension_numbers = #tpu.dot_dimension_numbers<[1], [0], [0], [1], [0, 0, 1, 1], [], []>} : vector<16x48xbf16>, vector<48x32xbf16>, vector<16x32xf32> -> vector<16x32xf32>
    %c0_3 = arith.constant 0 : index
    %c0_4 = arith.constant 0 : index
    %4 = vector.load %arg3[%c0_3, %c0_4] : memref<1x32xf32, #tpu.memory_space<vmem>>, vector<1x32xf32>
    %5 = vector.broadcast %4 : vector<1x32xf32> to vector<16x32xf32>
    %6 = arith.addf %3, %5 : vector<16x32xf32>
    %c0_5 = arith.constant 0 : index
    %c0_6 = arith.constant 0 : index
    %7 = vector.load %arg4[%c0_5, %c0_6] : memref<16x32xf32, #tpu.memory_space<vmem>>, vector<16x32xf32>
    tpu.vector_store %arg4[%c0_5, %c0_6], %6 {strides = array<i32>} : memref<16x32xf32, #tpu.memory_space<vmem>>, vector<16x32xf32>,
    return
  }
  func.func @transform_0(%arg0: i32) -> (i32, i32) {
    %c0_i32 = arith.constant 0 : i32
    %c0_i32_0 = arith.constant 0 : i32
    return %arg0, %c0_i32 : i32, i32
  }
  func.func @transform_1(%arg0: i32) -> (i32, i32) {
    %c0_i32 = arith.constant 0 : i32
    %c0_i32_0 = arith.constant 0 : i32
    %c0_i32_1 = arith.constant 0 : i32
    return %c0_i32, %c0_i32_0 : i32, i32
  }
  func.func @transform_2(%arg0: i32) -> (i32, i32) {
    %c0_i32 = arith.constant 0 : i32
    %c0_i32_0 = arith.constant 0 : i32
    %c0_i32_1 = arith.constant 0 : i32
    return %c0_i32, %c0_i32_0 : i32, i32
  }
  func.func @transform_3(%arg0: i32) -> (i32, i32) {
    %c0_i32 = arith.constant 0 : i32
    %c0_i32_0 = arith.constant 0 : i32
    return %arg0, %c0_i32 : i32, i32
  }
}

module attributes {stable_mosaic.version = 11 : i64} {
  func.func @_attn_mix_kernel(%arg0: i32, %arg1: memref<1x8x32xf32, #tpu.memory_space<vmem>>, %arg2: memref<1x8x32xf32, #tpu.memory_space<vmem>>, %arg3: memref<1x8x32xf32, #tpu.memory_space<vmem>>, %arg4: memref<1x1x8xf32, #tpu.memory_space<vmem>>, %arg5: memref<1x8x1xi32, #tpu.memory_space<vmem>>, %arg6: memref<1x8x128xf32, #tpu.memory_space<vmem>>, %arg7: memref<1x8x1xf32, #tpu.memory_space<vmem>>, %arg8: memref<32x32xbf16, #tpu.memory_space<vmem>>, %arg9: memref<1x32xf32, #tpu.memory_space<vmem>>, %arg10: memref<32x32xbf16, #tpu.memory_space<vmem>>, %arg11: memref<1x32xf32, #tpu.memory_space<vmem>>, %arg12: memref<1x32xf32, #tpu.memory_space<vmem>>, %arg13: memref<1x1xf32, #tpu.memory_space<vmem>>, %arg14: memref<1x32xf32, #tpu.memory_space<vmem>>, %arg15: memref<1x32xf32, #tpu.memory_space<vmem>>, %arg16: memref<1x32xf32, #tpu.memory_space<vmem>>, %arg17: memref<1x1xf32, #tpu.memory_space<vmem>>, %arg18: memref<32x128xbf16, #tpu.memory_space<vmem>>, %arg19: memref<1x128xf32, #tpu.memory_space<vmem>>, %arg20: memref<32x128xbf16, #tpu.memory_space<vmem>>, %arg21: memref<1x128xf32, #tpu.memory_space<vmem>>, %arg22: memref<1x8x128xf32, #tpu.memory_space<vmem>>, %arg23: memref<1x8x1xf32, #tpu.memory_space<vmem>>, %arg24: memref<1x1x1xf32, #tpu.memory_space<vmem>>) attributes {dimension_semantics = [#tpu.dimension_semantics<parallel>], iteration_bounds = array<i64: 2>, scalar_prefetch = 0 : i64, scratch_operands = 0 : i64, tpu.core_type = #tpu.core_type<tc>, window_params = [{transform_indices = @transform_0, window_bounds = array<i64: 1, 8, 32>}, {transform_indices = @transform_1, window_bounds = array<i64: 1, 8, 32>}, {transform_indices = @transform_2, window_bounds = array<i64: 1, 8, 32>}, {transform_indices = @transform_3, window_bounds = array<i64: 1, 1, 8>}, {transform_indices = @transform_4, window_bounds = array<i64: 1, 8, 1>}, {transform_indices = @transform_5, window_bounds = array<i64: 1, 8, 128>}, {transform_indices = @transform_6, window_bounds = array<i64: 1, 8, 1>}, {pipeline_mode = #tpu.pipeline_mode<synchronous>, transform_indices = @transform_7, window_bounds = array<i64: 32, 32>}, {pipeline_mode = #tpu.pipeline_mode<synchronous>, transform_indices = @transform_8, window_bounds = array<i64: 1, 32>}, {pipeline_mode = #tpu.pipeline_mode<synchronous>, transform_indices = @transform_9, window_bounds = array<i64: 32, 32>}, {pipeline_mode = #tpu.pipeline_mode<synchronous>, transform_indices = @transform_10, window_bounds = array<i64: 1, 32>}, {pipeline_mode = #tpu.pipeline_mode<synchronous>, transform_indices = @transform_11, window_bounds = array<i64: 1, 32>}, {pipeline_mode = #tpu.pipeline_mode<synchronous>, transform_indices = @transform_12, window_bounds = array<i64: 1, 1>}, {pipeline_mode = #tpu.pipeline_mode<synchronous>, transform_indices = @transform_13, window_bounds = array<i64: 1, 32>}, {pipeline_mode = #tpu.pipeline_mode<synchronous>, transform_indices = @transform_14, window_bounds = array<i64: 1, 32>}, {pipeline_mode = #tpu.pipeline_mode<synchronous>, transform_indices = @transform_15, window_bounds = array<i64: 1, 32>}, {pipeline_mode = #tpu.pipeline_mode<synchronous>, transform_indices = @transform_16, window_bounds = array<i64: 1, 1>}, {pipeline_mode = #tpu.pipeline_mode<synchronous>, transform_indices = @transform_17, window_bounds = array<i64: 32, 128>}, {pipeline_mode = #tpu.pipeline_mode<synchronous>, transform_indices = @transform_18, window_bounds = array<i64: 1, 128>}, {pipeline_mode = #tpu.pipeline_mode<synchronous>, transform_indices = @transform_19, window_bounds = array<i64: 32, 128>}, {pipeline_mode = #tpu.pipeline_mode<synchronous>, transform_indices = @transform_20, window_bounds = array<i64: 1, 128>}, {transform_indices = @transform_21, window_bounds = array<i64: 1, 8, 128>}, {transform_indices = @transform_22, window_bounds = array<i64: 1, 8, 1>}, {transform_indices = @transform_23, window_bounds = array<i64: 1, 1, 1>}]} {
    %c0 = arith.constant 0 : index
    %c0_0 = arith.constant 0 : index
    %c0_1 = arith.constant 0 : index
    %0 = vector.load %arg1[%c0, %c0_0, %c0_1] : memref<1x8x32xf32, #tpu.memory_space<vmem>>, vector<1x8x32xf32>
    %1 = vector.shape_cast %0 : vector<1x8x32xf32> to vector<8x32xf32>
    %c0_2 = arith.constant 0 : index
    %c0_3 = arith.constant 0 : index
    %c0_4 = arith.constant 0 : index
    %2 = vector.load %arg2[%c0_2, %c0_3, %c0_4] : memref<1x8x32xf32, #tpu.memory_space<vmem>>, vector<1x8x32xf32>
    %3 = vector.shape_cast %2 : vector<1x8x32xf32> to vector<8x32xf32>
    %c0_5 = arith.constant 0 : index
    %c0_6 = arith.constant 0 : index
    %c0_7 = arith.constant 0 : index
    %4 = vector.load %arg3[%c0_5, %c0_6, %c0_7] : memref<1x8x32xf32, #tpu.memory_space<vmem>>, vector<1x8x32xf32>
    %5 = vector.shape_cast %4 : vector<1x8x32xf32> to vector<8x32xf32>
    %c0_8 = arith.constant 0 : index
    %c0_9 = arith.constant 0 : index
    %c0_10 = arith.constant 0 : index
    %6 = vector.load %arg4[%c0_8, %c0_9, %c0_10] : memref<1x1x8xf32, #tpu.memory_space<vmem>>, vector<1x1x8xf32>
    %7 = vector.shape_cast %6 : vector<1x1x8xf32> to vector<1x8xf32>
    %c0_11 = arith.constant 0 : index
    %c0_12 = arith.constant 0 : index
    %c0_13 = arith.constant 0 : index
    %8 = vector.load %arg5[%c0_11, %c0_12, %c0_13] : memref<1x8x1xi32, #tpu.memory_space<vmem>>, vector<1x8x1xi32>
    %9 = vector.shape_cast %8 : vector<1x8x1xi32> to vector<8x1xi32>
    %10 = arith.truncf %1 : vector<8x32xf32> to vector<8x32xbf16>
    %c0_14 = arith.constant 0 : index
    %c0_15 = arith.constant 0 : index
    %11 = vector.load %arg8[%c0_14, %c0_15] : memref<32x32xbf16, #tpu.memory_space<vmem>>, vector<32x32xbf16>
    %cst = arith.constant dense<0.000000e+00> : vector<8x32xf32>
    %12 = tpu.matmul %10, %11, %cst {dimension_numbers = #tpu.dot_dimension_numbers<[1], [0], [0], [1], [0, 0, 1, 1], [], []>} : vector<8x32xbf16>, vector<32x32xbf16>, vector<8x32xf32> -> vector<8x32xf32>
    %c0_16 = arith.constant 0 : index
    %c0_17 = arith.constant 0 : index
    %13 = vector.load %arg9[%c0_16, %c0_17] : memref<1x32xf32, #tpu.memory_space<vmem>>, vector<1x32xf32>
    %14 = vector.broadcast %13 : vector<1x32xf32> to vector<8x32xf32>
    %15 = arith.addf %12, %14 : vector<8x32xf32>
    %16 = arith.truncf %3 : vector<8x32xf32> to vector<8x32xbf16>
    %c0_18 = arith.constant 0 : index
    %c0_19 = arith.constant 0 : index
    %17 = vector.load %arg10[%c0_18, %c0_19] : memref<32x32xbf16, #tpu.memory_space<vmem>>, vector<32x32xbf16>
    %cst_20 = arith.constant dense<0.000000e+00> : vector<8x32xf32>
    %18 = tpu.matmul %16, %17, %cst_20 {dimension_numbers = #tpu.dot_dimension_numbers<[1], [0], [0], [1], [0, 0, 1, 1], [], []>} : vector<8x32xbf16>, vector<32x32xbf16>, vector<8x32xf32> -> vector<8x32xf32>
    %c0_21 = arith.constant 0 : index
    %c0_22 = arith.constant 0 : index
    %19 = vector.load %arg11[%c0_21, %c0_22] : memref<1x32xf32, #tpu.memory_space<vmem>>, vector<1x32xf32>
    %20 = vector.broadcast %19 : vector<1x32xf32> to vector<8x32xf32>
    %21 = arith.addf %18, %20 : vector<8x32xf32>
    %22 = vector.shape_cast %15 : vector<8x32xf32> to vector<1x8x32xf32>
    %23 = vector.shape_cast %21 : vector<8x32xf32> to vector<8x1x32xf32>
    %24 = vector.broadcast %22 : vector<1x8x32xf32> to vector<8x8x32xf32>
    %25 = vector.broadcast %23 : vector<8x1x32xf32> to vector<8x8x32xf32>
    %26 = arith.addf %24, %25 : vector<8x8x32xf32>
    %27 = math.tanh %26 : vector<8x8x32xf32>
    %c0_23 = arith.constant 0 : index
    %c0_24 = arith.constant 0 : index
    %28 = vector.load %arg12[%c0_23, %c0_24] : memref<1x32xf32, #tpu.memory_space<vmem>>, vector<1x32xf32>
    %29 = vector.shape_cast %28 : vector<1x32xf32> to vector<1x1x32xf32>
    %30 = vector.broadcast %29 : vector<1x1x32xf32> to vector<8x8x32xf32>
    %31 = arith.mulf %27, %30 : vector<8x8x32xf32>
    %cst_25 = arith.constant dense<0.000000e+00> : vector<8x8xf32>
    %32 = vector.multi_reduction <add>, %31, %cst_25 [2] : vector<8x8x32xf32> to vector<8x8xf32>
    %c0_26 = arith.constant 0 : index
    %c0_27 = arith.constant 0 : index
    %33 = vector.load %arg13[%c0_26, %c0_27] : memref<1x1xf32, #tpu.memory_space<vmem>>, vector<1x1xf32>
    %34 = vector.broadcast %33 : vector<1x1xf32> to vector<8x8xf32>
    %35 = arith.addf %32, %34 : vector<8x8xf32>
    %cst_28 = arith.constant dense<0xFF800000> : vector<8xf32>
    %36 = vector.multi_reduction <maximumf>, %35, %cst_28 [1] : vector<8x8xf32> to vector<8xf32>
    %37 = vector.shape_cast %36 : vector<8xf32> to vector<8x1xf32>
    %38 = vector.broadcast %37 : vector<8x1xf32> to vector<8x8xf32>
    %39 = arith.subf %35, %38 : vector<8x8xf32>
    %40 = math.exp %39 : vector<8x8xf32>
    %cst_29 = arith.constant dense<0.000000e+00> : vector<8xf32>
    %41 = vector.multi_reduction <add>, %40, %cst_29 [1] : vector<8x8xf32> to vector<8xf32>
    %42 = vector.shape_cast %41 : vector<8xf32> to vector<8x1xf32>
    %43 = vector.broadcast %42 : vector<8x1xf32> to vector<8x8xf32>
    %44 = arith.divf %40, %43 : vector<8x8xf32>
    %45 = vector.broadcast %7 : vector<1x8xf32> to vector<8x8xf32>
    %46 = arith.mulf %44, %45 : vector<8x8xf32>
    %cst_30 = arith.constant dense<0.000000e+00> : vector<8xf32>
    %47 = vector.multi_reduction <add>, %46, %cst_30 [1] : vector<8x8xf32> to vector<8xf32>
    %48 = vector.shape_cast %47 : vector<8xf32> to vector<8x1xf32>
    %49 = vector.broadcast %48 : vector<8x1xf32> to vector<8x8xf32>
    %50 = arith.divf %46, %49 : vector<8x8xf32>
    %cst_31 = arith.constant dense<0.000000e+00> : vector<8x32xf32>
    %51 = tpu.matmul %50, %1, %cst_31 {dimension_numbers = #tpu.dot_dimension_numbers<[1], [0], [0], [1], [0, 0, 1, 1], [], []>} : vector<8x8xf32>, vector<8x32xf32>, vector<8x32xf32> -> vector<8x32xf32>
    %c0_32 = arith.constant 0 : index
    %c0_33 = arith.constant 0 : index
    %52 = vector.load %arg14[%c0_32, %c0_33] : memref<1x32xf32, #tpu.memory_space<vmem>>, vector<1x32xf32>
    %53 = vector.broadcast %52 : vector<1x32xf32> to vector<8x32xf32>
    %54 = arith.mulf %5, %53 : vector<8x32xf32>
    %cst_34 = arith.constant dense<0.000000e+00> : vector<8xf32>
    %55 = vector.multi_reduction <add>, %54, %cst_34 [1] : vector<8x32xf32> to vector<8xf32>
    %56 = vector.shape_cast %55 : vector<8xf32> to vector<8x1xf32>
    %c0_35 = arith.constant 0 : index
    %c0_36 = arith.constant 0 : index
    %57 = vector.load %arg15[%c0_35, %c0_36] : memref<1x32xf32, #tpu.memory_space<vmem>>, vector<1x32xf32>
    %58 = vector.broadcast %57 : vector<1x32xf32> to vector<8x32xf32>
    %59 = arith.mulf %3, %58 : vector<8x32xf32>
    %cst_37 = arith.constant dense<0.000000e+00> : vector<8xf32>
    %60 = vector.multi_reduction <add>, %59, %cst_37 [1] : vector<8x32xf32> to vector<8xf32>
    %61 = vector.shape_cast %60 : vector<8xf32> to vector<8x1xf32>
    %62 = arith.addf %56, %61 : vector<8x1xf32>
    %c0_38 = arith.constant 0 : index
    %c0_39 = arith.constant 0 : index
    %63 = vector.load %arg16[%c0_38, %c0_39] : memref<1x32xf32, #tpu.memory_space<vmem>>, vector<1x32xf32>
    %64 = vector.broadcast %63 : vector<1x32xf32> to vector<8x32xf32>
    %65 = arith.mulf %51, %64 : vector<8x32xf32>
    %cst_40 = arith.constant dense<0.000000e+00> : vector<8xf32>
    %66 = vector.multi_reduction <add>, %65, %cst_40 [1] : vector<8x32xf32> to vector<8xf32>
    %67 = vector.shape_cast %66 : vector<8xf32> to vector<8x1xf32>
    %68 = arith.addf %62, %67 : vector<8x1xf32>
    %c0_41 = arith.constant 0 : index
    %c0_42 = arith.constant 0 : index
    %69 = vector.load %arg17[%c0_41, %c0_42] : memref<1x1xf32, #tpu.memory_space<vmem>>, vector<1x1xf32>
    %70 = vector.broadcast %69 : vector<1x1xf32> to vector<8x1xf32>
    %71 = arith.addf %68, %70 : vector<8x1xf32>
    %72 = arith.negf %71 : vector<8x1xf32>
    %73 = math.exp %72 : vector<8x1xf32>
    %cst_43 = arith.constant 1.000000e+00 : f32
    %74 = vector.broadcast %cst_43 : f32 to vector<8x1xf32>
    %75 = arith.addf %74, %73 : vector<8x1xf32>
    %76 = arith.divf %74, %75 : vector<8x1xf32>
    %c0_44 = arith.constant 0 : index
    %c0_45 = arith.constant 0 : index
    %c0_46 = arith.constant 0 : index
    %77 = vector.load %arg23[%c0_44, %c0_45, %c0_46] : memref<1x8x1xf32, #tpu.memory_space<vmem>>, vector<1x8x1xf32>
    %78 = vector.shape_cast %77 : vector<1x8x1xf32> to vector<8x1xf32>
    %79 = vector.shape_cast %76 : vector<8x1xf32> to vector<1x8x1xf32>
    tpu.vector_store %arg23[%c0_44, %c0_45, %c0_46], %79 {strides = array<i32>} : memref<1x8x1xf32, #tpu.memory_space<vmem>>, vector<1x8x1xf32>,
    %80 = arith.truncf %3 : vector<8x32xf32> to vector<8x32xbf16>
    %c0_47 = arith.constant 0 : index
    %c0_48 = arith.constant 0 : index
    %81 = vector.load %arg18[%c0_47, %c0_48] : memref<32x128xbf16, #tpu.memory_space<vmem>>, vector<32x128xbf16>
    %cst_49 = arith.constant dense<0.000000e+00> : vector<8x128xf32>
    %82 = tpu.matmul %80, %81, %cst_49 {dimension_numbers = #tpu.dot_dimension_numbers<[1], [0], [0], [1], [0, 0, 1, 1], [], []>} : vector<8x32xbf16>, vector<32x128xbf16>, vector<8x128xf32> -> vector<8x128xf32>
    %c0_50 = arith.constant 0 : index
    %c0_51 = arith.constant 0 : index
    %83 = vector.load %arg19[%c0_50, %c0_51] : memref<1x128xf32, #tpu.memory_space<vmem>>, vector<1x128xf32>
    %84 = vector.broadcast %83 : vector<1x128xf32> to vector<8x128xf32>
    %85 = arith.addf %82, %84 : vector<8x128xf32>
    %86 = arith.truncf %51 : vector<8x32xf32> to vector<8x32xbf16>
    %c0_52 = arith.constant 0 : index
    %c0_53 = arith.constant 0 : index
    %87 = vector.load %arg20[%c0_52, %c0_53] : memref<32x128xbf16, #tpu.memory_space<vmem>>, vector<32x128xbf16>
    %cst_54 = arith.constant dense<0.000000e+00> : vector<8x128xf32>
    %88 = tpu.matmul %86, %87, %cst_54 {dimension_numbers = #tpu.dot_dimension_numbers<[1], [0], [0], [1], [0, 0, 1, 1], [], []>} : vector<8x32xbf16>, vector<32x128xbf16>, vector<8x128xf32> -> vector<8x128xf32>
    %89 = arith.addf %85, %88 : vector<8x128xf32>
    %c0_55 = arith.constant 0 : index
    %c0_56 = arith.constant 0 : index
    %90 = vector.load %arg21[%c0_55, %c0_56] : memref<1x128xf32, #tpu.memory_space<vmem>>, vector<1x128xf32>
    %91 = vector.broadcast %90 : vector<1x128xf32> to vector<8x128xf32>
    %92 = arith.addf %89, %91 : vector<8x128xf32>
    %cst_57 = arith.constant dense<0xFF800000> : vector<8xf32>
    %93 = vector.multi_reduction <maximumf>, %92, %cst_57 [1] : vector<8x128xf32> to vector<8xf32>
    %94 = vector.shape_cast %93 : vector<8xf32> to vector<8x1xf32>
    %95 = vector.broadcast %94 : vector<8x1xf32> to vector<8x128xf32>
    %96 = arith.subf %92, %95 : vector<8x128xf32>
    %97 = math.exp %96 : vector<8x128xf32>
    %cst_58 = arith.constant dense<0.000000e+00> : vector<8xf32>
    %98 = vector.multi_reduction <add>, %97, %cst_58 [1] : vector<8x128xf32> to vector<8xf32>
    %99 = vector.shape_cast %98 : vector<8xf32> to vector<8x1xf32>
    %100 = vector.broadcast %99 : vector<8x1xf32> to vector<8x128xf32>
    %101 = arith.divf %97, %100 : vector<8x128xf32>
    %102 = tpu.iota {dimensions = array<i32: 1>} : vector<8x128xi32>
    %103 = vector.broadcast %9 : vector<8x1xi32> to vector<8x128xi32>
    %104 = arith.cmpi eq, %102, %103 : vector<8x128xi32>
    %105 = arith.extui %104 : vector<8x128xi1> to vector<8x128xi32>
    %106 = arith.sitofp %105 : vector<8x128xi32> to vector<8x128xf32>
    %cst_59 = arith.constant dense<0.000000e+00> : vector<8x128xf32>
    %107 = tpu.matmul %50, %106, %cst_59 {dimension_numbers = #tpu.dot_dimension_numbers<[1], [0], [0], [1], [0, 0, 1, 1], [], []>} : vector<8x8xf32>, vector<8x128xf32>, vector<8x128xf32> -> vector<8x128xf32>
    %108 = vector.broadcast %76 : vector<8x1xf32> to vector<8x128xf32>
    %109 = arith.mulf %108, %101 : vector<8x128xf32>
    %cst_60 = arith.constant 1.000000e+00 : f32
    %110 = vector.broadcast %cst_60 : f32 to vector<8x1xf32>
    %111 = arith.subf %110, %76 : vector<8x1xf32>
    %112 = vector.broadcast %111 : vector<8x1xf32> to vector<8x128xf32>
    %113 = arith.mulf %112, %107 : vector<8x128xf32>
    %114 = arith.addf %109, %113 : vector<8x128xf32>
    %c0_61 = arith.constant 0 : index
    %c0_62 = arith.constant 0 : index
    %c0_63 = arith.constant 0 : index
    %115 = vector.load %arg22[%c0_61, %c0_62, %c0_63] : memref<1x8x128xf32, #tpu.memory_space<vmem>>, vector<1x8x128xf32>
    %116 = vector.shape_cast %115 : vector<1x8x128xf32> to vector<8x128xf32>
    %117 = vector.shape_cast %114 : vector<8x128xf32> to vector<1x8x128xf32>
    tpu.vector_store %arg22[%c0_61, %c0_62, %c0_63], %117 {strides = array<i32>} : memref<1x8x128xf32, #tpu.memory_space<vmem>>, vector<1x8x128xf32>,
    %cst_64 = arith.constant 9.99999971E-10 : f32
    %118 = vector.broadcast %cst_64 : f32 to vector<8x128xf32>
    %119 = arith.addf %114, %118 : vector<8x128xf32>
    %120 = math.log %119 : vector<8x128xf32>
    %c0_65 = arith.constant 0 : index
    %c0_66 = arith.constant 0 : index
    %c0_67 = arith.constant 0 : index
    %121 = vector.load %arg6[%c0_65, %c0_66, %c0_67] : memref<1x8x128xf32, #tpu.memory_space<vmem>>, vector<1x8x128xf32>
    %122 = vector.shape_cast %121 : vector<1x8x128xf32> to vector<8x128xf32>
    %c0_68 = arith.constant 0 : index
    %c0_69 = arith.constant 0 : index
    %c0_70 = arith.constant 0 : index
    %123 = vector.load %arg7[%c0_68, %c0_69, %c0_70] : memref<1x8x1xf32, #tpu.memory_space<vmem>>, vector<1x8x1xf32>
    %124 = vector.shape_cast %123 : vector<1x8x1xf32> to vector<8x1xf32>
    %125 = arith.mulf %120, %122 : vector<8x128xf32>
    %cst_71 = arith.constant dense<0.000000e+00> : vector<8xf32>
    %126 = vector.multi_reduction <add>, %125, %cst_71 [1] : vector<8x128xf32> to vector<8xf32>
    %127 = vector.shape_cast %126 : vector<8xf32> to vector<8x1xf32>
    %cst_72 = arith.constant 0.000000e+00 : f32
    %128 = vector.broadcast %cst_72 : f32 to vector<8x1xf32>
    %129 = arith.subf %128, %127 : vector<8x1xf32>
    %130 = arith.mulf %129, %124 : vector<8x1xf32>
    %131 = vector.shape_cast %130 : vector<8x1xf32> to vector<1x8x1xf32>
    %cst_73 = arith.constant dense<0.000000e+00> : vector<1xf32>
    %132 = vector.multi_reduction <add>, %131, %cst_73 [1, 2] : vector<1x8x1xf32> to vector<1xf32>
    %133 = vector.shape_cast %132 : vector<1xf32> to vector<1x1x1xf32>
    %134 = vector.extract %133[0, 0, 0] : f32 from vector<1x1x1xf32>
    %135 = vector.shape_cast %124 : vector<8x1xf32> to vector<1x8x1xf32>
    %cst_74 = arith.constant dense<0.000000e+00> : vector<1xf32>
    %136 = vector.multi_reduction <add>, %135, %cst_74 [1, 2] : vector<1x8x1xf32> to vector<1xf32>
    %137 = vector.shape_cast %136 : vector<1xf32> to vector<1x1x1xf32>
    %138 = vector.extract %137[0, 0, 0] : f32 from vector<1x1x1xf32>
    %139 = arith.divf %134, %138 : f32
    %140 = vector.broadcast %139 : f32 to vector<1x1xf32>
    %c0_75 = arith.constant 0 : index
    %c0_76 = arith.constant 0 : index
    %c0_77 = arith.constant 0 : index
    %141 = vector.load %arg24[%c0_75, %c0_76, %c0_77] : memref<1x1x1xf32, #tpu.memory_space<vmem>>, vector<1x1x1xf32>
    %142 = vector.shape_cast %141 : vector<1x1x1xf32> to vector<1x1xf32>
    %143 = vector.shape_cast %140 : vector<1x1xf32> to vector<1x1x1xf32>
    tpu.vector_store %arg24[%c0_75, %c0_76, %c0_77], %143 {strides = array<i32>} : memref<1x1x1xf32, #tpu.memory_space<vmem>>, vector<1x1x1xf32>,
    return
  }
  func.func @transform_0(%arg0: i32) -> (i32, i32, i32) {
    %c0_i32 = arith.constant 0 : i32
    %c0_i32_0 = arith.constant 0 : i32
    %c0_i32_1 = arith.constant 0 : i32
    return %arg0, %c0_i32, %c0_i32_0 : i32, i32, i32
  }
  func.func @transform_1(%arg0: i32) -> (i32, i32, i32) {
    %c0_i32 = arith.constant 0 : i32
    %c0_i32_0 = arith.constant 0 : i32
    %c0_i32_1 = arith.constant 0 : i32
    return %arg0, %c0_i32, %c0_i32_0 : i32, i32, i32
  }
  func.func @transform_2(%arg0: i32) -> (i32, i32, i32) {
    %c0_i32 = arith.constant 0 : i32
    %c0_i32_0 = arith.constant 0 : i32
    %c0_i32_1 = arith.constant 0 : i32
    return %arg0, %c0_i32, %c0_i32_0 : i32, i32, i32
  }
  func.func @transform_3(%arg0: i32) -> (i32, i32, i32) {
    %c0_i32 = arith.constant 0 : i32
    %c0_i32_0 = arith.constant 0 : i32
    %c0_i32_1 = arith.constant 0 : i32
    return %arg0, %c0_i32, %c0_i32_0 : i32, i32, i32
  }
  func.func @transform_4(%arg0: i32) -> (i32, i32, i32) {
    %c0_i32 = arith.constant 0 : i32
    %c0_i32_0 = arith.constant 0 : i32
    %c0_i32_1 = arith.constant 0 : i32
    return %arg0, %c0_i32, %c0_i32_0 : i32, i32, i32
  }
  func.func @transform_5(%arg0: i32) -> (i32, i32, i32) {
    %c0_i32 = arith.constant 0 : i32
    %c0_i32_0 = arith.constant 0 : i32
    %c0_i32_1 = arith.constant 0 : i32
    return %arg0, %c0_i32, %c0_i32_0 : i32, i32, i32
  }
  func.func @transform_6(%arg0: i32) -> (i32, i32, i32) {
    %c0_i32 = arith.constant 0 : i32
    %c0_i32_0 = arith.constant 0 : i32
    %c0_i32_1 = arith.constant 0 : i32
    return %arg0, %c0_i32, %c0_i32_0 : i32, i32, i32
  }
  func.func @transform_7(%arg0: i32) -> (i32, i32) {
    %c0_i32 = arith.constant 0 : i32
    %c0_i32_0 = arith.constant 0 : i32
    %c0_i32_1 = arith.constant 0 : i32
    return %c0_i32, %c0_i32_0 : i32, i32
  }
  func.func @transform_8(%arg0: i32) -> (i32, i32) {
    %c0_i32 = arith.constant 0 : i32
    %c0_i32_0 = arith.constant 0 : i32
    %c0_i32_1 = arith.constant 0 : i32
    return %c0_i32, %c0_i32_0 : i32, i32
  }
  func.func @transform_9(%arg0: i32) -> (i32, i32) {
    %c0_i32 = arith.constant 0 : i32
    %c0_i32_0 = arith.constant 0 : i32
    %c0_i32_1 = arith.constant 0 : i32
    return %c0_i32, %c0_i32_0 : i32, i32
  }
  func.func @transform_10(%arg0: i32) -> (i32, i32) {
    %c0_i32 = arith.constant 0 : i32
    %c0_i32_0 = arith.constant 0 : i32
    %c0_i32_1 = arith.constant 0 : i32
    return %c0_i32, %c0_i32_0 : i32, i32
  }
  func.func @transform_11(%arg0: i32) -> (i32, i32) {
    %c0_i32 = arith.constant 0 : i32
    %c0_i32_0 = arith.constant 0 : i32
    %c0_i32_1 = arith.constant 0 : i32
    return %c0_i32, %c0_i32_0 : i32, i32
  }
  func.func @transform_12(%arg0: i32) -> (i32, i32) {
    %c0_i32 = arith.constant 0 : i32
    %c0_i32_0 = arith.constant 0 : i32
    %c0_i32_1 = arith.constant 0 : i32
    return %c0_i32, %c0_i32_0 : i32, i32
  }
  func.func @transform_13(%arg0: i32) -> (i32, i32) {
    %c0_i32 = arith.constant 0 : i32
    %c0_i32_0 = arith.constant 0 : i32
    %c0_i32_1 = arith.constant 0 : i32
    return %c0_i32, %c0_i32_0 : i32, i32
  }
  func.func @transform_14(%arg0: i32) -> (i32, i32) {
    %c0_i32 = arith.constant 0 : i32
    %c0_i32_0 = arith.constant 0 : i32
    %c0_i32_1 = arith.constant 0 : i32
    return %c0_i32, %c0_i32_0 : i32, i32
  }
  func.func @transform_15(%arg0: i32) -> (i32, i32) {
    %c0_i32 = arith.constant 0 : i32
    %c0_i32_0 = arith.constant 0 : i32
    %c0_i32_1 = arith.constant 0 : i32
    return %c0_i32, %c0_i32_0 : i32, i32
  }
  func.func @transform_16(%arg0: i32) -> (i32, i32) {
    %c0_i32 = arith.constant 0 : i32
    %c0_i32_0 = arith.constant 0 : i32
    %c0_i32_1 = arith.constant 0 : i32
    return %c0_i32, %c0_i32_0 : i32, i32
  }
  func.func @transform_17(%arg0: i32) -> (i32, i32) {
    %c0_i32 = arith.constant 0 : i32
    %c0_i32_0 = arith.constant 0 : i32
    %c0_i32_1 = arith.constant 0 : i32
    return %c0_i32, %c0_i32_0 : i32, i32
  }
  func.func @transform_18(%arg0: i32) -> (i32, i32) {
    %c0_i32 = arith.constant 0 : i32
    %c0_i32_0 = arith.constant 0 : i32
    %c0_i32_1 = arith.constant 0 : i32
    return %c0_i32, %c0_i32_0 : i32, i32
  }
  func.func @transform_19(%arg0: i32) -> (i32, i32) {
    %c0_i32 = arith.constant 0 : i32
    %c0_i32_0 = arith.constant 0 : i32
    %c0_i32_1 = arith.constant 0 : i32
    return %c0_i32, %c0_i32_0 : i32, i32
  }
  func.func @transform_20(%arg0: i32) -> (i32, i32) {
    %c0_i32 = arith.constant 0 : i32
    %c0_i32_0 = arith.constant 0 : i32
    %c0_i32_1 = arith.constant 0 : i32
    return %c0_i32, %c0_i32_0 : i32, i32
  }
  func.func @transform_21(%arg0: i32) -> (i32, i32, i32) {
    %c0_i32 = arith.constant 0 : i32
    %c0_i32_0 = arith.constant 0 : i32
    %c0_i32_1 = arith.constant 0 : i32
    return %arg0, %c0_i32, %c0_i32_0 : i32, i32, i32
  }
  func.func @transform_22(%arg0: i32) -> (i32, i32, i32) {
    %c0_i32 = arith.constant 0 : i32
    %c0_i32_0 = arith.constant 0 : i32
    %c0_i32_1 = arith.constant 0 : i32
    return %arg0, %c0_i32, %c0_i32_0 : i32, i32, i32
  }
  func.func @transform_23(%arg0: i32) -> (i32, i32, i32) {
    %c0_i32 = arith.constant 0 : i32
    %c0_i32_0 = arith.constant 0 : i32
    %c0_i32_1 = arith.constant 0 : i32
    return %arg0, %c0_i32, %c0_i32_0 : i32, i32, i32
  }
}

module attributes {stable_mosaic.version = 11 : i64} {
  func.func @_lstm_rec_kernel(%arg0: i32, %arg1: memref<8x2x128xf32, #tpu.memory_space<vmem>>, %arg2: memref<32x128xf32, #tpu.memory_space<vmem>>, %arg3: memref<2x32xf32, #tpu.memory_space<vmem>>, %arg4: memref<2x32xf32, #tpu.memory_space<vmem>>, %arg5: memref<8x2x32xf32, #tpu.memory_space<vmem>>) attributes {dimension_semantics = [#tpu.dimension_semantics<arbitrary>], iteration_bounds = array<i64: 1>, scalar_prefetch = 0 : i64, scratch_operands = 0 : i64, tpu.core_type = #tpu.core_type<tc>, window_params = [{pipeline_mode = #tpu.pipeline_mode<synchronous>, transform_indices = @transform_0, window_bounds = array<i64: 8, 2, 128>}, {pipeline_mode = #tpu.pipeline_mode<synchronous>, transform_indices = @transform_1, window_bounds = array<i64: 32, 128>}, {pipeline_mode = #tpu.pipeline_mode<synchronous>, transform_indices = @transform_2, window_bounds = array<i64: 2, 32>}, {pipeline_mode = #tpu.pipeline_mode<synchronous>, transform_indices = @transform_3, window_bounds = array<i64: 2, 32>}, {pipeline_mode = #tpu.pipeline_mode<synchronous>, transform_indices = @transform_4, window_bounds = array<i64: 8, 2, 32>}]} {
    %c0 = arith.constant 0 : index
    %c0_0 = arith.constant 0 : index
    %0 = vector.load %arg3[%c0, %c0_0] : memref<2x32xf32, #tpu.memory_space<vmem>>, vector<2x32xf32>
    %c0_1 = arith.constant 0 : index
    %c0_2 = arith.constant 0 : index
    %1 = vector.load %arg4[%c0_1, %c0_2] : memref<2x32xf32, #tpu.memory_space<vmem>>, vector<2x32xf32>
    %c0_i32 = arith.constant 0 : i32
    %2 = arith.index_cast %c0_i32 : i32 to index
    %c0_3 = arith.constant 0 : index
    %c0_4 = arith.constant 0 : index
    %3 = vector.load %arg1[%2, %c0_3, %c0_4] : memref<8x2x128xf32, #tpu.memory_space<vmem>>, vector<1x2x128xf32>
    %4 = vector.shape_cast %3 : vector<1x2x128xf32> to vector<2x128xf32>
    %c0_5 = arith.constant 0 : index
    %c0_6 = arith.constant 0 : index
    %5 = vector.load %arg2[%c0_5, %c0_6] : memref<32x128xf32, #tpu.memory_space<vmem>>, vector<32x128xf32>
    %cst = arith.constant dense<0.000000e+00> : vector<2x128xf32>
    %6 = tpu.matmul %0, %5, %cst {dimension_numbers = #tpu.dot_dimension_numbers<[1], [0], [0], [1], [0, 0, 1, 1], [], []>} : vector<2x32xf32>, vector<32x128xf32>, vector<2x128xf32> -> vector<2x128xf32>
    %7 = arith.addf %4, %6 : vector<2x128xf32>
    %8 = vector.extract_strided_slice %7 {offsets = [0, 0], sizes = [2, 32], strides = [1, 1]} : vector<2x128xf32> to vector<2x32xf32>
    %9 = arith.negf %8 : vector<2x32xf32>
    %10 = math.exp %9 : vector<2x32xf32>
    %cst_7 = arith.constant 1.000000e+00 : f32
    %11 = vector.broadcast %cst_7 : f32 to vector<2x32xf32>
    %12 = arith.addf %11, %10 : vector<2x32xf32>
    %13 = arith.divf %11, %12 : vector<2x32xf32>
    %14 = vector.extract_strided_slice %7 {offsets = [0, 32], sizes = [2, 32], strides = [1, 1]} : vector<2x128xf32> to vector<2x32xf32>
    %15 = arith.negf %14 : vector<2x32xf32>
    %16 = math.exp %15 : vector<2x32xf32>
    %cst_8 = arith.constant 1.000000e+00 : f32
    %17 = vector.broadcast %cst_8 : f32 to vector<2x32xf32>
    %18 = arith.addf %17, %16 : vector<2x32xf32>
    %19 = arith.divf %17, %18 : vector<2x32xf32>
    %20 = vector.extract_strided_slice %7 {offsets = [0, 64], sizes = [2, 32], strides = [1, 1]} : vector<2x128xf32> to vector<2x32xf32>
    %21 = math.tanh %20 : vector<2x32xf32>
    %22 = vector.extract_strided_slice %7 {offsets = [0, 96], sizes = [2, 32], strides = [1, 1]} : vector<2x128xf32> to vector<2x32xf32>
    %23 = arith.negf %22 : vector<2x32xf32>
    %24 = math.exp %23 : vector<2x32xf32>
    %cst_9 = arith.constant 1.000000e+00 : f32
    %25 = vector.broadcast %cst_9 : f32 to vector<2x32xf32>
    %26 = arith.addf %25, %24 : vector<2x32xf32>
    %27 = arith.divf %25, %26 : vector<2x32xf32>
    %28 = arith.mulf %19, %1 : vector<2x32xf32>
    %29 = arith.mulf %13, %21 : vector<2x32xf32>
    %30 = arith.addf %28, %29 : vector<2x32xf32>
    %31 = math.tanh %30 : vector<2x32xf32>
    %32 = arith.mulf %27, %31 : vector<2x32xf32>
    %33 = arith.index_cast %c0_i32 : i32 to index
    %c0_10 = arith.constant 0 : index
    %c0_11 = arith.constant 0 : index
    %34 = vector.load %arg5[%33, %c0_10, %c0_11] : memref<8x2x32xf32, #tpu.memory_space<vmem>>, vector<1x2x32xf32>
    %35 = vector.shape_cast %34 : vector<1x2x32xf32> to vector<2x32xf32>
    %36 = vector.shape_cast %32 : vector<2x32xf32> to vector<1x2x32xf32>
    tpu.vector_store %arg5[%33, %c0_10, %c0_11], %36 {strides = array<i32>} : memref<8x2x32xf32, #tpu.memory_space<vmem>>, vector<1x2x32xf32>,
    %c1_i32 = arith.constant 1 : i32
    %37 = arith.index_cast %c1_i32 : i32 to index
    %c0_12 = arith.constant 0 : index
    %c0_13 = arith.constant 0 : index
    %38 = vector.load %arg1[%37, %c0_12, %c0_13] : memref<8x2x128xf32, #tpu.memory_space<vmem>>, vector<1x2x128xf32>
    %39 = vector.shape_cast %38 : vector<1x2x128xf32> to vector<2x128xf32>
    %c0_14 = arith.constant 0 : index
    %c0_15 = arith.constant 0 : index
    %40 = vector.load %arg2[%c0_14, %c0_15] : memref<32x128xf32, #tpu.memory_space<vmem>>, vector<32x128xf32>
    %cst_16 = arith.constant dense<0.000000e+00> : vector<2x128xf32>
    %41 = tpu.matmul %32, %40, %cst_16 {dimension_numbers = #tpu.dot_dimension_numbers<[1], [0], [0], [1], [0, 0, 1, 1], [], []>} : vector<2x32xf32>, vector<32x128xf32>, vector<2x128xf32> -> vector<2x128xf32>
    %42 = arith.addf %39, %41 : vector<2x128xf32>
    %43 = vector.extract_strided_slice %42 {offsets = [0, 0], sizes = [2, 32], strides = [1, 1]} : vector<2x128xf32> to vector<2x32xf32>
    %44 = arith.negf %43 : vector<2x32xf32>
    %45 = math.exp %44 : vector<2x32xf32>
    %cst_17 = arith.constant 1.000000e+00 : f32
    %46 = vector.broadcast %cst_17 : f32 to vector<2x32xf32>
    %47 = arith.addf %46, %45 : vector<2x32xf32>
    %48 = arith.divf %46, %47 : vector<2x32xf32>
    %49 = vector.extract_strided_slice %42 {offsets = [0, 32], sizes = [2, 32], strides = [1, 1]} : vector<2x128xf32> to vector<2x32xf32>
    %50 = arith.negf %49 : vector<2x32xf32>
    %51 = math.exp %50 : vector<2x32xf32>
    %cst_18 = arith.constant 1.000000e+00 : f32
    %52 = vector.broadcast %cst_18 : f32 to vector<2x32xf32>
    %53 = arith.addf %52, %51 : vector<2x32xf32>
    %54 = arith.divf %52, %53 : vector<2x32xf32>
    %55 = vector.extract_strided_slice %42 {offsets = [0, 64], sizes = [2, 32], strides = [1, 1]} : vector<2x128xf32> to vector<2x32xf32>
    %56 = math.tanh %55 : vector<2x32xf32>
    %57 = vector.extract_strided_slice %42 {offsets = [0, 96], sizes = [2, 32], strides = [1, 1]} : vector<2x128xf32> to vector<2x32xf32>
    %58 = arith.negf %57 : vector<2x32xf32>
    %59 = math.exp %58 : vector<2x32xf32>
    %cst_19 = arith.constant 1.000000e+00 : f32
    %60 = vector.broadcast %cst_19 : f32 to vector<2x32xf32>
    %61 = arith.addf %60, %59 : vector<2x32xf32>
    %62 = arith.divf %60, %61 : vector<2x32xf32>
    %63 = arith.mulf %54, %30 : vector<2x32xf32>
    %64 = arith.mulf %48, %56 : vector<2x32xf32>
    %65 = arith.addf %63, %64 : vector<2x32xf32>
    %66 = math.tanh %65 : vector<2x32xf32>
    %67 = arith.mulf %62, %66 : vector<2x32xf32>
    %68 = arith.index_cast %c1_i32 : i32 to index
    %c0_20 = arith.constant 0 : index
    %c0_21 = arith.constant 0 : index
    %69 = vector.load %arg5[%68, %c0_20, %c0_21] : memref<8x2x32xf32, #tpu.memory_space<vmem>>, vector<1x2x32xf32>
    %70 = vector.shape_cast %69 : vector<1x2x32xf32> to vector<2x32xf32>
    %71 = vector.shape_cast %67 : vector<2x32xf32> to vector<1x2x32xf32>
    tpu.vector_store %arg5[%68, %c0_20, %c0_21], %71 {strides = array<i32>} : memref<8x2x32xf32, #tpu.memory_space<vmem>>, vector<1x2x32xf32>,
    %c2_i32 = arith.constant 2 : i32
    %72 = arith.index_cast %c2_i32 : i32 to index
    %c0_22 = arith.constant 0 : index
    %c0_23 = arith.constant 0 : index
    %73 = vector.load %arg1[%72, %c0_22, %c0_23] : memref<8x2x128xf32, #tpu.memory_space<vmem>>, vector<1x2x128xf32>
    %74 = vector.shape_cast %73 : vector<1x2x128xf32> to vector<2x128xf32>
    %c0_24 = arith.constant 0 : index
    %c0_25 = arith.constant 0 : index
    %75 = vector.load %arg2[%c0_24, %c0_25] : memref<32x128xf32, #tpu.memory_space<vmem>>, vector<32x128xf32>
    %cst_26 = arith.constant dense<0.000000e+00> : vector<2x128xf32>
    %76 = tpu.matmul %67, %75, %cst_26 {dimension_numbers = #tpu.dot_dimension_numbers<[1], [0], [0], [1], [0, 0, 1, 1], [], []>} : vector<2x32xf32>, vector<32x128xf32>, vector<2x128xf32> -> vector<2x128xf32>
    %77 = arith.addf %74, %76 : vector<2x128xf32>
    %78 = vector.extract_strided_slice %77 {offsets = [0, 0], sizes = [2, 32], strides = [1, 1]} : vector<2x128xf32> to vector<2x32xf32>
    %79 = arith.negf %78 : vector<2x32xf32>
    %80 = math.exp %79 : vector<2x32xf32>
    %cst_27 = arith.constant 1.000000e+00 : f32
    %81 = vector.broadcast %cst_27 : f32 to vector<2x32xf32>
    %82 = arith.addf %81, %80 : vector<2x32xf32>
    %83 = arith.divf %81, %82 : vector<2x32xf32>
    %84 = vector.extract_strided_slice %77 {offsets = [0, 32], sizes = [2, 32], strides = [1, 1]} : vector<2x128xf32> to vector<2x32xf32>
    %85 = arith.negf %84 : vector<2x32xf32>
    %86 = math.exp %85 : vector<2x32xf32>
    %cst_28 = arith.constant 1.000000e+00 : f32
    %87 = vector.broadcast %cst_28 : f32 to vector<2x32xf32>
    %88 = arith.addf %87, %86 : vector<2x32xf32>
    %89 = arith.divf %87, %88 : vector<2x32xf32>
    %90 = vector.extract_strided_slice %77 {offsets = [0, 64], sizes = [2, 32], strides = [1, 1]} : vector<2x128xf32> to vector<2x32xf32>
    %91 = math.tanh %90 : vector<2x32xf32>
    %92 = vector.extract_strided_slice %77 {offsets = [0, 96], sizes = [2, 32], strides = [1, 1]} : vector<2x128xf32> to vector<2x32xf32>
    %93 = arith.negf %92 : vector<2x32xf32>
    %94 = math.exp %93 : vector<2x32xf32>
    %cst_29 = arith.constant 1.000000e+00 : f32
    %95 = vector.broadcast %cst_29 : f32 to vector<2x32xf32>
    %96 = arith.addf %95, %94 : vector<2x32xf32>
    %97 = arith.divf %95, %96 : vector<2x32xf32>
    %98 = arith.mulf %89, %65 : vector<2x32xf32>
    %99 = arith.mulf %83, %91 : vector<2x32xf32>
    %100 = arith.addf %98, %99 : vector<2x32xf32>
    %101 = math.tanh %100 : vector<2x32xf32>
    %102 = arith.mulf %97, %101 : vector<2x32xf32>
    %103 = arith.index_cast %c2_i32 : i32 to index
    %c0_30 = arith.constant 0 : index
    %c0_31 = arith.constant 0 : index
    %104 = vector.load %arg5[%103, %c0_30, %c0_31] : memref<8x2x32xf32, #tpu.memory_space<vmem>>, vector<1x2x32xf32>
    %105 = vector.shape_cast %104 : vector<1x2x32xf32> to vector<2x32xf32>
    %106 = vector.shape_cast %102 : vector<2x32xf32> to vector<1x2x32xf32>
    tpu.vector_store %arg5[%103, %c0_30, %c0_31], %106 {strides = array<i32>} : memref<8x2x32xf32, #tpu.memory_space<vmem>>, vector<1x2x32xf32>,
    %c3_i32 = arith.constant 3 : i32
    %107 = arith.index_cast %c3_i32 : i32 to index
    %c0_32 = arith.constant 0 : index
    %c0_33 = arith.constant 0 : index
    %108 = vector.load %arg1[%107, %c0_32, %c0_33] : memref<8x2x128xf32, #tpu.memory_space<vmem>>, vector<1x2x128xf32>
    %109 = vector.shape_cast %108 : vector<1x2x128xf32> to vector<2x128xf32>
    %c0_34 = arith.constant 0 : index
    %c0_35 = arith.constant 0 : index
    %110 = vector.load %arg2[%c0_34, %c0_35] : memref<32x128xf32, #tpu.memory_space<vmem>>, vector<32x128xf32>
    %cst_36 = arith.constant dense<0.000000e+00> : vector<2x128xf32>
    %111 = tpu.matmul %102, %110, %cst_36 {dimension_numbers = #tpu.dot_dimension_numbers<[1], [0], [0], [1], [0, 0, 1, 1], [], []>} : vector<2x32xf32>, vector<32x128xf32>, vector<2x128xf32> -> vector<2x128xf32>
    %112 = arith.addf %109, %111 : vector<2x128xf32>
    %113 = vector.extract_strided_slice %112 {offsets = [0, 0], sizes = [2, 32], strides = [1, 1]} : vector<2x128xf32> to vector<2x32xf32>
    %114 = arith.negf %113 : vector<2x32xf32>
    %115 = math.exp %114 : vector<2x32xf32>
    %cst_37 = arith.constant 1.000000e+00 : f32
    %116 = vector.broadcast %cst_37 : f32 to vector<2x32xf32>
    %117 = arith.addf %116, %115 : vector<2x32xf32>
    %118 = arith.divf %116, %117 : vector<2x32xf32>
    %119 = vector.extract_strided_slice %112 {offsets = [0, 32], sizes = [2, 32], strides = [1, 1]} : vector<2x128xf32> to vector<2x32xf32>
    %120 = arith.negf %119 : vector<2x32xf32>
    %121 = math.exp %120 : vector<2x32xf32>
    %cst_38 = arith.constant 1.000000e+00 : f32
    %122 = vector.broadcast %cst_38 : f32 to vector<2x32xf32>
    %123 = arith.addf %122, %121 : vector<2x32xf32>
    %124 = arith.divf %122, %123 : vector<2x32xf32>
    %125 = vector.extract_strided_slice %112 {offsets = [0, 64], sizes = [2, 32], strides = [1, 1]} : vector<2x128xf32> to vector<2x32xf32>
    %126 = math.tanh %125 : vector<2x32xf32>
    %127 = vector.extract_strided_slice %112 {offsets = [0, 96], sizes = [2, 32], strides = [1, 1]} : vector<2x128xf32> to vector<2x32xf32>
    %128 = arith.negf %127 : vector<2x32xf32>
    %129 = math.exp %128 : vector<2x32xf32>
    %cst_39 = arith.constant 1.000000e+00 : f32
    %130 = vector.broadcast %cst_39 : f32 to vector<2x32xf32>
    %131 = arith.addf %130, %129 : vector<2x32xf32>
    %132 = arith.divf %130, %131 : vector<2x32xf32>
    %133 = arith.mulf %124, %100 : vector<2x32xf32>
    %134 = arith.mulf %118, %126 : vector<2x32xf32>
    %135 = arith.addf %133, %134 : vector<2x32xf32>
    %136 = math.tanh %135 : vector<2x32xf32>
    %137 = arith.mulf %132, %136 : vector<2x32xf32>
    %138 = arith.index_cast %c3_i32 : i32 to index
    %c0_40 = arith.constant 0 : index
    %c0_41 = arith.constant 0 : index
    %139 = vector.load %arg5[%138, %c0_40, %c0_41] : memref<8x2x32xf32, #tpu.memory_space<vmem>>, vector<1x2x32xf32>
    %140 = vector.shape_cast %139 : vector<1x2x32xf32> to vector<2x32xf32>
    %141 = vector.shape_cast %137 : vector<2x32xf32> to vector<1x2x32xf32>
    tpu.vector_store %arg5[%138, %c0_40, %c0_41], %141 {strides = array<i32>} : memref<8x2x32xf32, #tpu.memory_space<vmem>>, vector<1x2x32xf32>,
    %c4_i32 = arith.constant 4 : i32
    %142 = arith.index_cast %c4_i32 : i32 to index
    %c0_42 = arith.constant 0 : index
    %c0_43 = arith.constant 0 : index
    %143 = vector.load %arg1[%142, %c0_42, %c0_43] : memref<8x2x128xf32, #tpu.memory_space<vmem>>, vector<1x2x128xf32>
    %144 = vector.shape_cast %143 : vector<1x2x128xf32> to vector<2x128xf32>
    %c0_44 = arith.constant 0 : index
    %c0_45 = arith.constant 0 : index
    %145 = vector.load %arg2[%c0_44, %c0_45] : memref<32x128xf32, #tpu.memory_space<vmem>>, vector<32x128xf32>
    %cst_46 = arith.constant dense<0.000000e+00> : vector<2x128xf32>
    %146 = tpu.matmul %137, %145, %cst_46 {dimension_numbers = #tpu.dot_dimension_numbers<[1], [0], [0], [1], [0, 0, 1, 1], [], []>} : vector<2x32xf32>, vector<32x128xf32>, vector<2x128xf32> -> vector<2x128xf32>
    %147 = arith.addf %144, %146 : vector<2x128xf32>
    %148 = vector.extract_strided_slice %147 {offsets = [0, 0], sizes = [2, 32], strides = [1, 1]} : vector<2x128xf32> to vector<2x32xf32>
    %149 = arith.negf %148 : vector<2x32xf32>
    %150 = math.exp %149 : vector<2x32xf32>
    %cst_47 = arith.constant 1.000000e+00 : f32
    %151 = vector.broadcast %cst_47 : f32 to vector<2x32xf32>
    %152 = arith.addf %151, %150 : vector<2x32xf32>
    %153 = arith.divf %151, %152 : vector<2x32xf32>
    %154 = vector.extract_strided_slice %147 {offsets = [0, 32], sizes = [2, 32], strides = [1, 1]} : vector<2x128xf32> to vector<2x32xf32>
    %155 = arith.negf %154 : vector<2x32xf32>
    %156 = math.exp %155 : vector<2x32xf32>
    %cst_48 = arith.constant 1.000000e+00 : f32
    %157 = vector.broadcast %cst_48 : f32 to vector<2x32xf32>
    %158 = arith.addf %157, %156 : vector<2x32xf32>
    %159 = arith.divf %157, %158 : vector<2x32xf32>
    %160 = vector.extract_strided_slice %147 {offsets = [0, 64], sizes = [2, 32], strides = [1, 1]} : vector<2x128xf32> to vector<2x32xf32>
    %161 = math.tanh %160 : vector<2x32xf32>
    %162 = vector.extract_strided_slice %147 {offsets = [0, 96], sizes = [2, 32], strides = [1, 1]} : vector<2x128xf32> to vector<2x32xf32>
    %163 = arith.negf %162 : vector<2x32xf32>
    %164 = math.exp %163 : vector<2x32xf32>
    %cst_49 = arith.constant 1.000000e+00 : f32
    %165 = vector.broadcast %cst_49 : f32 to vector<2x32xf32>
    %166 = arith.addf %165, %164 : vector<2x32xf32>
    %167 = arith.divf %165, %166 : vector<2x32xf32>
    %168 = arith.mulf %159, %135 : vector<2x32xf32>
    %169 = arith.mulf %153, %161 : vector<2x32xf32>
    %170 = arith.addf %168, %169 : vector<2x32xf32>
    %171 = math.tanh %170 : vector<2x32xf32>
    %172 = arith.mulf %167, %171 : vector<2x32xf32>
    %173 = arith.index_cast %c4_i32 : i32 to index
    %c0_50 = arith.constant 0 : index
    %c0_51 = arith.constant 0 : index
    %174 = vector.load %arg5[%173, %c0_50, %c0_51] : memref<8x2x32xf32, #tpu.memory_space<vmem>>, vector<1x2x32xf32>
    %175 = vector.shape_cast %174 : vector<1x2x32xf32> to vector<2x32xf32>
    %176 = vector.shape_cast %172 : vector<2x32xf32> to vector<1x2x32xf32>
    tpu.vector_store %arg5[%173, %c0_50, %c0_51], %176 {strides = array<i32>} : memref<8x2x32xf32, #tpu.memory_space<vmem>>, vector<1x2x32xf32>,
    %c5_i32 = arith.constant 5 : i32
    %177 = arith.index_cast %c5_i32 : i32 to index
    %c0_52 = arith.constant 0 : index
    %c0_53 = arith.constant 0 : index
    %178 = vector.load %arg1[%177, %c0_52, %c0_53] : memref<8x2x128xf32, #tpu.memory_space<vmem>>, vector<1x2x128xf32>
    %179 = vector.shape_cast %178 : vector<1x2x128xf32> to vector<2x128xf32>
    %c0_54 = arith.constant 0 : index
    %c0_55 = arith.constant 0 : index
    %180 = vector.load %arg2[%c0_54, %c0_55] : memref<32x128xf32, #tpu.memory_space<vmem>>, vector<32x128xf32>
    %cst_56 = arith.constant dense<0.000000e+00> : vector<2x128xf32>
    %181 = tpu.matmul %172, %180, %cst_56 {dimension_numbers = #tpu.dot_dimension_numbers<[1], [0], [0], [1], [0, 0, 1, 1], [], []>} : vector<2x32xf32>, vector<32x128xf32>, vector<2x128xf32> -> vector<2x128xf32>
    %182 = arith.addf %179, %181 : vector<2x128xf32>
    %183 = vector.extract_strided_slice %182 {offsets = [0, 0], sizes = [2, 32], strides = [1, 1]} : vector<2x128xf32> to vector<2x32xf32>
    %184 = arith.negf %183 : vector<2x32xf32>
    %185 = math.exp %184 : vector<2x32xf32>
    %cst_57 = arith.constant 1.000000e+00 : f32
    %186 = vector.broadcast %cst_57 : f32 to vector<2x32xf32>
    %187 = arith.addf %186, %185 : vector<2x32xf32>
    %188 = arith.divf %186, %187 : vector<2x32xf32>
    %189 = vector.extract_strided_slice %182 {offsets = [0, 32], sizes = [2, 32], strides = [1, 1]} : vector<2x128xf32> to vector<2x32xf32>
    %190 = arith.negf %189 : vector<2x32xf32>
    %191 = math.exp %190 : vector<2x32xf32>
    %cst_58 = arith.constant 1.000000e+00 : f32
    %192 = vector.broadcast %cst_58 : f32 to vector<2x32xf32>
    %193 = arith.addf %192, %191 : vector<2x32xf32>
    %194 = arith.divf %192, %193 : vector<2x32xf32>
    %195 = vector.extract_strided_slice %182 {offsets = [0, 64], sizes = [2, 32], strides = [1, 1]} : vector<2x128xf32> to vector<2x32xf32>
    %196 = math.tanh %195 : vector<2x32xf32>
    %197 = vector.extract_strided_slice %182 {offsets = [0, 96], sizes = [2, 32], strides = [1, 1]} : vector<2x128xf32> to vector<2x32xf32>
    %198 = arith.negf %197 : vector<2x32xf32>
    %199 = math.exp %198 : vector<2x32xf32>
    %cst_59 = arith.constant 1.000000e+00 : f32
    %200 = vector.broadcast %cst_59 : f32 to vector<2x32xf32>
    %201 = arith.addf %200, %199 : vector<2x32xf32>
    %202 = arith.divf %200, %201 : vector<2x32xf32>
    %203 = arith.mulf %194, %170 : vector<2x32xf32>
    %204 = arith.mulf %188, %196 : vector<2x32xf32>
    %205 = arith.addf %203, %204 : vector<2x32xf32>
    %206 = math.tanh %205 : vector<2x32xf32>
    %207 = arith.mulf %202, %206 : vector<2x32xf32>
    %208 = arith.index_cast %c5_i32 : i32 to index
    %c0_60 = arith.constant 0 : index
    %c0_61 = arith.constant 0 : index
    %209 = vector.load %arg5[%208, %c0_60, %c0_61] : memref<8x2x32xf32, #tpu.memory_space<vmem>>, vector<1x2x32xf32>
    %210 = vector.shape_cast %209 : vector<1x2x32xf32> to vector<2x32xf32>
    %211 = vector.shape_cast %207 : vector<2x32xf32> to vector<1x2x32xf32>
    tpu.vector_store %arg5[%208, %c0_60, %c0_61], %211 {strides = array<i32>} : memref<8x2x32xf32, #tpu.memory_space<vmem>>, vector<1x2x32xf32>,
    %c6_i32 = arith.constant 6 : i32
    %212 = arith.index_cast %c6_i32 : i32 to index
    %c0_62 = arith.constant 0 : index
    %c0_63 = arith.constant 0 : index
    %213 = vector.load %arg1[%212, %c0_62, %c0_63] : memref<8x2x128xf32, #tpu.memory_space<vmem>>, vector<1x2x128xf32>
    %214 = vector.shape_cast %213 : vector<1x2x128xf32> to vector<2x128xf32>
    %c0_64 = arith.constant 0 : index
    %c0_65 = arith.constant 0 : index
    %215 = vector.load %arg2[%c0_64, %c0_65] : memref<32x128xf32, #tpu.memory_space<vmem>>, vector<32x128xf32>
    %cst_66 = arith.constant dense<0.000000e+00> : vector<2x128xf32>
    %216 = tpu.matmul %207, %215, %cst_66 {dimension_numbers = #tpu.dot_dimension_numbers<[1], [0], [0], [1], [0, 0, 1, 1], [], []>} : vector<2x32xf32>, vector<32x128xf32>, vector<2x128xf32> -> vector<2x128xf32>
    %217 = arith.addf %214, %216 : vector<2x128xf32>
    %218 = vector.extract_strided_slice %217 {offsets = [0, 0], sizes = [2, 32], strides = [1, 1]} : vector<2x128xf32> to vector<2x32xf32>
    %219 = arith.negf %218 : vector<2x32xf32>
    %220 = math.exp %219 : vector<2x32xf32>
    %cst_67 = arith.constant 1.000000e+00 : f32
    %221 = vector.broadcast %cst_67 : f32 to vector<2x32xf32>
    %222 = arith.addf %221, %220 : vector<2x32xf32>
    %223 = arith.divf %221, %222 : vector<2x32xf32>
    %224 = vector.extract_strided_slice %217 {offsets = [0, 32], sizes = [2, 32], strides = [1, 1]} : vector<2x128xf32> to vector<2x32xf32>
    %225 = arith.negf %224 : vector<2x32xf32>
    %226 = math.exp %225 : vector<2x32xf32>
    %cst_68 = arith.constant 1.000000e+00 : f32
    %227 = vector.broadcast %cst_68 : f32 to vector<2x32xf32>
    %228 = arith.addf %227, %226 : vector<2x32xf32>
    %229 = arith.divf %227, %228 : vector<2x32xf32>
    %230 = vector.extract_strided_slice %217 {offsets = [0, 64], sizes = [2, 32], strides = [1, 1]} : vector<2x128xf32> to vector<2x32xf32>
    %231 = math.tanh %230 : vector<2x32xf32>
    %232 = vector.extract_strided_slice %217 {offsets = [0, 96], sizes = [2, 32], strides = [1, 1]} : vector<2x128xf32> to vector<2x32xf32>
    %233 = arith.negf %232 : vector<2x32xf32>
    %234 = math.exp %233 : vector<2x32xf32>
    %cst_69 = arith.constant 1.000000e+00 : f32
    %235 = vector.broadcast %cst_69 : f32 to vector<2x32xf32>
    %236 = arith.addf %235, %234 : vector<2x32xf32>
    %237 = arith.divf %235, %236 : vector<2x32xf32>
    %238 = arith.mulf %229, %205 : vector<2x32xf32>
    %239 = arith.mulf %223, %231 : vector<2x32xf32>
    %240 = arith.addf %238, %239 : vector<2x32xf32>
    %241 = math.tanh %240 : vector<2x32xf32>
    %242 = arith.mulf %237, %241 : vector<2x32xf32>
    %243 = arith.index_cast %c6_i32 : i32 to index
    %c0_70 = arith.constant 0 : index
    %c0_71 = arith.constant 0 : index
    %244 = vector.load %arg5[%243, %c0_70, %c0_71] : memref<8x2x32xf32, #tpu.memory_space<vmem>>, vector<1x2x32xf32>
    %245 = vector.shape_cast %244 : vector<1x2x32xf32> to vector<2x32xf32>
    %246 = vector.shape_cast %242 : vector<2x32xf32> to vector<1x2x32xf32>
    tpu.vector_store %arg5[%243, %c0_70, %c0_71], %246 {strides = array<i32>} : memref<8x2x32xf32, #tpu.memory_space<vmem>>, vector<1x2x32xf32>,
    %c7_i32 = arith.constant 7 : i32
    %247 = arith.index_cast %c7_i32 : i32 to index
    %c0_72 = arith.constant 0 : index
    %c0_73 = arith.constant 0 : index
    %248 = vector.load %arg1[%247, %c0_72, %c0_73] : memref<8x2x128xf32, #tpu.memory_space<vmem>>, vector<1x2x128xf32>
    %249 = vector.shape_cast %248 : vector<1x2x128xf32> to vector<2x128xf32>
    %c0_74 = arith.constant 0 : index
    %c0_75 = arith.constant 0 : index
    %250 = vector.load %arg2[%c0_74, %c0_75] : memref<32x128xf32, #tpu.memory_space<vmem>>, vector<32x128xf32>
    %cst_76 = arith.constant dense<0.000000e+00> : vector<2x128xf32>
    %251 = tpu.matmul %242, %250, %cst_76 {dimension_numbers = #tpu.dot_dimension_numbers<[1], [0], [0], [1], [0, 0, 1, 1], [], []>} : vector<2x32xf32>, vector<32x128xf32>, vector<2x128xf32> -> vector<2x128xf32>
    %252 = arith.addf %249, %251 : vector<2x128xf32>
    %253 = vector.extract_strided_slice %252 {offsets = [0, 0], sizes = [2, 32], strides = [1, 1]} : vector<2x128xf32> to vector<2x32xf32>
    %254 = arith.negf %253 : vector<2x32xf32>
    %255 = math.exp %254 : vector<2x32xf32>
    %cst_77 = arith.constant 1.000000e+00 : f32
    %256 = vector.broadcast %cst_77 : f32 to vector<2x32xf32>
    %257 = arith.addf %256, %255 : vector<2x32xf32>
    %258 = arith.divf %256, %257 : vector<2x32xf32>
    %259 = vector.extract_strided_slice %252 {offsets = [0, 32], sizes = [2, 32], strides = [1, 1]} : vector<2x128xf32> to vector<2x32xf32>
    %260 = arith.negf %259 : vector<2x32xf32>
    %261 = math.exp %260 : vector<2x32xf32>
    %cst_78 = arith.constant 1.000000e+00 : f32
    %262 = vector.broadcast %cst_78 : f32 to vector<2x32xf32>
    %263 = arith.addf %262, %261 : vector<2x32xf32>
    %264 = arith.divf %262, %263 : vector<2x32xf32>
    %265 = vector.extract_strided_slice %252 {offsets = [0, 64], sizes = [2, 32], strides = [1, 1]} : vector<2x128xf32> to vector<2x32xf32>
    %266 = math.tanh %265 : vector<2x32xf32>
    %267 = vector.extract_strided_slice %252 {offsets = [0, 96], sizes = [2, 32], strides = [1, 1]} : vector<2x128xf32> to vector<2x32xf32>
    %268 = arith.negf %267 : vector<2x32xf32>
    %269 = math.exp %268 : vector<2x32xf32>
    %cst_79 = arith.constant 1.000000e+00 : f32
    %270 = vector.broadcast %cst_79 : f32 to vector<2x32xf32>
    %271 = arith.addf %270, %269 : vector<2x32xf32>
    %272 = arith.divf %270, %271 : vector<2x32xf32>
    %273 = arith.mulf %264, %240 : vector<2x32xf32>
    %274 = arith.mulf %258, %266 : vector<2x32xf32>
    %275 = arith.addf %273, %274 : vector<2x32xf32>
    %276 = math.tanh %275 : vector<2x32xf32>
    %277 = arith.mulf %272, %276 : vector<2x32xf32>
    %278 = arith.index_cast %c7_i32 : i32 to index
    %c0_80 = arith.constant 0 : index
    %c0_81 = arith.constant 0 : index
    %279 = vector.load %arg5[%278, %c0_80, %c0_81] : memref<8x2x32xf32, #tpu.memory_space<vmem>>, vector<1x2x32xf32>
    %280 = vector.shape_cast %279 : vector<1x2x32xf32> to vector<2x32xf32>
    %281 = vector.shape_cast %277 : vector<2x32xf32> to vector<1x2x32xf32>
    tpu.vector_store %arg5[%278, %c0_80, %c0_81], %281 {strides = array<i32>} : memref<8x2x32xf32, #tpu.memory_space<vmem>>, vector<1x2x32xf32>,
    %c8_i32 = arith.constant 8 : i32
    return
  }
  func.func @transform_0(%arg0: i32) -> (i32, i32, i32) {
    %c0_i32 = arith.constant 0 : i32
    %c0_i32_0 = arith.constant 0 : i32
    %c0_i32_1 = arith.constant 0 : i32
    %c0_i32_2 = arith.constant 0 : i32
    return %c0_i32, %c0_i32_0, %c0_i32_1 : i32, i32, i32
  }
  func.func @transform_1(%arg0: i32) -> (i32, i32) {
    %c0_i32 = arith.constant 0 : i32
    %c0_i32_0 = arith.constant 0 : i32
    %c0_i32_1 = arith.constant 0 : i32
    return %c0_i32, %c0_i32_0 : i32, i32
  }
  func.func @transform_2(%arg0: i32) -> (i32, i32) {
    %c0_i32 = arith.constant 0 : i32
    %c0_i32_0 = arith.constant 0 : i32
    %c0_i32_1 = arith.constant 0 : i32
    return %c0_i32, %c0_i32_0 : i32, i32
  }
  func.func @transform_3(%arg0: i32) -> (i32, i32) {
    %c0_i32 = arith.constant 0 : i32
    %c0_i32_0 = arith.constant 0 : i32
    %c0_i32_1 = arith.constant 0 : i32
    return %c0_i32, %c0_i32_0 : i32, i32
  }
  func.func @transform_4(%arg0: i32) -> (i32, i32, i32) {
    %c0_i32 = arith.constant 0 : i32
    %c0_i32_0 = arith.constant 0 : i32
    %c0_i32_1 = arith.constant 0 : i32
    %c0_i32_2 = arith.constant 0 : i32
    return %c0_i32, %c0_i32_0, %c0_i32_1 : i32, i32, i32
  }
}

</mosaic_0001>

<bundles_post_ra>
// kernel: abstract_forward.8
= control target key start
LH: loop header
LB: loop body
LE: loop exit
PB: predicated region body
PF: predicated region fallthrough
CT: control target
= control target key end

     0   :  { %v109_v0 = vmov 0.0   ;;  %vm110_vm0 = vmmov 0   ;;  %vm40_vm1 = vcmask 261120   ;;  %vm84_vm2 = vcmask 523264   ;;  %s146_s1 = inlined_call_operand.vmem [shape: bf16[32,64], index: 1, kind: input, shape index: {}]   ;;  %s147_s0 = inlined_call_operand.vmem [shape: f32[8,32], index: 0, kind: input, shape index: {}]   ;;  %s148_s2 = inlined_call_operand.vmem [shape: f32[1,64], index: 2, kind: input, shape index: {}]   ;;  %s149_s3 = inlined_call_operand.vmem [shape: f32[8,64], index: 3, kind: output, shape index: {}]  }
   0x1   :  { %97 = vmatprep.subr.bf16.mxu0 %v109_v0  ;;  %v107_v1 = vld [vmem:[%s146_s1 + $0x8] sm:$0xff]   ;;  %101 = vmatprep.mubr.msk.bf16.mxu0 %vm110_vm0, %v109_v0  ;;  %v108_v2 = vld [vmem:[%s146_s1] sm:$0xff]  }
   0x2   :  { %98 = vmatpush3.bf16.msra.mxu0 %v107_v1  ;;  %v15_v3 = vld [vmem:[%s147_s0] sm:$0xff] }
   0x3   :  { %99 = vmatprep.subr.bf16.mxu0 %v109_v0  ;;  %v16_v4 = vpack.c.bf16 %v15_v3, %v15_v3  ;;  %v90_v5 = vld [vmem:[%s148_s2] ss:$0 sm:$0xff] }
   0x6   :  { %100 = vmatpush3.bf16.msra.mxu0 %v108_v2 }
   0x9   :  { %102 = vmatmul.mubr.msk.bf16.vlgmr.msra.gmra.mxu0 %vm40_vm1, %v16_v4 }
  0xc9   :  { %v78_v6 = vpop.f32.mrf.mxu0 }
  0xca   :  { %v79_v7 = vadd.f32 %v90_v5, %v78_v6 }
  0xcb   :  { %v103_v8 = vpop.f32.mrf.mxu0 }
  0xcc   :  { %85 = vst.msk [vmem:[%s149_s3] sm:$0xff] %vm84_vm2, %v79_v7 }
  0xcd   :  { %v81_v9 = vpop.f32.mrf.mxu0 }
  0xcf   :  { %v104_v10 = vpop.f32.mrf.mxu0 }

// kernel: abstract_forward.9
= control target key start
LH: loop header
LB: loop body
LE: loop exit
PB: predicated region body
PF: predicated region fallthrough
CT: control target
= control target key end

     0   :  { %v111_v0 = vmov 0.0   ;;  %vm112_vm0 = vmmov 0   ;;  %vm41_vm1 = vcmask 261120   ;;  %s154_s1 = inlined_call_operand.vmem [shape: bf16[32,128], index: 1, kind: input, shape index: {}]   ;;  %s155_s0 = inlined_call_operand.vmem [shape: f32[16,32], index: 0, kind: input, shape index: {}]   ;;  %s156_s2 = inlined_call_operand.vmem [shape: f32[1,128], index: 2, kind: input, shape index: {}]   ;;  %s157_s3 = inlined_call_operand.vmem [shape: f32[16,128], index: 3, kind: output, shape index: {}]  }
   0x1   :  { %99 = vmatprep.subr.bf16.mxu0 %v111_v0  ;;  %v109_v1 = vld [vmem:[%s154_s1 + $0x8] sm:$0xff]   ;;  %103 = vmatprep.mubr.msk.bf16.mxu0 %vm112_vm0, %v111_v0  ;;  %v110_v2 = vld [vmem:[%s154_s1] sm:$0xff]  }
   0x2   :  { %100 = vmatpush3.bf16.msra.mxu0 %v109_v1  ;;  %v15_v3 = vld [vmem:[%s155_s0] sm:$0xff]  ;;  %v16_v4 = vld [vmem:[%s155_s0 + $0x8] sm:$0xff] }
   0x3   :  { %101 = vmatprep.subr.bf16.mxu0 %v111_v0  ;;  %v17_v5 = vpack.c.bf16 %v16_v4, %v15_v3  ;;  %v92_v6 = vld [vmem:[%s156_s2] ss:$0 sm:$0xff] }
   0x6   :  { %102 = vmatpush3.bf16.msra.mxu0 %v110_v2 }
   0x9   :  { %104 = vmatmul.mubr.msk.bf16.vlgmr.msra.gmra.mxu0 %vm41_vm1, %v17_v5 }
  0xc9   :  { %v79_v7 = vpop.f32.mrf.mxu0 }
  0xca   :  { %v80_v8 = vadd.f32 %v92_v6, %v79_v7 }
  0xcb   :  { %v105_v9 = vpop.f32.mrf.mxu0 }
  0xcc   :  { %86 = vst [vmem:[%s157_s3] sm:$0xff] %v80_v8 }
  0xcd   :  { %v82_v10 = vpop.f32.mrf.mxu0 }
  0xce   :  { %v83_v11 = vadd.f32 %v92_v6, %v82_v10 }
  0xcf   :  { %v106_v12 = vpop.f32.mrf.mxu0 }
  0xd0   :  { %87 = vst [vmem:[%s157_s3 + $0x8] sm:$0xff] %v83_v11 }

// kernel: abstract_forward.7
= control target key start
LH: loop header
LB: loop body
LE: loop exit
PB: predicated region body
PF: predicated region fallthrough
CT: control target
= control target key end

     0   :  { %v125_v0 = vmov 0.0   ;;  %vm126_vm0 = vmmov 0   ;;  %vm49_vm1 = vcmask 392192   ;;  %vm94_vm2 = vcmask 261120   ;;  %s171_s1 = inlined_call_operand.vmem [shape: bf16[48,32], index: 1, kind: input, shape index: {}]   ;;  %s172_s0 = inlined_call_operand.vmem [shape: f32[16,48], index: 0, kind: input, shape index: {}]   ;;  %s173_s2 = inlined_call_operand.vmem [shape: f32[1,32], index: 2, kind: input, shape index: {}]   ;;  %s174_s3 = inlined_call_operand.vmem [shape: f32[16,32], index: 3, kind: output, shape index: {}]  }
   0x1   :  { %110 = vmatprep.subr.bf16.mxu0 %v125_v0  ;;  %v122_v1 = vld [vmem:[%s171_s1 + $0x10] sm:$0xff]   ;;  %116 = vmatprep.mubr.msk.bf16.mxu0 %vm126_vm0, %v125_v0  ;;  %v123_v2 = vld [vmem:[%s171_s1 + $0x8] sm:$0xff]   ;;  %v124_v3 = vld [vmem:[%s171_s1] sm:$0xff]  }
   0x2   :  { %111 = vmatpush3.bf16.msra.mxu0 %v122_v1  ;;  %v15_v4 = vld [vmem:[%s172_s0] sm:$0xff]  ;;  %v16_v5 = vld [vmem:[%s172_s0 + $0x8] sm:$0xff] }
   0x3   :  { %112 = vmatprep.subr.bf16.mxu0 %v125_v0  ;;  %v17_v6 = vpack.c.bf16 %v16_v5, %v15_v4  ;;  %v101_v7 = vld [vmem:[%s173_s2] ss:$0 sm:$0xff] }
   0x6   :  { %113 = vmatpush3.bf16.msra.mxu0 %v123_v2 }
   0x7   :  { %114 = vmatprep.subr.bf16.mxu0 %v125_v0 }
   0xa   :  { %115 = vmatpush3.bf16.msra.mxu0 %v124_v3 }
   0xd   :  { %117 = vmatmul.mubr.msk.bf16.vlgmr.msra.gmra.mxu0 %vm49_vm1, %v17_v6 }
  0xcd   :  { %v87_v8 = vpop.f32.mrf.mxu0 }
  0xce   :  { %v88_v9 = vadd.f32 %v101_v7, %v87_v8 }
  0xcf   :  { %v118_v10 = vpop.f32.mrf.mxu0 }
  0xd0   :  { %95 = vst.msk [vmem:[%s174_s3] sm:$0xff] %vm94_vm2, %v88_v9 }
  0xd1   :  { %v90_v11 = vpop.f32.mrf.mxu0 }
  0xd2   :  { %v91_v12 = vadd.f32 %v101_v7, %v90_v11 }
  0xd3   :  { %v119_v13 = vpop.f32.mrf.mxu0 }
  0xd4   :  { %96 = vst.msk [vmem:[%s174_s3 + $0x8] sm:$0xff] %vm94_vm2, %v91_v12 }

// kernel: abstract_forward.6
= control target key start
LH: loop header
LB: loop body
LE: loop exit
PB: predicated region body
PF: predicated region fallthrough
CT: control target
= control target key end

     0   :  { %v290_v0 = vmov 0.0   ;;  %vm291_vm0 = vmmov 0   ;;  %vm48_vm1 = vcmask 130048   ;;  %vm121_vm2 = vcmask 261120   ;;  %s383_s2 = inlined_call_operand.vmem [shape: bf16[16,32], index: 2, kind: input, shape index: {}]   ;;  %s384_s0 = inlined_call_operand.vmem [shape: f32[16,16], index: 0, kind: input, shape index: {}]   ;;  %s385_s4 = inlined_call_operand.vmem [shape: bf16[32,32], index: 4, kind: input, shape index: {}]   ;;  %s386_s3 = inlined_call_operand.vmem [shape: f32[1,32], index: 3, kind: input, shape index: {}]   ;;  %s387_s1 = inlined_call_operand.vmem [shape: f32[16,32], index: 1, kind: input, shape index: {}]   ;;  %s388_s6 = inlined_call_operand.vmem [shape: bf16[32,32], index: 6, kind: input, shape index: {}]   ;;  %s389_s5 = inlined_call_operand.vmem [shape: f32[1,32], index: 5, kind: input, shape index: {}]   ;;  %s390_s7 = inlined_call_operand.vmem [shape: f32[1,32], index: 7, kind: input, shape index: {}]   ;;  %s391_s8 = inlined_call_operand.vmem [shape: f32[16,32], index: 8, kind: output, shape index: {}]  }
   0x1   :  { %261 = vmatprep.subr.bf16.mxu0 %v290_v0  ;;  %v285_v1 = vld [vmem:[%s383_s2] sm:$0xff]   ;;  %263 = vmatprep.mubr.msk.bf16.mxu0 %vm291_vm0, %v290_v0  ;;  %v31_v3 = vld [vmem:[%s384_s0 + $0x8] sm:$0xff] }
   0x2   :  { %v30_v2 = vld [vmem:[%s384_s0] sm:$0xff]  ;;  %267 = vmatprep.subr.bf16.mxu1 %v290_v0  ;;  %271 = vmatprep.mubr.msk.bf16.mxu1 %vm291_vm0, %v290_v0  ;;  %v286_v5 = vld [vmem:[%s385_s4 + $0x8] sm:$0xff]  }
   0x3   :  { %262 = vmatpush3.bf16.msra.mxu0 %v285_v1  ;;  %v32_v4 = vpack.c.bf16 %v31_v3, %v30_v2  ;;  %268 = vmatpush3.bf16.msra.mxu1 %v286_v5  ;;  %v287_v6 = vld [vmem:[%s385_s4] sm:$0xff]   ;;  %v94_v13 = vld [vmem:[%s387_s1 + $0x8] sm:$0xff] }
   0x4   :  { %275 = vmatprep.subr.bf16.mxu0 %v290_v0  ;;  %269 = vmatprep.subr.bf16.mxu1 %v290_v0  ;;  %v242_v7 = vld [vmem:[%s386_s3] ss:$0 sm:$0xff]  ;;  %v288_v19 = vld [vmem:[%s388_s6 + $0x8] sm:$0xff]  }
   0x5   :  { %v93_v11 = vld [vmem:[%s387_s1] sm:$0xff] }
   0x6   :  { %264 = vmatmul.mubr.msk.bf16.vlgmr.msra.gmra.mxu0 %vm48_vm1, %v32_v4  ;;  %v289_v20 = vld [vmem:[%s388_s6] sm:$0xff]  }
   0x7   :  { %279 = vmatprep.mubr.msk.bf16.mxu0 %vm291_vm0, %v290_v0  ;;  %270 = vmatpush3.bf16.msra.mxu1 %v287_v6  ;;  %v245_v21 = vld [vmem:[%s389_s5] ss:$0 sm:$0xff] }
   0x8   :  { %276 = vmatpush3.bf16.msra.mxu0 %v288_v19  ;;  %v249_v31 = vld [vmem:[%s390_s7] ss:$0 sm:$0xff] }
   0x9   :  { %277 = vmatprep.subr.bf16.mxu0 %v290_v0 }
   0xc   :  { %278 = vmatpush3.bf16.msra.mxu0 %v289_v20 }
  0xc6   :  { %v86_v8 = vpop.f32.mrf.mxu0 }
  0xc7   :  { %v87_v10 = vadd.f32 %v242_v7, %v86_v8 }
  0xc8   :  { %v265_v9 = vpop.f32.mrf.mxu0 }
  0xc9   :  { %v95_v16 = vadd.f32 %v93_v11, %v87_v10 }
  0xca   :  { %v89_v12 = vpop.f32.mrf.mxu0 }
  0xcb   :  { %v90_v14 = vadd.f32 %v242_v7, %v89_v12 }
  0xcc   :  { %v266_v15 = vpop.f32.mrf.mxu0 }
  0xcd   :  { %v96_v17 = vadd.f32 %v94_v13, %v90_v14 }
  0xcf   :  { %v97_v18 = vpack.c.bf16 %v96_v17, %v95_v16 }
  0xd1   :  { %272 = vmatmul.mubr.msk.bf16.vlgmr.msra.gmra.mxu1 %vm121_vm2, %v97_v18 }
 0x191   :  { %v159_v22 = vpop.f32.mrf.mxu1 }
 0x192   :  { %v160_v24 = vadd.f32 %v245_v21, %v159_v22 }
 0x193   :  { %v273_v23 = vpop.f32.mrf.mxu1 }
 0x194   :  { %v166_v28 = vmax.f32 %v160_v24, 0.0 }
 0x195   :  { %v162_v25 = vpop.f32.mrf.mxu1 }
 0x196   :  { %v163_v26 = vadd.f32 %v245_v21, %v162_v25 }
 0x197   :  { %v274_v27 = vpop.f32.mrf.mxu1 }
 0x198   :  { %v167_v29 = vmax.f32 %v163_v26, 0.0 }
 0x19a   :  { %v168_v30 = vpack.c.bf16 %v167_v29, %v166_v28 }
 0x19c   :  { %280 = vmatmul.mubr.msk.bf16.vlgmr.msra.gmra.mxu0 %vm121_vm2, %v168_v30 }
 0x25c   :  { %v229_v32 = vpop.f32.mrf.mxu0 }
 0x25d   :  { %v230_v33 = vadd.f32 %v249_v31, %v229_v32 }
 0x25e   :  { %v281_v34 = vpop.f32.mrf.mxu0 }
 0x25f   :  { %236 = vst.msk [vmem:[%s391_s8] sm:$0xff] %vm121_vm2, %v230_v33 }
 0x260   :  { %v232_v35 = vpop.f32.mrf.mxu0 }
 0x261   :  { %v233_v36 = vadd.f32 %v249_v31, %v232_v35 }
 0x262   :  { %v282_v37 = vpop.f32.mrf.mxu0 }
 0x263   :  { %237 = vst.msk [vmem:[%s391_s8 + $0x8] sm:$0xff] %vm121_vm2, %v233_v36 }

// kernel: abstract_forward.10
= control target key start
LH: loop header
LB: loop body
LE: loop exit
PB: predicated region body
PF: predicated region fallthrough
CT: control target
= control target key end

     0   :  { %v1126_v0 = vmov 0.0   ;;  %vm1127_vm0 = vmmov 0   ;;  %vm24_vm1 = vcmask 261120   ;;  %s1128_s25 = smov 64   ;;  %s1129_s28 = smov 32   ;;  %vm131_vm2 = vcmask 254976   ;;  %s1358_s1 = inlined_call_operand.vmem [shape: f32[32,128], index: 1, kind: input, shape index: {}]   ;;  %s1359_s2 = inlined_call_operand.vmem [shape: f32[2,32], index: 2, kind: input, shape index: {}]   ;;  %s1360_s0 = inlined_call_operand.vmem [shape: f32[8,2,128], index: 0, kind: input, shape index: {}]   ;;  %s1361_s3 = inlined_call_operand.vmem [shape: f32[2,32], index: 3, kind: input, shape index: {}]   ;;  %s1362_s4 = inlined_call_operand.vmem [shape: f32[8,2,32], index: 4, kind: output, shape index: {}]  }
   0x1   :  { %970 = vmatprep.subr.mxu0 %v1126_v0  ;;  %v1159_v1 = vld [vmem:[%s1358_s1 + $0x18] sm:$0xff]  ;;  %v1164_v2 = vld [vmem:[%s1358_s1 + $0x10] sm:$0xff]  ;;  %978 = vmatprep.mubr.msk.f32.mxu0 %vm1127_vm0, %v1126_v0  ;;  %v1174_v3 = vld [vmem:[%s1358_s1 + $0x8] sm:$0xff] }
   0x2   :  { %971 = vmatpush3.msra.mxu0 %v1159_v1  ;;  %981 = vmatprep.subr.mxu1 %v1126_v0  ;;  %v1183_v4 = vld [vmem:[%s1358_s1] sm:$0xff] }
   0x3   :  { %972 = vmatprep.subr.mxu0 %v1126_v0  ;;  %982 = vmatpush3.msra.mxu1 %v1159_v1  ;;  %v17_v5 = vld [vmem:[%s1359_s2] sm:$0x3]  ;;  %v902_v26 = vld [vmem:[%s1360_s0 + $0x2] sm:$0x3]  ;;  %v906_v44 = vld [vmem:[%s1360_s0 + $0x4] sm:$0x3] }
   0x4   :  { %973 = vmatpush3.msra.mxu0 %v1164_v2  ;;  %983 = vmatprep.subr.mxu1 %v1126_v0  ;;  %v19_v6 = vld [vmem:[%s1360_s0] sm:$0x3]  ;;  %v910_v62 = vld [vmem:[%s1360_s0 + $0x6] sm:$0x3] }
   0x5   :  { %974 = vmatprep.subr.mxu0 %v1126_v0  ;;  %984 = vmatpush3.msra.mxu1 %v1164_v2  ;;  %v18_v11 = vld [vmem:[%s1361_s3] sm:$0x3] }
   0x6   :  { %975 = vmatpush3.msra.mxu0 %v1174_v3  ;;  %985 = vmatprep.subr.mxu1 %v1126_v0 }
   0x7   :  { %976 = vmatprep.subr.mxu0 %v1126_v0  ;;  %986 = vmatpush3.msra.mxu1 %v1174_v3 }
   0x8   :  { %977 = vmatpush3.msra.mxu0 %v1183_v4  ;;  %987 = vmatprep.subr.mxu1 %v1126_v0 }
   0x9   :  { %979 = vmatmul.mubr.msk.f32.vlgmr.msra.gmra.mxu0 %vm24_vm1, %v17_v5  ;;  %988 = vmatpush3.msra.mxu1 %v1183_v4 }
   0xa   :  { %989 = vmatprep.mubr.msk.f32.mxu1 %vm1127_vm0, %v1126_v0  ;;  %992 = vmatprep.subr.mxu0 %v1126_v0 }
   0xb   :  { %993 = vmatpush3.msra.mxu0 %v1159_v1  ;;  %1000 = vmatprep.mubr.msk.f32.mxu0 %vm1127_vm0, %v1126_v0 }
   0xc   :  { %994 = vmatprep.subr.mxu0 %v1126_v0  ;;  %1003 = vmatprep.subr.mxu1 %v1126_v0 }
   0xd   :  { %995 = vmatpush3.msra.mxu0 %v1164_v2 }
   0xe   :  { %996 = vmatprep.subr.mxu0 %v1126_v0 }
   0xf   :  { %997 = vmatpush3.msra.mxu0 %v1174_v3 }
  0x10   :  { %998 = vmatprep.subr.mxu0 %v1126_v0 }
  0x11   :  { %999 = vmatpush3.msra.mxu0 %v1183_v4 }
  0x12   :  { %1014 = vmatprep.subr.mxu0 %v1126_v0 }
  0xc9   :  { %v94_v7 = vpop.f32.mrf.mxu0 }
  0xca   :  { %v98_v8 = vadd.f32 %v94_v7, %v19_v6 }
  0xcb   :  { %v980_v9 = vpop.f32.mrf.mxu0 }
  0xcc   :  { %1062 = vtanh.f32 %v98_v8  ;;  %v901_v12 = vmul.f32 -1.442695, %v98_v8 }
  0xce   :  { %1064 = vpow2.f32 %v901_v12 }
  0xd9   :  { %v1063_v10 = vpop.eup %1062 }
  0xda   :  { %112 = vrot.lane.b32.xlu0 %v1063_v10, %s1128_s25 }
  0xdb   :  { %v1065_v13 = vpop.eup %1064 }
  0xdc   :  { %v102_v14 = vadd.f32 1.0, %v1065_v13 }
  0xde   :  { %107 = vrot.lane.b32.xlu0 %v18_v11, %s1129_s28  ;;  %1066 = vrcp.f32 %v102_v14 }
  0xeb   :  { %v1067_v15 = vpop.eup %1066 }
 0x14c   :  { %v113_v16 = vpop.permute.xlu0 %112 }
 0x14d   :  { %v115_v17 = vmul.f32 %v1067_v15, %v113_v16 }
 0x14f   :  { %117 = vrot.lane.b32.xlu1 %v115_v17, %s1129_s28 }
 0x150   :  { %v108_v18 = vpop.permute.xlu0 %107 }
 0x151   :  { %v110_v19 = vmul.f32 %v1067_v15, %v108_v18 }
 0x1c1   :  { %v118_v20 = vpop.permute.xlu1 %117 }
 0x1c2   :  { %v120_v21 = vadd.f32 %v118_v20, %v110_v19 }
 0x1c4   :  { %1068 = vtanh.f32 %v120_v21 }
 0x1d1   :  { %v1069_v22 = vpop.eup %1068 }
 0x1d2   :  { %123 = vrot.lane.b32.xlu1 %v1069_v22, %s1128_s25 }
 0x244   :  { %v124_v23 = vpop.permute.xlu1 %123 }
 0x245   :  { %v126_v24 = vmul.f32 %v1067_v15, %v124_v23 }
 0x247   :  { %128 = vrot.lane.b32.xlu0 %v126_v24, %s1129_s28 }
 0x2b9   :  { %v129_v25 = vpop.permute.xlu0 %128 }
 0x2ba   :  { %132 = vst.msk [vmem:[%s1362_s4] sm:$0x3] %vm131_vm2, %v129_v25  ;;  %990 = vmatmul.mubr.msk.f32.vlgmr.msra.gmra.mxu1 %vm24_vm1, %v129_v25 }
 0x2bb   :  { %1004 = vmatpush3.msra.mxu1 %v1159_v1  ;;  %1011 = vmatprep.mubr.msk.f32.mxu1 %vm1127_vm0, %v1126_v0 }
 0x2bc   :  { %1005 = vmatprep.subr.mxu1 %v1126_v0 }
 0x2bd   :  { %1006 = vmatpush3.msra.mxu1 %v1164_v2 }
 0x2be   :  { %1007 = vmatprep.subr.mxu1 %v1126_v0 }
 0x2bf   :  { %1008 = vmatpush3.msra.mxu1 %v1174_v3 }
 0x2c0   :  { %1009 = vmatprep.subr.mxu1 %v1126_v0 }
 0x2c1   :  { %1010 = vmatpush3.msra.mxu1 %v1183_v4 }
 0x2c2   :  { %1025 = vmatprep.subr.mxu1 %v1126_v0 }
 0x37a   :  { %v207_v27 = vpop.f32.mrf.mxu1 }
 0x37b   :  { %v211_v28 = vadd.f32 %v902_v26, %v207_v27 }
 0x37c   :  { %v991_v29 = vpop.f32.mrf.mxu1 }
 0x37d   :  { %1070 = vtanh.f32 %v211_v28  ;;  %v904_v31 = vmul.f32 -1.442695, %v211_v28 }
 0x37f   :  { %1072 = vpow2.f32 %v904_v31 }
 0x38a   :  { %v1071_v30 = vpop.eup %1070 }
 0x38b   :  { %221 = vrot.lane.b32.xlu1 %v1071_v30, %s1128_s25 }
 0x38c   :  { %v1073_v32 = vpop.eup %1072 }
 0x38d   :  { %v215_v33 = vadd.f32 1.0, %v1073_v32 }
 0x38f   :  { %1074 = vrcp.f32 %v215_v33 }
 0x39c   :  { %v1075_v34 = vpop.eup %1074 }
 0x39d   :  { %v219_v37 = vmul.f32 %v1075_v34, %v120_v21  ;;  %v914_v21 = vld [vmem:[%s1360_s0 + $0x8] sm:$0x3] }
 0x3fd   :  { %v222_v35 = vpop.permute.xlu1 %221 }
 0x3fe   :  { %v224_v36 = vmul.f32 %v1075_v34, %v222_v35 }
 0x400   :  { %226 = vrot.lane.b32.xlu0 %v224_v36, %s1129_s28 }
 0x472   :  { %v227_v38 = vpop.permute.xlu0 %226 }
 0x473   :  { %v229_v39 = vadd.f32 %v227_v38, %v219_v37 }
 0x475   :  { %1076 = vtanh.f32 %v229_v39 }
 0x482   :  { %v1077_v40 = vpop.eup %1076 }
 0x483   :  { %232 = vrot.lane.b32.xlu1 %v1077_v40, %s1128_s25 }
 0x4f5   :  { %v233_v41 = vpop.permute.xlu1 %232 }
 0x4f6   :  { %v235_v42 = vmul.f32 %v1075_v34, %v233_v41 }
 0x4f8   :  { %237 = vrot.lane.b32.xlu0 %v235_v42, %s1129_s28 }
 0x56a   :  { %v238_v43 = vpop.permute.xlu0 %237 }
 0x56b   :  { %905 = vst.msk [vmem:[%s1362_s4 + $0x2] sm:$0x3] %vm131_vm2, %v238_v43  ;;  %1001 = vmatmul.mubr.msk.f32.vlgmr.msra.gmra.mxu0 %vm24_vm1, %v238_v43 }
 0x56c   :  { %1015 = vmatpush3.msra.mxu0 %v1159_v1  ;;  %1022 = vmatprep.mubr.msk.f32.mxu0 %vm1127_vm0, %v1126_v0 }
 0x56d   :  { %1016 = vmatprep.subr.mxu0 %v1126_v0 }
 0x56e   :  { %1017 = vmatpush3.msra.mxu0 %v1164_v2 }
 0x56f   :  { %1018 = vmatprep.subr.mxu0 %v1126_v0 }
 0x570   :  { %1019 = vmatpush3.msra.mxu0 %v1174_v3 }
 0x571   :  { %1020 = vmatprep.subr.mxu0 %v1126_v0 }
 0x572   :  { %1021 = vmatpush3.msra.mxu0 %v1183_v4 }
 0x573   :  { %1036 = vmatprep.subr.mxu0 %v1126_v0 }
 0x62b   :  { %v316_v45 = vpop.f32.mrf.mxu0 }
 0x62c   :  { %v320_v46 = vadd.f32 %v906_v44, %v316_v45 }
 0x62d   :  { %v1002_v47 = vpop.f32.mrf.mxu0 }
 0x62e   :  { %1078 = vtanh.f32 %v320_v46  ;;  %v908_v49 = vmul.f32 -1.442695, %v320_v46 }
 0x630   :  { %1080 = vpow2.f32 %v908_v49 }
 0x63b   :  { %v1079_v48 = vpop.eup %1078 }
 0x63c   :  { %330 = vrot.lane.b32.xlu1 %v1079_v48, %s1128_s25 }
 0x63d   :  { %v1081_v50 = vpop.eup %1080 }
 0x63e   :  { %v324_v51 = vadd.f32 1.0, %v1081_v50 }
 0x640   :  { %1082 = vrcp.f32 %v324_v51 }
 0x64d   :  { %v1083_v52 = vpop.eup %1082 }
 0x64e   :  { %v328_v55 = vmul.f32 %v1083_v52, %v229_v39  ;;  %v918_v39 = vld [vmem:[%s1360_s0 + $0xa] sm:$0x3] }
 0x6ae   :  { %v331_v53 = vpop.permute.xlu1 %330 }
 0x6af   :  { %v333_v54 = vmul.f32 %v1083_v52, %v331_v53 }
 0x6b1   :  { %335 = vrot.lane.b32.xlu0 %v333_v54, %s1129_s28 }
 0x723   :  { %v336_v56 = vpop.permute.xlu0 %335 }
 0x724   :  { %v338_v57 = vadd.f32 %v336_v56, %v328_v55 }
 0x726   :  { %1084 = vtanh.f32 %v338_v57 }
 0x733   :  { %v1085_v58 = vpop.eup %1084 }
 0x734   :  { %341 = vrot.lane.b32.xlu1 %v1085_v58, %s1128_s25 }
 0x7a6   :  { %v342_v59 = vpop.permute.xlu1 %341 }
 0x7a7   :  { %v344_v60 = vmul.f32 %v1083_v52, %v342_v59  ;;  %v922_v52 = vld [vmem:[%s1360_s0 + $0xc] sm:$0x3] }
 0x7a9   :  { %346 = vrot.lane.b32.xlu0 %v344_v60, %s1129_s28 }
 0x81b   :  { %v347_v61 = vpop.permute.xlu0 %346 }
 0x81c   :  { %909 = vst.msk [vmem:[%s1362_s4 + $0x4] sm:$0x3] %vm131_vm2, %v347_v61  ;;  %1012 = vmatmul.mubr.msk.f32.vlgmr.msra.gmra.mxu1 %vm24_vm1, %v347_v61 }
 0x81d   :  { %1026 = vmatpush3.msra.mxu1 %v1159_v1  ;;  %1033 = vmatprep.mubr.msk.f32.mxu1 %vm1127_vm0, %v1126_v0 }
 0x81e   :  { %1027 = vmatprep.subr.mxu1 %v1126_v0 }
 0x81f   :  { %1028 = vmatpush3.msra.mxu1 %v1164_v2 }
 0x820   :  { %1029 = vmatprep.subr.mxu1 %v1126_v0 }
 0x821   :  { %1030 = vmatpush3.msra.mxu1 %v1174_v3 }
 0x822   :  { %1031 = vmatprep.subr.mxu1 %v1126_v0 }
 0x823   :  { %1032 = vmatpush3.msra.mxu1 %v1183_v4 }
 0x824   :  { %1047 = vmatprep.subr.mxu1 %v1126_v0 }
 0x8dc   :  { %v425_v63 = vpop.f32.mrf.mxu1 }
 0x8dd   :  { %v429_v5 = vadd.f32 %v910_v62, %v425_v63 }
 0x8de   :  { %v1013_v6 = vpop.f32.mrf.mxu1 }
 0x8df   :  { %1086 = vtanh.f32 %v429_v5  ;;  %v912_v8 = vmul.f32 -1.442695, %v429_v5 }
 0x8e1   :  { %1088 = vpow2.f32 %v912_v8 }
 0x8ec   :  { %v1087_v7 = vpop.eup %1086 }
 0x8ed   :  { %439 = vrot.lane.b32.xlu1 %v1087_v7, %s1128_s25 }
 0x8ee   :  { %v1089_v9 = vpop.eup %1088 }
 0x8ef   :  { %v433_v10 = vadd.f32 1.0, %v1089_v9 }
 0x8f1   :  { %1090 = vrcp.f32 %v433_v10 }
 0x8fe   :  { %v1091_v11 = vpop.eup %1090 }
 0x8ff   :  { %v437_v14 = vmul.f32 %v1091_v11, %v338_v57 }
 0x95f   :  { %v440_v12 = vpop.permute.xlu1 %439 }
 0x960   :  { %v442_v13 = vmul.f32 %v1091_v11, %v440_v12 }
 0x962   :  { %444 = vrot.lane.b32.xlu0 %v442_v13, %s1129_s28 }
 0x9d4   :  { %v445_v15 = vpop.permute.xlu0 %444 }
 0x9d5   :  { %v447_v16 = vadd.f32 %v445_v15, %v437_v14 }
 0x9d7   :  { %1092 = vtanh.f32 %v447_v16 }
 0x9e4   :  { %v1093_v17 = vpop.eup %1092 }
 0x9e5   :  { %450 = vrot.lane.b32.xlu1 %v1093_v17, %s1128_s25 }
 0xa57   :  { %v451_v18 = vpop.permute.xlu1 %450 }
 0xa58   :  { %v453_v19 = vmul.f32 %v1091_v11, %v451_v18  ;;  %v926_v11 = vld [vmem:[%s1360_s0 + $0xe] sm:$0x3] }
 0xa5a   :  { %455 = vrot.lane.b32.xlu0 %v453_v19, %s1129_s28 }
 0xacc   :  { %v456_v20 = vpop.permute.xlu0 %455 }
 0xacd   :  { %913 = vst.msk [vmem:[%s1362_s4 + $0x6] sm:$0x3] %vm131_vm2, %v456_v20  ;;  %1023 = vmatmul.mubr.msk.f32.vlgmr.msra.gmra.mxu0 %vm24_vm1, %v456_v20 }
 0xace   :  { %1037 = vmatpush3.msra.mxu0 %v1159_v1  ;;  %1044 = vmatprep.mubr.msk.f32.mxu0 %vm1127_vm0, %v1126_v0 }
 0xacf   :  { %1038 = vmatprep.subr.mxu0 %v1126_v0 }
 0xad0   :  { %1039 = vmatpush3.msra.mxu0 %v1164_v2 }
 0xad1   :  { %1040 = vmatprep.subr.mxu0 %v1126_v0 }
 0xad2   :  { %1041 = vmatpush3.msra.mxu0 %v1174_v3 }
 0xad3   :  { %1042 = vmatprep.subr.mxu0 %v1126_v0 }
 0xad4   :  { %1043 = vmatpush3.msra.mxu0 %v1183_v4 }
 0xb8d   :  { %v534_v22 = vpop.f32.mrf.mxu0 }
 0xb8e   :  { %v538_v23 = vadd.f32 %v914_v21, %v534_v22 }
 0xb8f   :  { %v1024_v24 = vpop.f32.mrf.mxu0 }
 0xb90   :  { %1094 = vtanh.f32 %v538_v23  ;;  %v916_v26 = vmul.f32 -1.442695, %v538_v23 }
 0xb92   :  { %1096 = vpow2.f32 %v916_v26 }
 0xb9d   :  { %v1095_v25 = vpop.eup %1094 }
 0xb9e   :  { %548 = vrot.lane.b32.xlu1 %v1095_v25, %s1128_s25 }
 0xb9f   :  { %v1097_v27 = vpop.eup %1096 }
 0xba0   :  { %v542_v28 = vadd.f32 1.0, %v1097_v27 }
 0xba2   :  { %1098 = vrcp.f32 %v542_v28 }
 0xbaf   :  { %v1099_v29 = vpop.eup %1098 }
 0xbb0   :  { %v546_v32 = vmul.f32 %v1099_v29, %v447_v16 }
 0xc10   :  { %v549_v30 = vpop.permute.xlu1 %548 }
 0xc11   :  { %v551_v31 = vmul.f32 %v1099_v29, %v549_v30 }
 0xc13   :  { %553 = vrot.lane.b32.xlu0 %v551_v31, %s1129_s28 }
 0xc85   :  { %v554_v33 = vpop.permute.xlu0 %553 }
 0xc86   :  { %v556_v34 = vadd.f32 %v554_v33, %v546_v32 }
 0xc88   :  { %1100 = vtanh.f32 %v556_v34 }
 0xc95   :  { %v1101_v35 = vpop.eup %1100 }
 0xc96   :  { %559 = vrot.lane.b32.xlu1 %v1101_v35, %s1128_s25 }
 0xd08   :  { %v560_v36 = vpop.permute.xlu1 %559 }
 0xd09   :  { %v562_v37 = vmul.f32 %v1099_v29, %v560_v36 }
 0xd0b   :  { %564 = vrot.lane.b32.xlu0 %v562_v37, %s1129_s28 }
 0xd7d   :  { %v565_v38 = vpop.permute.xlu0 %564 }
 0xd7e   :  { %917 = vst.msk [vmem:[%s1362_s4 + $0x8] sm:$0x3] %vm131_vm2, %v565_v38  ;;  %1034 = vmatmul.mubr.msk.f32.vlgmr.msra.gmra.mxu1 %vm24_vm1, %v565_v38 }
 0xd7f   :  { %1048 = vmatpush3.msra.mxu1 %v1159_v1  ;;  %1055 = vmatprep.mubr.msk.f32.mxu1 %vm1127_vm0, %v1126_v0 }
 0xd80   :  { %1049 = vmatprep.subr.mxu1 %v1126_v0 }
 0xd81   :  { %1050 = vmatpush3.msra.mxu1 %v1164_v2 }
 0xd82   :  { %1051 = vmatprep.subr.mxu1 %v1126_v0 }
 0xd83   :  { %1052 = vmatpush3.msra.mxu1 %v1174_v3 }
 0xd84   :  { %1053 = vmatprep.subr.mxu1 %v1126_v0 }
 0xd85   :  { %1054 = vmatpush3.msra.mxu1 %v1183_v4 }
 0xe3e   :  { %v643_v1 = vpop.f32.mrf.mxu1 }
 0xe3f   :  { %v647_v40 = vadd.f32 %v918_v39, %v643_v1 }
 0xe40   :  { %v1035_v41 = vpop.f32.mrf.mxu1 }
 0xe41   :  { %1102 = vtanh.f32 %v647_v40  ;;  %v920_v2 = vmul.f32 -1.442695, %v647_v40 }
 0xe43   :  { %1104 = vpow2.f32 %v920_v2 }
 0xe4e   :  { %v1103_v42 = vpop.eup %1102 }
 0xe4f   :  { %657 = vrot.lane.b32.xlu1 %v1103_v42, %s1128_s25 }
 0xe50   :  { %v1105_v43 = vpop.eup %1104 }
 0xe51   :  { %v651_v44 = vadd.f32 1.0, %v1105_v43 }
 0xe53   :  { %1106 = vrcp.f32 %v651_v44 }
 0xe60   :  { %v1107_v3 = vpop.eup %1106 }
 0xe61   :  { %v655_v4 = vmul.f32 %v1107_v3, %v556_v34 }
 0xec1   :  { %v658_v0 = vpop.permute.xlu1 %657 }
 0xec2   :  { %v660_v45 = vmul.f32 %v1107_v3, %v658_v0 }
 0xec4   :  { %662 = vrot.lane.b32.xlu0 %v660_v45, %s1129_s28 }
 0xf36   :  { %v663_v46 = vpop.permute.xlu0 %662 }
 0xf37   :  { %v665_v47 = vadd.f32 %v663_v46, %v655_v4 }
 0xf39   :  { %1108 = vtanh.f32 %v665_v47 }
 0xf46   :  { %v1109_v48 = vpop.eup %1108 }
 0xf47   :  { %668 = vrot.lane.b32.xlu1 %v1109_v48, %s1128_s25 }
 0xfb9   :  { %v669_v49 = vpop.permute.xlu1 %668 }
 0xfba   :  { %v671_v50 = vmul.f32 %v1107_v3, %v669_v49 }
 0xfbc   :  { %673 = vrot.lane.b32.xlu0 %v671_v50, %s1129_s28 }
0x102e   :  { %v674_v51 = vpop.permute.xlu0 %673 }
0x102f   :  { %921 = vst.msk [vmem:[%s1362_s4 + $0xa] sm:$0x3] %vm131_vm2, %v674_v51  ;;  %1045 = vmatmul.mubr.msk.f32.vlgmr.msra.gmra.mxu0 %vm24_vm1, %v674_v51 }
0x10ef   :  { %v752_v53 = vpop.f32.mrf.mxu0 }
0x10f0   :  { %v756_v54 = vadd.f32 %v922_v52, %v752_v53 }
0x10f1   :  { %v1046_v55 = vpop.f32.mrf.mxu0 }
0x10f2   :  { %1110 = vtanh.f32 %v756_v54  ;;  %v924_v57 = vmul.f32 -1.442695, %v756_v54 }
0x10f4   :  { %1112 = vpow2.f32 %v924_v57 }
0x10ff   :  { %v1111_v56 = vpop.eup %1110 }
0x1100   :  { %766 = vrot.lane.b32.xlu1 %v1111_v56, %s1128_s25 }
0x1101   :  { %v1113_v58 = vpop.eup %1112 }
0x1102   :  { %v760_v59 = vadd.f32 1.0, %v1113_v58 }
0x1104   :  { %1114 = vrcp.f32 %v760_v59 }
0x1111   :  { %v1115_v60 = vpop.eup %1114 }
0x1112   :  { %v764_v63 = vmul.f32 %v1115_v60, %v665_v47 }
0x1172   :  { %v767_v61 = vpop.permute.xlu1 %766 }
0x1173   :  { %v769_v62 = vmul.f32 %v1115_v60, %v767_v61 }
0x1175   :  { %771 = vrot.lane.b32.xlu0 %v769_v62, %s1129_s28 }
0x11e7   :  { %v772_v5 = vpop.permute.xlu0 %771 }
0x11e8   :  { %v774_v6 = vadd.f32 %v772_v5, %v764_v63 }
0x11ea   :  { %1116 = vtanh.f32 %v774_v6 }
0x11f7   :  { %v1117_v7 = vpop.eup %1116 }
0x11f8   :  { %777 = vrot.lane.b32.xlu1 %v1117_v7, %s1128_s25 }
0x126a   :  { %v778_v8 = vpop.permute.xlu1 %777 }
0x126b   :  { %v780_v9 = vmul.f32 %v1115_v60, %v778_v8 }
0x126d   :  { %782 = vrot.lane.b32.xlu0 %v780_v9, %s1129_s28 }
0x12df   :  { %v783_v10 = vpop.permute.xlu0 %782 }
0x12e0   :  { %925 = vst.msk [vmem:[%s1362_s4 + $0xc] sm:$0x3] %vm131_vm2, %v783_v10  ;;  %1056 = vmatmul.mubr.msk.f32.vlgmr.msra.gmra.mxu1 %vm24_vm1, %v783_v10 }
0x13a0   :  { %v861_v12 = vpop.f32.mrf.mxu1 }
0x13a1   :  { %v865_v13 = vadd.f32 %v926_v11, %v861_v12 }
0x13a2   :  { %v1057_v14 = vpop.f32.mrf.mxu1 }
0x13a3   :  { %1118 = vtanh.f32 %v865_v13  ;;  %v928_v16 = vmul.f32 -1.442695, %v865_v13 }
0x13a5   :  { %1120 = vpow2.f32 %v928_v16 }
0x13b0   :  { %v1119_v15 = vpop.eup %1118 }
0x13b1   :  { %875 = vrot.lane.b32.xlu1 %v1119_v15, %s1128_s25 }
0x13b2   :  { %v1121_v17 = vpop.eup %1120 }
0x13b3   :  { %v869_v18 = vadd.f32 1.0, %v1121_v17 }
0x13b5   :  { %1122 = vrcp.f32 %v869_v18 }
0x13c2   :  { %v1123_v19 = vpop.eup %1122 }
0x13c3   :  { %v873_v22 = vmul.f32 %v1123_v19, %v774_v6 }
0x1423   :  { %v876_v20 = vpop.permute.xlu1 %875 }
0x1424   :  { %v878_v21 = vmul.f32 %v1123_v19, %v876_v20 }
0x1426   :  { %880 = vrot.lane.b32.xlu0 %v878_v21, %s1129_s28 }
0x1498   :  { %v881_v23 = vpop.permute.xlu0 %880 }
0x1499   :  { %v883_v24 = vadd.f32 %v881_v23, %v873_v22 }
0x149b   :  { %1124 = vtanh.f32 %v883_v24 }
0x14a8   :  { %v1125_v25 = vpop.eup %1124 }
0x14a9   :  { %886 = vrot.lane.b32.xlu1 %v1125_v25, %s1128_s25 }
0x151b   :  { %v887_v26 = vpop.permute.xlu1 %886 }
0x151c   :  { %v889_v27 = vmul.f32 %v1123_v19, %v887_v26 }
0x151e   :  { %891 = vrot.lane.b32.xlu0 %v889_v27, %s1129_s28 }
0x1590   :  { %v892_v28 = vpop.permute.xlu0 %891 }
0x1591   :  { %929 = vst.msk [vmem:[%s1362_s4 + $0xe] sm:$0x3] %vm131_vm2, %v892_v28 }

// kernel: abstract_forward.11
= control target key start
LH: loop header
LB: loop body
LE: loop exit
PB: predicated region body
PF: predicated region fallthrough
CT: control target
= control target key end

     0   :  { %s3063_s0 = inlined_call_operand.vmem [shape: f32[2,8,32], index: 0, kind: input, shape index: {}]   ;;  %s3064_s1 = inlined_call_operand.vmem [shape: f32[2,8,32], index: 1, kind: input, shape index: {}]   ;;  %s3065_s2 = inlined_call_operand.vmem [shape: f32[2,8,32], index: 2, kind: input, shape index: {}]   ;;  %s3066_s3 = inlined_call_operand.vmem [shape: f32[2,1,8], index: 3, kind: input, shape index: {}]   ;;  %s3067_s4 = inlined_call_operand.vmem [shape: s32[2,8,1], index: 4, kind: input, shape index: {}]   ;;  %s3068_s5 = inlined_call_operand.vmem [shape: f32[2,8,128], index: 5, kind: input, shape index: {}]   ;;  %s3069_s6 = inlined_call_operand.vmem [shape: f32[2,8,1], index: 6, kind: input, shape index: {}]   ;;  %s3070_s7 = inlined_call_operand.vmem [shape: bf16[32,32], index: 7, kind: input, shape index: {}]   ;;  %s3071_s8 = inlined_call_operand.vmem [shape: f32[1,32], index: 8, kind: input, shape index: {}]   ;;  %s3072_s9 = inlined_call_operand.vmem [shape: bf16[32,32], index: 9, kind: input, shape index: {}]   ;;  %s3073_s10 = inlined_call_operand.vmem [shape: f32[1,32], index: 10, kind: input, shape index: {}]   ;;  %s3074_s11 = inlined_call_operand.vmem [shape: f32[1,32], index: 11, kind: input, shape index: {}]   ;;  %s3075_s12 = inlined_call_operand.<no memory space> [shape: f32[1,1], index: 12, kind: input, shape index: {}]   ;;  %s3076_s13 = inlined_call_operand.vmem [shape: f32[1,32], index: 13, kind: input, shape index: {}]   ;;  %s3077_s14 = inlined_call_operand.vmem [shape: f32[1,32], index: 14, kind: input, shape index: {}]   ;;  %s3078_s15 = inlined_call_operand.vmem [shape: f32[1,32], index: 15, kind: input, shape index: {}]   ;;  %s3079_s17 = inlined_call_operand.vmem [shape: bf16[32,128], index: 17, kind: input, shape index: {}]   ;;  %s3080_s18 = inlined_call_operand.vmem [shape: f32[1,128], index: 18, kind: input, shape index: {}]   ;;  %s3081_s19 = inlined_call_operand.vmem [shape: bf16[32,128], index: 19, kind: input, shape index: {}]   ;;  %s3082_s20 = inlined_call_operand.vmem [shape: f32[1,128], index: 20, kind: input, shape index: {}]   ;;  %s3083_s21 = inlined_call_operand.hbm [shape: f32[2,8,128], index: 21, kind: output, shape index: {0}]   ;;  %s3084_s22 = inlined_call_operand.vmem [shape: f32[2,8,1], index: 22, kind: output, shape index: {1}]   ;;  %s3085_s23 = inlined_call_operand.vmem [shape: f32[2,1,1], index: 23, kind: output, shape index: {2}]   ;;  %s3086_s16 = inlined_call_operand.<no memory space> [shape: f32[1,1], index: 16, kind: input, shape index: {}]  }
   0x1   :  { %3090 = sst [smem:[#allocation8_spill]] %s3063_s0  ;;  %v29_v0 = vstv %s3075_s12  ;;  %v31_v1 = vstv %s3086_s16 }
   0x2   :  { %3091 = sst [smem:[#allocation9_spill]] %s3064_s1  ;;  %30 = vst [vmem:[#allocation2] sm:$0x1] %v29_v0  ;;  %32 = vst [vmem:[#allocation3] sm:$0x1] %v31_v1 }
   0x3   :  { %3092 = sst [smem:[#allocation10_spill]] %s3065_s2 }
   0x4   :  { %3093 = sst [smem:[#allocation11_spill]] %s3066_s3 }
   0x5   :  { %3094 = sst [smem:[#allocation12_spill]] %s3067_s4 }
   0x6   :  { %3095 = sst [smem:[#allocation13_spill]] %s3068_s5 }
   0x7   :  { %3096 = sst [smem:[#allocation14_spill]] %s3069_s6 }
   0x8   :  { %3097 = sst [smem:[#allocation15_spill]] %s3070_s7 }
   0x9   :  { %3098 = sst [smem:[#allocation16_spill]] %s3071_s8 }
   0xa   :  { %3099 = sst [smem:[#allocation17_spill]] %s3072_s9 }
   0xb   :  { %3100 = sst [smem:[#allocation18_spill]] %s3073_s10 }
   0xc   :  { %33 = vsyncpa [#allocation5], 0 }
   0xd   :  { %35 = vsyncpa [#allocation5 + $0x1], 0  ;;  %s2632_s5 = smov 0   ;;  %s2634_s1 = smov 0  }
   0xe   :  { %s2636_s26 = smov 0   ;;  %s2638_s2 = smov 0  }
   0xf LB: > { %s2653_s12 = sadd.s32 4294967295, %s2498_s2   ;;  %s2200_s16 = sadd.s32 4294967294, %s2498_s2   ;;  %s2498_s2 = sphi %s2638_s2, %s3120_s2   ;;  %s2494_s26 = sphi %s2636_s26, %s3119_s26   ;;  %s2490_s1 = sphi %s2634_s1, %s3118_s1   ;;  %s2486_s5 = sphi %s2632_s5, %s3117_s5  }
  0x10   : > { %s2657_s6 = sadd.s32 1, %s2498_s2   ;;  %s524_s27 = sadd.s32 1, %s2494_s26 }
  0x11   : > { %s521_s7 = ssub.s32 %s2498_s2, %s2657_s6  ;;  %p534_p0 = scmp.ne.s32.totalorder %s2494_s26, %s2490_s1 }
  0x12   : > { %p522_p1 = scmp.eq.s32.totalorder %s521_s7, 0  ;;  %p535_p2 = scmp.eq.s32.totalorder %s2653_s12, 1 }
  0x13   : > { %p540_p3 = scmp.ne.s32.totalorder %s2490_s1, %s2486_s5  ;;  %p541_p4 = scmp.eq.s32.totalorder %s2200_s16, 1 }
  0x14   : > { %s2668_s28 = scalar_select %p522_p1, %s2494_s26, %s524_s27  }
  0x15   : > { %p2670_p5 = por %p535_p2, %p534_p0  ;;  %p2674_p6 = por %p541_p4, %p540_p3 }
  0x16   : > { %3101 = sst [smem:[#allocation7_spill]] %s2668_s28  ;;  %p2203_p7 = scmp.ge.s32.totalorder %s2498_s2, 1 }
  0x17   : > { %p701_p8 = scmp.lt.s32.totalorder %s2498_s2, 3 }
  0x19   : > { %p702_p9 = pnand %p2203_p7, %p701_p8 }
  0x1a   : > { %s3104_s30 = sld [smem:[#allocation15_spill]] (!%p702_p9)  ;;  %p794_p10 = scmp.lt.s32.totalorder (!%p702_p9), %s2653_s12, 1 }
  0x1b   : > { %705 = sbr.rel (%p702_p9) target bundleno = 2515 (0x9d3), region = 104  ;;  %s3105_s9 = sld [smem:[#allocation17_spill]] (!%p702_p9) }
  0x1c   : > { %s3106_s27 = sld [smem:[#allocation8_spill]] (!%p702_p9)  ;;  %s2505_s25 = smov (!%p702_p9), [#allocation4]  }
  0x1d   : > { %s3108_s10 = sld [smem:[#allocation18_spill]] (!%p702_p9) }
  0x1e   : > { %s3109_s8 = sld [smem:[#allocation16_spill]] (!%p702_p9) }
  0x1f   : > { %s3111_s7 = sld [smem:[#allocation12_spill]] (!%p702_p9) }
  0x20   : > { %v2354_v2 = vld [vmem:[%s3104_s30 + $0x8] sm:$0xff]   ;;  %v2500_v3 = vmov 0.0   ;;  %v2356_v5 = vld [vmem:[%s3104_s30] sm:$0xff]   ;;  %vm2501_vm0 = vmmov 0   ;;  %s2702_s4 = scalar_select %p794_p10, %s2653_s12, 1  ;;  %vm858_vm1 = vcmask 261120   ;;  %v974_v14 = vlaneseq }
  0x21   : > { %2260 = vmatprep.subr.bf16.mxu0 %v2500_v3  ;;  %2268 = vmatprep.subr.bf16.mxu1 %v2500_v3  ;;  %v2355_v4 = vld [vmem:[%s3105_s9 + $0x8] sm:$0xff]   ;;  %v2357_v6 = vld [vmem:[%s3105_s9] sm:$0xff]   ;;  %s3107_s9 = sld [smem:[#allocation9_spill]]  ;;  %v2502_v11 = vmov 0   ;;  %v2503_v12 = vmov 1966171168  }
  0x22   : > { %2261 = vmatpush3.bf16.msra.mxu0 %v2354_v2  ;;  %2264 = vmatprep.mubr.msk.bf16.mxu0 %vm2501_vm0, %v2500_v3  ;;  %s2705_s24 = sshll.u32 %s2702_s4, 3  ;;  %v972_v13 = vunpack.c.l.s4 %v2503_v12  ;;  %v2732_v16 = vshrl.u32 %v974_v14, 7  ;;  %v2220_v60 = vld [vmem:[%s3074_s11] ss:$0 sm:$0xff]  ;;  %vm1174_vm2 = vcmask 1041409   ;;  %vm1176_vm3 = vcmask 1042434  }
  0x23   : > { %2269 = vmatpush3.bf16.msra.mxu1 %v2355_v4  ;;  %2262 = vmatprep.subr.bf16.mxu0 %v2500_v3  ;;  %s797_s30 = scalar_lea.vmem %s3106_s27, %s2705_s24  ;;  %v2216_v17 = vld [vmem:[%s3108_s10] ss:$0 sm:$0xff]  ;;  %vm1178_vm4 = vcmask 1043459   ;;  %vm1180_vm5 = vcmask 1044484   ;;  %vm1182_vm6 = vcmask 1045509   ;;  %vm1184_vm7 = vcmask 1046534   ;;  %s824_s16 = scalar_lea.vmem %s3084_s22, %s2705_s24 }
  0x24   : > { %2270 = vmatprep.subr.bf16.mxu1 %v2500_v3  ;;  %2272 = vmatprep.mubr.msk.bf16.mxu1 %vm2501_vm0, %v2500_v3  ;;  %v829_v7 = vld [vmem:[%s797_s30] sm:$0xff]  ;;  %v973_v15 = vunpack.c.0.s8 %v972_v13  ;;  %v2742_v27 = vsub.s32 0, %v2732_v16  ;;  %vm1186_vm8 = vcmask 1047559   ;;  %vm1189_vm9 = vcmask 64512   ;;  %s3089_s27 = sand.u32 1, %s2490_s1  }
  0x25   : > { %v834_v9 = vpack.c.bf16 %v829_v7, %v829_v7  ;;  %2352 = vset.pattern.permute.xlu0 %v2502_v11  ;;  %2353 = vset.pattern.permute.xlu1 %v2502_v11  ;;  %v2212_v24 = vld [vmem:[%s3109_s8] ss:$0 sm:$0xff]  ;;  %s812_s0 = scalar_lea.vmem %s3111_s7, %s2705_s24  ;;  %vm1731_vm11 = vcmask 7168   ;;  %s3004_s7 = sshll.u32 %s3089_s27, 3 }
  0x26   : > { %2263 = vmatpush3.bf16.msra.mxu0 %v2356_v5  ;;  %v976_v18 = vsub.s32 %v973_v15, %v2732_v16  ;;  %s3114_s27 = sld [smem:[#allocation14_spill]]  ;;  %s3115_s8 = sand.u32 1, %s2490_s1  }
  0x27   : > { %2271 = vmatpush3.bf16.msra.mxu1 %v2357_v6  ;;  %s801_s28 = scalar_lea.vmem %s3107_s9, %s2705_s24  ;;  %2276 = vmatprep.subr.mxu0 %v2500_v3  ;;  %s3110_s9 = sld [smem:[#allocation11_spill]] }
  0x28   : > { %v2716_v8 = vld [vmem:[%s801_s28] sm:$0xff]  ;;  %2281 = vmatprep.subr.bf16.mxu1 %v2500_v3 }
  0x29   : > { %v2721_v10 = vpack.c.bf16 %v2716_v8, %v2716_v8  ;;  %2265 = vmatmul.mubr.msk.bf16.vlgmr.msra.gmra.mxu0 %vm858_vm1, %v834_v9 }
  0x2a   : > { %2277 = vmatpush3.msra.mxu0 %v829_v7  ;;  %2278 = vmatprep.mubr.msk.f32.mxu0 %vm2501_vm0, %v2500_v3 }
  0x2b   : > { %2273 = vmatmul.mubr.msk.bf16.vlgmr.msra.gmra.mxu1 %vm858_vm1, %v2721_v10  ;;  %2289 = vmatprep.subr.bf16.mxu0 %v2500_v3 }
  0x2c   : > { %2285 = vmatprep.mubr.msk.bf16.mxu1 %vm2501_vm0, %v2500_v3  ;;  %s820_s10 = scalar_lea.vmem %s3114_s27, %s2705_s24 }
  0x2d   : > { %s808_s28 = scalar_lea.vmem %s3110_s9, %s2702_s4  ;;  %s3112_s9 = sld [smem:[#allocation10_spill]] }
  0xe9   : > { %v896_v19 = vpop.f32.mrf.mxu0 }
  0xea   : > { %v897_v33 = vadd.f32 %v2212_v24, %v896_v19 }
  0xeb   : > { %v963_v20 = vpop.f32.mrf.mxu1  ;;  %v2266_v22 = vpop.f32.mrf.mxu0 }
  0xec   : > { %v964_v21 = vadd.f32 %v2216_v17, %v963_v20 }
  0xed   : > { %v2274_v23 = vpop.f32.mrf.mxu1  ;;  %v899_v28 = vpop.f32.mrf.mxu0 }
  0xee   : > { %v970_v25 = vcombine.high %v964_v21, %v964_v21  ;;  %v977_v26 = vrot.slane %v964_v21, %v976_v18 }
  0xef   : > { %v966_v29 = vpop.f32.mrf.mxu1  ;;  %v2267_v34 = vpop.f32.mrf.mxu0 }
  0xf0   : > { %v984_v30 = vrot.slane %v970_v25, %v976_v18  ;;  %v985_v31 = vcombine.high %v977_v26, %v977_v26  ;;  %v993_v32 = vrot.slane %v977_v26, %v976_v18  ;;  %v2221_v26 = vld [vmem:[#allocation2] ss:$0 sm:$0xff] }
  0xf1   : > { %v2275_v35 = vpop.f32.mrf.mxu1 }
  0xf2   : > { %v986_v36 = vcombine.high %v984_v30, %v984_v30  ;;  %v1000_v37 = vrot.slane %v984_v30, %v976_v18  ;;  %v1007_v38 = vrot.slane %v985_v31, %v976_v18  ;;  %v1015_v39 = vcombine.high %v993_v32, %v993_v32 }
  0xf3   : > { %v1022_v40 = vrot.slane %v993_v32, %v2742_v27 }
  0xf4   : > { %v1014_v41 = vrot.slane %v986_v36, %v976_v18  ;;  %v1016_v42 = vcombine.high %v1000_v37, %v1000_v37  ;;  %v1017_v43 = vcombine.high %v1007_v38, %v1007_v38  ;;  %v1026_v44 = vrot.slane %v1007_v38, %v2742_v27 }
  0xf5   : > { %v1030_v45 = vrot.slane %v1015_v39, %v2742_v27  ;;  %v1038_v46 = vrot.slane %v1000_v37, %v2742_v27  ;;  %v1059_v47 = vadd.f32 %v1022_v40, %v897_v33 }
  0xf6   : > { %v1018_v48 = vcombine.high %v1014_v41, %v1014_v41  ;;  %v1034_v49 = vrot.slane %v1017_v43, %v2742_v27  ;;  %v1042_v50 = vrot.slane %v1014_v41, %v2742_v27  ;;  %v1046_v51 = vrot.slane %v1016_v42, %v2742_v27 }
  0xf7   : > { %v1060_v52 = vadd.f32 %v1026_v44, %v897_v33  ;;  %v1061_v53 = vadd.f32 %v1030_v45, %v897_v33  ;;  %2362 = vtanh.f32 %v1059_v47  ;;  %v1063_v55 = vadd.f32 %v1038_v46, %v897_v33 }
  0xf8   : > { %v1062_v54 = vadd.f32 %v1034_v49, %v897_v33  ;;  %v1050_v56 = vrot.slane %v1018_v48, %v2742_v27  ;;  %v1064_v57 = vadd.f32 %v1042_v50, %v897_v33  ;;  %v1065_v58 = vadd.f32 %v1046_v51, %v897_v33 }
  0xf9   : > { %2364 = vtanh.f32 %v1060_v52 }
  0xfa   : > { %2366 = vtanh.f32 %v1061_v53  ;;  %v1066_v59 = vadd.f32 %v1050_v56, %v897_v33  ;;  %v2764_v33 = vand.u32 127, %v974_v14 }
  0xfb   : > { %2368 = vtanh.f32 %v1062_v54 }
  0xfc   : > { %2370 = vtanh.f32 %v1063_v55  ;;  %v2768_v36 = vsub.s32 %v2764_v33, %v2732_v16 }
  0xfd   : > { %2372 = vtanh.f32 %v1064_v57 }
  0xfe   : > { %2374 = vtanh.f32 %v1065_v58 }
  0xff   : > { %2376 = vtanh.f32 %v1066_v59 }
 0x104   : > { %v2363_v61 = vpop.eup %2362 }
 0x105   : > { %v1082_v62 = vmul.f32 %v2363_v61, %v2220_v60 }
 0x106   : > { %v2365_v63 = vpop.eup %2364 }
 0x107   : > { %v2367_v0 = vpop.eup %2366  ;;  %v1090_v1 = vsel %vm858_vm1, %v1082_v62, 0.0  ;;  %v1083_v2 = vmul.f32 %v2365_v63, %v2220_v60  ;;  %v2787_v62 = vsub.s32 1, %v2732_v16  ;;  %v2790_v63 = vsub.s32 7, %v2732_v16 }
 0x108   : > { %v2369_v4 = vpop.eup %2368  ;;  %1091 = vadd.xlane.f32.xlu0 %v1090_v1  ;;  %v1084_v5 = vmul.f32 %v2367_v0, %v2220_v60  ;;  %v2793_v0 = vsub.s32 2, %v2732_v16 }
 0x109   : > { %v2371_v6 = vpop.eup %2370  ;;  %v1085_v9 = vmul.f32 %v2369_v4, %v2220_v60  ;;  %v1093_v12 = vsel %vm858_vm1, %v1083_v2, 0.0 }
 0x10a   : > { %v1096_v7 = vsel %vm858_vm1, %v1084_v5, 0.0  ;;  %v2373_v11 = vpop.eup %2372  ;;  %v1086_v13 = vmul.f32 %v2371_v6, %v2220_v60  ;;  %v2799_v6 = vsub.s32 3, %v2732_v16 }
 0x10b   : > { %1097 = vadd.xlane.f32.xlu1 %v1096_v7  ;;  %v2375_v15 = vpop.eup %2374  ;;  %v1099_v17 = vsel %vm858_vm1, %v1085_v9, 0.0  ;;  %v1087_v18 = vmul.f32 %v2373_v11, %v2220_v60 }
 0x10c   : > { %1094 = vadd.xlane.f32.xlu0 %v1093_v12  ;;  %v2377_v19 = vpop.eup %2376  ;;  %v1102_v20 = vsel %vm858_vm1, %v1086_v13, 0.0  ;;  %v1088_v21 = vmul.f32 %v2375_v15, %v2220_v60  ;;  %v2803_v13 = vsub.s32 4, %v2732_v16 }
 0x10d   : > { %v1105_v22 = vsel %vm858_vm1, %v1087_v18, 0.0  ;;  %v1089_v23 = vmul.f32 %v2377_v19, %v2220_v60 }
 0x10e   : > { %v1108_v24 = vsel %vm858_vm1, %v1088_v21, 0.0 }
 0x10f   : > { %1100 = vadd.xlane.f32.xlu1 %v1099_v17  ;;  %v1111_v25 = vsel %vm858_vm1, %v1089_v23, 0.0 }
 0x110   : > { %1103 = vadd.xlane.f32.xlu0 %v1102_v20  ;;  %v2807_v20 = vsub.s32 5, %v2732_v16 }
 0x113   : > { %1106 = vadd.xlane.f32.xlu1 %v1105_v22 }
 0x114   : > { %1109 = vadd.xlane.f32.xlu0 %v1108_v24 }
 0x117   : > { %1112 = vadd.xlane.f32.xlu1 %v1111_v25  ;;  %v2811_v25 = vsub.s32 6, %v2732_v16 }
 0x12a   : > { %1121 = vperm.xlu0 %2352, %v2221_v26  }
 0x191   : > { %v1092_v28 = vpop.xlane.xlu0 %1091 }
 0x194   : > { %v1098_v30 = vpop.xlane.xlu1 %1097 }
 0x195   : > { %v1095_v29 = vpop.xlane.xlu0 %1094 }
 0x198   : > { %v1101_v32 = vpop.xlane.xlu1 %1100 }
 0x199   : > { %v1104_v31 = vpop.xlane.xlu0 %1103 }
 0x19c   : > { %v1107_v35 = vpop.xlane.xlu1 %1106 }
 0x19d   : > { %v1110_v34 = vpop.xlane.xlu0 %1109 }
 0x1a0   : > { %v1113_v46 = vpop.xlane.xlu1 %1112 }
 0x1a5   : > { %v1122_v37 = vpop.permute.xlu0 %1121 }
 0x1a6   : > { %v1124_v38 = vadd.f32 %v1122_v37, %v1092_v28  ;;  %v1125_v39 = vadd.f32 %v1122_v37, %v1095_v29  ;;  %v1126_v40 = vadd.f32 %v1122_v37, %v1098_v30  ;;  %v1127_v41 = vadd.f32 %v1122_v37, %v1101_v32 }
 0x1a7   : > { %v1128_v42 = vadd.f32 %v1122_v37, %v1104_v31  ;;  %v1129_v43 = vadd.f32 %v1122_v37, %v1107_v35  ;;  %v1130_v47 = vadd.f32 %v1122_v37, %v1110_v34  ;;  %v1131_v48 = vadd.f32 %v1122_v37, %v1113_v46 }
 0x1a8   : > { %v1145_v44 = vrot.slane %v1124_v38, %v2768_v36  ;;  %v1149_v14 = vrot.slane %v1125_v39, %v2768_v36  ;;  %v1153_v45 = vrot.slane %v1126_v40, %v2768_v36  ;;  %v1157_v49 = vrot.slane %v1127_v41, %v2768_v36 }
 0x1a9   : > { %v1161_v51 = vrot.slane %v1128_v42, %v2768_v36  ;;  %v1165_v53 = vrot.slane %v1129_v43, %v2768_v36  ;;  %v1169_v55 = vrot.slane %v1130_v47, %v2768_v36  ;;  %v1173_v57 = vrot.slane %v1131_v48, %v2768_v36 }
 0x1aa   : > { %v1175_v50 = vsel %vm1174_vm2, %v1149_v14, %v1145_v44  ;;  %v2222_v14 = vld [vmem:[%s808_s28] ss:$0 sm:$0xff]  ;;  %s805_s28 = scalar_lea.vmem %s3112_s9, %s2705_s24 }
 0x1ab   : > { %v1177_v52 = vsel %vm1176_vm3, %v1153_v45, %v1175_v50 }
 0x1ac   : > { %v1179_v54 = vsel %vm1178_vm4, %v1157_v49, %v1177_v52 }
 0x1ad   : > { %v1181_v56 = vsel %vm1180_vm5, %v1161_v51, %v1179_v54 }
 0x1ae   : > { %v1183_v58 = vsel %vm1182_vm6, %v1165_v53, %v1181_v56 }
 0x1af   : > { %v1185_v59 = vsel %vm1184_vm7, %v1169_v55, %v1183_v58 }
 0x1b0   : > { %v1187_v60 = vsel %vm1186_vm8, %v1173_v57, %v1185_v59 }
 0x1b1   : > { %v1190_v61 = vsel %vm1189_vm9, %v1187_v60, -inf }
 0x1b2   : > { %1191 = vmax.xlane.f32.xlu1 %v1190_v61 }
 0x23b   : > { %v1192_v1 = vpop.xlane.xlu1 %1191 }
 0x23c   : > { %v1197_v2 = vrot.slane %v1192_v1, %v2742_v27  ;;  %v1201_v4 = vrot.slane %v1192_v1, %v2787_v62  ;;  %v1225_v5 = vrot.slane %v1192_v1, %v2790_v63  ;;  %v1205_v7 = vrot.slane %v1192_v1, %v2793_v0 }
 0x23d   : > { %v1209_v17 = vrot.slane %v1192_v1, %v2799_v6  ;;  %v1213_v22 = vrot.slane %v1192_v1, %v2803_v13  ;;  %v1217_v26 = vrot.slane %v1192_v1, %v2807_v20  ;;  %v1221_v30 = vrot.slane %v1192_v1, %v2811_v25 }
 0x23e   : > { %v1234_v9 = vsub.f32 %v1124_v38, %v1197_v2  ;;  %v1235_v11 = vsub.f32 %v1125_v39, %v1201_v4  ;;  %v1241_v15 = vsub.f32 %v1131_v48, %v1225_v5  ;;  %v1236_v18 = vsub.f32 %v1126_v40, %v1205_v7 }
 0x23f   : > { %v1237_v23 = vsub.f32 %v1127_v41, %v1209_v17  ;;  %v1238_v28 = vsub.f32 %v1128_v42, %v1213_v22  ;;  %v1239_v31 = vsub.f32 %v1129_v43, %v1217_v26  ;;  %v1240_v35 = vsub.f32 %v1130_v47, %v1221_v30 }
 0x240   : > { %v1242_v12 = vmul.f32 1.442695, %v1234_v9  ;;  %v1244_v19 = vmul.f32 1.442695, %v1235_v11  ;;  %v1256_v21 = vmul.f32 1.442695, %v1241_v15 }
 0x241   : > { %v1246_v24 = vmul.f32 1.442695, %v1236_v18  ;;  %v1248_v29 = vmul.f32 1.442695, %v1237_v23  ;;  %v1250_v32 = vmul.f32 1.442695, %v1238_v28 }
 0x242   : > { %2378 = vpow2.f32 %v1242_v12  ;;  %v1252_v37 = vmul.f32 1.442695, %v1239_v31  ;;  %v1254_v39 = vmul.f32 1.442695, %v1240_v35 }
 0x243   : > { %2380 = vpow2.f32 %v1244_v19 }
 0x244   : > { %2382 = vpow2.f32 %v1256_v21 }
 0x245   : > { %2384 = vpow2.f32 %v1246_v24 }
 0x246   : > { %2386 = vpow2.f32 %v1248_v29 }
 0x247   : > { %2388 = vpow2.f32 %v1250_v32 }
 0x248   : > { %2390 = vpow2.f32 %v1252_v37 }
 0x249   : > { %2392 = vpow2.f32 %v1254_v39 }
 0x24f   : > { %v2815_v34 = vpop.eup %2378 }
 0x250   : > { %1267 = vperm.xlu1 %2353, %v2815_v34   ;;  %v2818_v16 = vpop.eup %2380 }
 0x251   : > { %v2821_v38 = vpop.eup %2382 }
 0x252   : > { %v2823_v40 = vpop.eup %2384  ;;  %1288 = vperm.xlu0 %2352, %v2821_v38  }
 0x253   : > { %v2827_v41 = vpop.eup %2386 }
 0x254   : > { %1270 = vperm.xlu1 %2353, %v2818_v16   ;;  %v2830_v42 = vpop.eup %2388 }
 0x255   : > { %v2833_v43 = vpop.eup %2390 }
 0x256   : > { %v2836_v44 = vpop.eup %2392  ;;  %1396 = vbcast.lane.b32.xlu0 %v2222_v14, 256 }
 0x258   : > { %1273 = vperm.xlu1 %2353, %v2823_v40  }
 0x25c   : > { %1276 = vperm.xlu1 %2353, %v2827_v41  }
 0x260   : > { %1279 = vperm.xlu1 %2353, %v2830_v42  }
 0x264   : > { %1282 = vperm.xlu1 %2353, %v2833_v43  }
 0x268   : > { %1285 = vperm.xlu1 %2353, %v2836_v44  }
 0x2cb   : > { %v1268_v45 = vpop.permute.xlu1 %1267 }
 0x2cc   : > { %v1293_v52 = vrot.slane %v1268_v45, %v2768_v36 }
 0x2cd   : > { %v1289_v58 = vpop.permute.xlu0 %1288 }
 0x2ce   : > { %v1321_v4 = vrot.slane %v1289_v58, %v2768_v36 }
 0x2cf   : > { %v1271_v46 = vpop.permute.xlu1 %1270 }
 0x2d0   : > { %v1297_v50 = vrot.slane %v1271_v46, %v2768_v36 }
 0x2d1   : > { %v1397_v24 = vpop.permute.xlu0 %1396 }
 0x2d2   : > { %v1322_v56 = vsel %vm1174_vm2, %v1297_v50, %v1293_v52 }
 0x2d3   : > { %v1274_v47 = vpop.permute.xlu1 %1273 }
 0x2d4   : > { %v1301_v51 = vrot.slane %v1274_v47, %v2768_v36 }
 0x2d6   : > { %v1323_v59 = vsel %vm1176_vm3, %v1301_v51, %v1322_v56 }
 0x2d7   : > { %v1277_v48 = vpop.permute.xlu1 %1276 }
 0x2d8   : > { %v1305_v53 = vrot.slane %v1277_v48, %v2768_v36 }
 0x2da   : > { %v1324_v60 = vsel %vm1178_vm4, %v1305_v53, %v1323_v59 }
 0x2db   : > { %v1280_v49 = vpop.permute.xlu1 %1279 }
 0x2dc   : > { %v1309_v55 = vrot.slane %v1280_v49, %v2768_v36 }
 0x2de   : > { %v1325_v1 = vsel %vm1180_vm5, %v1309_v55, %v1324_v60 }
 0x2df   : > { %v1283_v54 = vpop.permute.xlu1 %1282 }
 0x2e0   : > { %v1313_v57 = vrot.slane %v1283_v54, %v2768_v36 }
 0x2e2   : > { %v1326_v5 = vsel %vm1182_vm6, %v1313_v57, %v1325_v1 }
 0x2e3   : > { %v1286_v61 = vpop.permute.xlu1 %1285 }
 0x2e4   : > { %v1317_v2 = vrot.slane %v1286_v61, %v2768_v36 }
 0x2e6   : > { %v1327_v7 = vsel %vm1184_vm7, %v1317_v2, %v1326_v5 }
 0x2e7   : > { %v1328_v9 = vsel %vm1186_vm8, %v1321_v4, %v1327_v7 }
 0x2e8   : > { %v1330_v11 = vsel %vm1189_vm9, %v1328_v9, 0.0 }
 0x2e9   : > { %1331 = vadd.xlane.f32.xlu1 %v1330_v11 }
 0x372   : > { %v1332_v12 = vpop.xlane.xlu1 %1331 }
 0x373   : > { %v1337_v15 = vrot.slane %v1332_v12, %v2742_v27  ;;  %v1341_v17 = vrot.slane %v1332_v12, %v2787_v62  ;;  %v1345_v18 = vrot.slane %v1332_v12, %v2793_v0  ;;  %v1349_v19 = vrot.slane %v1332_v12, %v2799_v6 }
 0x374   : > { %v1353_v21 = vrot.slane %v1332_v12, %v2803_v13  ;;  %v1357_v22 = vrot.slane %v1332_v12, %v2807_v20  ;;  %v1361_v29 = vrot.slane %v1332_v12, %v2811_v25  ;;  %v1365_v35 = vrot.slane %v1332_v12, %v2790_v63 }
 0x375   : > { %2394 = vrcp.f32 %v1337_v15 }
 0x376   : > { %2396 = vrcp.f32 %v1341_v17 }
 0x377   : > { %2398 = vrcp.f32 %v1345_v18 }
 0x378   : > { %2400 = vrcp.f32 %v1349_v19 }
 0x379   : > { %2402 = vrcp.f32 %v1353_v21 }
 0x37a   : > { %2404 = vrcp.f32 %v1357_v22 }
 0x37b   : > { %2406 = vrcp.f32 %v1361_v29 }
 0x37c   : > { %2408 = vrcp.f32 %v1365_v35 }
 0x382   : > { %v2395_v23 = vpop.eup %2394 }
 0x383   : > { %v2397_v26 = vpop.eup %2396  ;;  %v1375_v28 = vmul.f32 %v2395_v23, %v2815_v34 }
 0x384   : > { %v1377_v31 = vmul.f32 %v2397_v26, %v2818_v16  ;;  %v2399_v32 = vpop.eup %2398 }
 0x385   : > { %v2867_v30 = vmul.f32 %v1397_v24, %v1375_v28  ;;  %v1379_v39 = vmul.f32 %v2399_v32, %v2823_v40  ;;  %v2401_v14 = vpop.eup %2400 }
 0x386   : > { %v2872_v37 = vmul.f32 %v1397_v24, %v1377_v31  ;;  %v1381_v45 = vmul.f32 %v2401_v14, %v2827_v41  ;;  %v2403_v16 = vpop.eup %2402 }
 0x387   : > { %1416 = vperm.xlu0 %2352, %v2867_v30   ;;  %v2876_v34 = vmul.f32 %v1397_v24, %v1379_v39  ;;  %v1383_v47 = vmul.f32 %v2403_v16, %v2830_v42  ;;  %v2405_v48 = vpop.eup %2404 }
 0x388   : > { %v2880_v46 = vmul.f32 %v1397_v24, %v1381_v45  ;;  %v1385_v49 = vmul.f32 %v2405_v48, %v2833_v43  ;;  %v2407_v50 = vpop.eup %2406 }
 0x389   : > { %v2884_v40 = vmul.f32 %v1397_v24, %v1383_v47  ;;  %v1387_v41 = vmul.f32 %v2407_v50, %v2836_v44  ;;  %v2409_v52 = vpop.eup %2408 }
 0x38a   : > { %v2888_v51 = vmul.f32 %v1397_v24, %v1385_v49  ;;  %v1389_v42 = vmul.f32 %v2409_v52, %v2821_v38 }
 0x38b   : > { %1419 = vperm.xlu0 %2352, %v2872_v37   ;;  %v1405_v53 = vmul.f32 %v1397_v24, %v1387_v41 }
 0x38c   : > { %v2893_v54 = vmul.f32 %v1397_v24, %v1389_v42 }
 0x38f   : > { %1422 = vperm.xlu0 %2352, %v2876_v34  }
 0x393   : > { %1425 = vperm.xlu0 %2352, %v2880_v46  }
 0x397   : > { %1428 = vperm.xlu0 %2352, %v2884_v40  }
 0x39b   : > { %1431 = vperm.xlu0 %2352, %v2888_v51  }
 0x39f   : > { %1434 = vperm.xlu0 %2352, %v1405_v53  }
 0x3a3   : > { %1437 = vperm.xlu0 %2352, %v2893_v54  }
 0x402   : > { %v1417_v55 = vpop.permute.xlu0 %1416 }
 0x403   : > { %v1442_v61 = vrot.slane %v1417_v55, %v2768_v36 }
 0x406   : > { %v1420_v43 = vpop.permute.xlu0 %1419 }
 0x407   : > { %v1446_v60 = vrot.slane %v1420_v43, %v2768_v36  ;;  %v2504_v43 = vmov 1.0  }
 0x409   : > { %v1471_v4 = vsel %vm1174_vm2, %v1446_v60, %v1442_v61 }
 0x40a   : > { %v1423_v56 = vpop.permute.xlu0 %1422 }
 0x40b   : > { %v1450_v44 = vrot.slane %v1423_v56, %v2768_v36 }
 0x40d   : > { %v1472_v7 = vsel %vm1176_vm3, %v1450_v44, %v1471_v4 }
 0x40e   : > { %v1426_v57 = vpop.permute.xlu0 %1425 }
 0x40f   : > { %v1454_v1 = vrot.slane %v1426_v57, %v2768_v36 }
 0x411   : > { %v1473_v11 = vsel %vm1178_vm4, %v1454_v1, %v1472_v7  ;;  %v2360_v7 = vld [vmem:[%s3081_s19 + $0x8] sm:$0xff]  }
 0x412   : > { %v1429_v58 = vpop.permute.xlu0 %1428 }
 0x413   : > { %v1458_v38 = vrot.slane %v1429_v58, %v2768_v36 }
 0x415   : > { %v1474_v12 = vsel %vm1180_vm5, %v1458_v38, %v1473_v11 }
 0x416   : > { %v1432_v59 = vpop.permute.xlu0 %1431 }
 0x417   : > { %v1462_v5 = vrot.slane %v1432_v59, %v2768_v36 }
 0x419   : > { %v1475_v17 = vsel %vm1182_vm6, %v1462_v5, %v1474_v12 }
 0x41a   : > { %v1435_v2 = vpop.permute.xlu0 %1434 }
 0x41b   : > { %v1466_v9 = vrot.slane %v1435_v2, %v2768_v36 }
 0x41d   : > { %v1476_v19 = vsel %vm1184_vm7, %v1466_v9, %v1475_v17 }
 0x41e   : > { %v1438_v15 = vpop.permute.xlu0 %1437 }
 0x41f   : > { %v1470_v18 = vrot.slane %v1438_v15, %v2768_v36 }
 0x421   : > { %v1477_v21 = vsel %vm1186_vm8, %v1470_v18, %v1476_v19  ;;  %v2361_v18 = vld [vmem:[%s3081_s19] sm:$0xff]  }
 0x422   : > { %v1479_v22 = vsel %vm1189_vm9, %v1477_v21, 0.0 }
 0x423   : > { %1480 = vadd.xlane.f32.xlu1 %v1479_v22 }
 0x4ac   : > { %v1481_v23 = vpop.xlane.xlu1 %1480 }
 0x4ad   : > { %v1490_v24 = vrot.slane %v1481_v23, %v2787_v62  ;;  %v1486_v26 = vrot.slane %v1481_v23, %v2742_v27  ;;  %v1510_v28 = vrot.slane %v1481_v23, %v2811_v25  ;;  %v1494_v29 = vrot.slane %v1481_v23, %v2793_v0 }
 0x4ae   : > { %v1498_v31 = vrot.slane %v1481_v23, %v2799_v6  ;;  %v1502_v32 = vrot.slane %v1481_v23, %v2803_v13  ;;  %v1506_v35 = vrot.slane %v1481_v23, %v2807_v20  ;;  %v1514_v14 = vrot.slane %v1481_v23, %v2790_v63  ;;  %v2358_v6 = vld [vmem:[%s3079_s17 + $0x8] sm:$0xff]   ;;  %v2359_v63 = vld [vmem:[%s3079_s17] sm:$0xff]  }
 0x4af   : > { %2410 = vrcp.f32 %v1490_v24  ;;  %2282 = vmatpush3.bf16.msra.mxu1 %v2358_v6 }
 0x4b0   : > { %2412 = vrcp.f32 %v1486_v26  ;;  %2283 = vmatprep.subr.bf16.mxu1 %v2500_v3  ;;  %v2225_v26 = vld [vmem:[%s3077_s14] ss:$0 sm:$0xff] }
 0x4b1   : > { %2414 = vrcp.f32 %v1510_v28  ;;  %v831_v28 = vld [vmem:[%s805_s28] sm:$0xff]  ;;  %s3113_s28 = sld [smem:[#allocation13_spill]] }
 0x4b2   : > { %2416 = vrcp.f32 %v1494_v29  ;;  %v1700_v29 = vmul.f32 %v2225_v26, %v2716_v8  ;;  %v2226_v8 = vld [vmem:[%s3078_s15] ss:$0 sm:$0xff] }
 0x4b3   : > { %2418 = vrcp.f32 %v1498_v31  ;;  %2284 = vmatpush3.bf16.msra.mxu1 %v2359_v63 }
 0x4b4   : > { %2420 = vrcp.f32 %v1502_v32  ;;  %2297 = vmatprep.subr.mxu1 %v2500_v3  ;;  %v1701_v32 = vsel %vm858_vm1, %v1700_v29, 0.0 }
 0x4b5   : > { %2422 = vrcp.f32 %v1506_v35 }
 0x4b6   : > { %2424 = vrcp.f32 %v1514_v14  ;;  %2286 = vmatmul.mubr.msk.bf16.vlgmr.msra.gmra.mxu1 %vm858_vm1, %v2721_v10 }
 0x4b7   : > { %2299 = vmatprep.mubr.msk.f32.mxu1 %vm2501_vm0, %v2500_v3  ;;  %s816_s30 = scalar_lea.vmem %s3113_s28, %s2705_s24  ;;  %s2003_s28 = scalar_lea.sflag [#allocation5], %s3115_s8 }
 0x4bc   : > { %v2411_v62 = vpop.eup %2410 }
 0x4bd   : > { %v2413_v39 = vpop.eup %2412  ;;  %v1526_v27 = vmul.f32 %v2411_v62, %v2872_v37  ;;  %v833_v37 = vld [vmem:[%s812_s0] sm:$0xff]  ;;  %s782_s0 = scalar_lea.vmem [#allocation4], %s3004_s7 }
 0x4be   : > { %v2415_v25 = vpop.eup %2414  ;;  %v1524_v0 = vmul.f32 %v2413_v39, %v2867_v30  ;;  %v2229_v62 = vld [vmem:[%s3080_s18] ss:$0 sm:$0xff]  ;;  %s2023_s9 = sshll.u32 %s782_s0, 4  ;;  %s2024_s9 = int_to_ptr.vmem [resolvable:$true] %s2023_s9 }
 0x4bf   : > { %v2417_v45 = vpop.eup %2416  ;;  %1551 = vperm.xlu1 %2353, %v1526_v27   ;;  %v1536_v13 = vmul.f32 %v2415_v25, %v1405_v53  ;;  %v2236_v25 = vld [vmem:[%s3082_s20] ss:$0 sm:$0xff] }
 0x4c0   : > { %1548 = vperm.xlu0 %2352, %v1524_v0   ;;  %v1528_v20 = vmul.f32 %v2417_v45, %v2876_v34  ;;  %v2419_v30 = vpop.eup %2418 }
 0x4c1   : > { %v1530_v16 = vmul.f32 %v2419_v30, %v2880_v46  ;;  %v2421_v47 = vpop.eup %2420 }
 0x4c2   : > { %v1532_v34 = vmul.f32 %v2421_v47, %v2884_v40  ;;  %v2423_v48 = vpop.eup %2422 }
 0x4c3   : > { %1566 = vperm.xlu1 %2353, %v1536_v13   ;;  %v1534_v49 = vmul.f32 %v2423_v48, %v2888_v51  ;;  %v2425_v50 = vpop.eup %2424 }
 0x4c4   : > { %1554 = vperm.xlu0 %2352, %v1528_v20   ;;  %v1538_v41 = vmul.f32 %v2425_v50, %v2893_v54 }
 0x4c7   : > { %1875 = vperm.xlu1 %2353, %v833_v37  }
 0x4c8   : > { %1557 = vperm.xlu0 %2352, %v1530_v16  }
 0x4cc   : > { %1560 = vperm.xlu0 %2352, %v1532_v34  }
 0x4d0   : > { %1563 = vperm.xlu0 %2352, %v1534_v49   ;;  %v2227_v49 = vld [vmem:[#allocation3] ss:$0 sm:$0xff] }
 0x4d4   : > { %1569 = vperm.xlu0 %2352, %v1538_v41  }
 0x4f3   : > { %1702 = vadd.xlane.f32.xlu0 %v1701_v32 }
 0x53a   : > { %v1552_v46 = vpop.permute.xlu1 %1551 }
 0x53b   : > { %v1549_v52 = vpop.permute.xlu0 %1548  ;;  %v1578_v40 = vrot.slane %v1552_v46, %v2768_v36 }
 0x53c   : > { %v1574_v56 = vrot.slane %v1549_v52, %v2768_v36 }
 0x53e   : > { %v1567_v53 = vpop.permute.xlu1 %1566  ;;  %v1603_v59 = vsel %vm1174_vm2, %v1578_v40, %v1574_v56 }
 0x53f   : > { %v1555_v42 = vpop.permute.xlu0 %1554  ;;  %v1598_v2 = vrot.slane %v1567_v53, %v2768_v36 }
 0x540   : > { %v1582_v51 = vrot.slane %v1555_v42, %v2768_v36 }
 0x542   : > { %v1876_v10 = vpop.permute.xlu1 %1875  ;;  %v1604_v60 = vsel %vm1176_vm3, %v1582_v51, %v1603_v59 }
 0x543   : > { %vm1877_vm10 = vcmp.eq.s32.totalorder %v2764_v33, %v1876_v10  ;;  %v1558_v55 = vpop.permute.xlu0 %1557 }
 0x544   : > { %2298 = vmatpush3.msk.msra.mxu1 %vm1877_vm10, %v2504_v43  ;;  %v1586_v54 = vrot.slane %v1558_v55, %v2768_v36 }
 0x546   : > { %v1605_v33 = vsel %vm1178_vm4, %v1586_v54, %v1604_v60 }
 0x547   : > { %v1561_v57 = vpop.permute.xlu0 %1560 }
 0x548   : > { %v1590_v58 = vrot.slane %v1561_v57, %v2768_v36 }
 0x54a   : > { %v1606_v1 = vsel %vm1180_vm5, %v1590_v58, %v1605_v33 }
 0x54b   : > { %v1564_v44 = vpop.permute.xlu0 %1563 }
 0x54c   : > { %v1594_v61 = vrot.slane %v1564_v44, %v2768_v36 }
 0x54e   : > { %v1607_v38 = vsel %vm1182_vm6, %v1594_v61, %v1606_v1  ;;  %v1968_v61 = vld [vmem:[%s816_s30] sm:$0xff]  ;;  %s2438_s30 = scalar_lea.vmem %s2024_s9, 128 }
 0x54f   : > { %v1570_v4 = vpop.permute.xlu0 %1569  ;;  %v1608_v9 = vsel %vm1184_vm7, %v1598_v2, %v1607_v38  ;;  %v1969_v2 = vld [vmem:[%s820_s10] sm:$0xff]  ;;  %s2241_s10 = sshll.u32 %s2653_s12, 7  ;;  %p2439_p11 = scmp.ne.s32.totalorder %s2024_s9, %s2438_s30 }
 0x550   : > { %v1602_v5 = vrot.slane %v1570_v4, %v2768_v36  ;;  %s3022_s7 = scalar_lea.hbm %s3083_s21, %s2241_s10 }
 0x551   : > { %p2440_p12 = pnand %p2439_p11, %p2670_p5 }
 0x552   : > { %v1609_v11 = vsel %vm1186_vm8, %v1602_v5, %v1608_v9 }
 0x553   : > { %2279 = vmatmul.mubr.msk.f32.vlgmr.msra.gmra.mxu0 %vm1189_vm9, %v1609_v11  ;;  %2300 = vmatmul.mubr.msk.f32.vlgmr.msra.gmra.mxu1 %vm1189_vm9, %v1609_v11  ;;  %v1985_v11 = vsel %vm1731_vm11, %v1969_v2, 0.0  ;;  %p2441_p13 = pneg %p2440_p12 }
 0x554   : > { %2290 = vmatpush3.bf16.msra.mxu0 %v2360_v7  ;;  %2293 = vmatprep.mubr.msk.bf16.mxu0 %vm2501_vm0, %v2500_v3 }
 0x555   : > { %2291 = vmatprep.subr.bf16.mxu0 %v2500_v3  ;;  %v2224_v3 = vld [vmem:[%s3076_s13] ss:$0 sm:$0xff] }
 0x556   : > { %v1689_v31 = vmul.f32 %v2224_v3, %v831_v28 }
 0x558   : > { %2292 = vmatpush3.bf16.msra.mxu0 %v2361_v18  ;;  %v1690_v35 = vsel %vm858_vm1, %v1689_v31, 0.0 }
 0x559   : > { %1691 = vadd.xlane.f32.xlu1 %v1690_v35 }
 0x576   : > { %v1790_v36 = vpop.f32.mrf.mxu1 }
 0x577   : > { %v1791_v39 = vadd.f32 %v2229_v62, %v1790_v36 }
 0x578   : > { %v2287_v12 = vpop.f32.mrf.mxu1 }
 0x57a   : > { %v1793_v15 = vpop.f32.mrf.mxu1 }
 0x57c   : > { %v2288_v17 = vpop.f32.mrf.mxu1  ;;  %v1703_v30 = vpop.xlane.xlu0 %1702 }
 0x5e2   : > { %v1692_v37 = vpop.xlane.xlu1 %1691 }
 0x5e3   : > { %v1704_v34 = vadd.f32 %v1703_v30, %v1692_v37 }
 0x613   : > { %v1678_v19 = vpop.f32.mrf.mxu0  ;;  %v2970_v21 = vpop.f32.mrf.mxu1 }
 0x614   : > { %v1796_v22 = vpack.c.bf16 %v1678_v19, %v1678_v19  ;;  %v1712_v45 = vmul.f32 %v2226_v8, %v1678_v19 }
 0x615   : > { %v2280_v23 = vpop.f32.mrf.mxu0  ;;  %v2301_v24 = vpop.f32.mrf.mxu1 }
 0x616   : > { %2294 = vmatmul.mubr.msk.bf16.vlgmr.msra.gmra.mxu0 %vm858_vm1, %v1796_v22  ;;  %v1713_v63 = vsel %vm858_vm1, %v1712_v45, 0.0 }
 0x6d6   : > { %v1850_v27 = vpop.f32.mrf.mxu0 }
 0x6d7   : > { %v1856_v0 = vadd.f32 %v1850_v27, %v1791_v39 }
 0x6d8   : > { %v2295_v14 = vpop.f32.mrf.mxu0 }
 0x6d9   : > { %v1864_v6 = vadd.f32 %v2236_v25, %v1856_v0 }
 0x6da   : > { %v1853_v13 = vpop.f32.mrf.mxu0 }
 0x6db   : > { %1865 = vmax.xlane.f32.xlu0 %v1864_v6 }
 0x6dc   : > { %v2296_v20 = vpop.f32.mrf.mxu0 }
 0x6df   : > { %1714 = vadd.xlane.f32.xlu0 %v1713_v63 }
 0x764   : > { %v1866_v16 = vpop.xlane.xlu0 %1865 }
 0x765   : > { %v1867_v47 = vsub.f32 %v1864_v6, %v1866_v16 }
 0x767   : > { %v1868_v48 = vmul.f32 1.442695, %v1867_v47 }
 0x768   : > { %v1715_v50 = vpop.xlane.xlu0 %1714 }
 0x769   : > { %2426 = vpow2.f32 %v1868_v48  ;;  %v1716_v41 = vadd.f32 %v1715_v50, %v1704_v34 }
 0x76b   : > { %v1724_v46 = vadd.f32 %v2227_v49, %v1716_v41 }
 0x76d   : > { %v2228_v52 = vmul.f32 -1.442695, %v1724_v46 }
 0x76f   : > { %2428 = vpow2.f32 %v2228_v52 }
 0x776   : > { %v2427_v53 = vpop.eup %2426 }
 0x777   : > { %1870 = vadd.xlane.f32.xlu1 %v2427_v53 }
 0x77c   : > { %v2429_v42 = vpop.eup %2428 }
 0x77d   : > { %v1728_v10 = vadd.f32 1.0, %v2429_v42 }
 0x77f   : > { %2430 = vrcp.f32 %v1728_v10 }
 0x78c   : > { %v2431_v55 = vpop.eup %2430 }
 0x78d   : > { %1952 = vperm.xlu0 %2352, %v2431_v55   ;;  %v1956_v43 = vsub.f32 1.0, %v2431_v55  ;;  %1732 = vst.msk [vmem:[%s824_s16] sm:$0xff] %vm1731_vm11, %v2431_v55  ;;  %s2442_s16 = sshll.u32 %s2505_s25, 4  ;;  %s2443_s16 = int_to_ptr.vmem [resolvable:$false] %s2442_s16 }
 0x78e   : > { %s2444_s12 = scalar_lea.vmem %s2443_s16, 256  ;;  %p2445_p0 = scmp.lt.s32.totalorder %s2024_s9, %s2443_s16 }
 0x78f   : > { %1959 = vperm.xlu1 %2353, %v1956_v43   ;;  %p2446_p1 = scmp.lt.s32.totalorder %s2444_s12, %s2438_s30 }
 0x791   : > { %p2447_p2 = por %p2446_p1, %p2445_p0 }
 0x793   : > { %p2448_p3 = pnand %p2447_p2, %p2441_p13 }
 0x800   : > { %v1871_v40 = vpop.xlane.xlu1 %1870 }
 0x801   : > { %2432 = vrcp.f32 %v1871_v40 }
 0x808   : > { %v1953_v54 = vpop.permute.xlu0 %1952 }
 0x80a   : > { %v1960_v51 = vpop.permute.xlu1 %1959 }
 0x80b   : > { %v1962_v59 = vmul.f32 %v1960_v51, %v2970_v21 }
 0x80e   : > { %v2433_v56 = vpop.eup %2432 }
 0x80f   : > { %v1873_v57 = vmul.f32 %v2433_v56, %v2427_v53 }
 0x811   : > { %v1955_v58 = vmul.f32 %v1953_v54, %v1873_v57 }
 0x813   : > { %v1963_v60 = vadd.f32 %v1962_v59, %v1955_v58 }
 0x815   : > { %v1965_v44 = vadd.f32 1e-09, %v1963_v60  ;;  %1964 = vst [vmem:[%s782_s0] sm:$0xff] %v1963_v60 }
 0x817   : > { %2434 = vlog2.f32 %v1965_v44 }
 0x824   : > { %v2435_v33 = vpop.eup %2434 }
 0x825   : > { %v1967_v1 = vmul.f32 0.6931472, %v2435_v33 }
 0x827   : > { %v1970_v38 = vmul.f32 %v1968_v61, %v1967_v1 }
 0x829   : > { %1971 = vadd.xlane.f32.xlu1 %v1970_v38 }
 0x8b2   : > { %v1972_v4 = vpop.xlane.xlu1 %1971 }
 0x8b3   : > { %v1973_v5 = vsub.f32 0.0, %v1972_v4 }
 0x8b5   : > { %v1974_v7 = vmul.f32 %v1973_v5, %v1969_v2 }
 0x8b7   : > { %v1975_v9 = vsel %vm1731_vm11, %v1974_v7, 0.0 }
 0x8b8   : > { %1976 = vadd.xlane.f32.xlu0 %v1975_v9 }
 0x8bc   : > { %1986 = vadd.xlane.f32.xlu0 %v1985_v11 }
 0x941   : > { %v1977_v36 = vpop.xlane.xlu0 %1976 }
 0x942   : > { %v1978_v12 = vrot.slane %v1977_v36, 4 }
 0x944   : > { %v1979_v15 = vadd.f32 %v1978_v12, %v1977_v36 }
 0x945   : > { %v1987_v17 = vpop.xlane.xlu0 %1986 }
 0x946   : > { %v1980_v18 = vrot.slane %v1979_v15, 2  ;;  %v1988_v19 = vrot.slane %v1987_v17, 4 }
 0x948   : > { %v1989_v21 = vadd.f32 %v1988_v19, %v1987_v17  ;;  %v1981_v22 = vadd.f32 %v1980_v18, %v1979_v15 }
 0x94a   : > { %v1990_v23 = vrot.slane %v1989_v21, 2  ;;  %v1982_v24 = vrot.slane %v1981_v22, 1 }
 0x94b   : > { %2451 = shalt.err (!%p2448_p3)
}
 0x94c   : > { %s2452_s0 = scalar_lea.hbm %s3022_s7, 128  ;;  %s2456_s27 = scalar_lea.hbm %s3083_s21, 256 }
 0x94d   : > { %p2453_p4 = scmp.ne.s32.totalorder %s3022_s7, %s2452_s0  ;;  %p2457_p9 = scmp.lt.s32.totalorder %s3022_s7, %s3083_s21 }
 0x94e   : > { %p2458_p10 = scmp.lt.s32.totalorder %s2456_s27, %s2452_s0 }
 0x94f   : > { %p2454_p7 = pnand %p2453_p4, %p2670_p5 }
 0x950   : > { %p2459_p11 = por %p2458_p10, %p2457_p9 }
 0x951   : > { %p2455_p8 = pneg %p2454_p7 }
 0x953   : > { %p2460_p12 = pnand %p2459_p11, %p2455_p8 }
 0x955   : > { %2463 = shalt.err (!%p2460_p12)
}
 0x956   : > { %2308 = dma.vmem_to_hbm [thread:$0]  (%p2670_p5), %s2024_s9, 128, %s3022_s7, %s2003_s28   ;;  %v1991_v3 = vadd.f32 %v1990_v23, %v1989_v21  ;;  %v1983_v26 = vadd.f32 %v1982_v24, %v1981_v22  ;;  %vm2000_vm12 = vcmask 0  }
 0x957   : > { %s827_s29 = scalar_lea.vmem %s3085_s23, %s2702_s4 }
 0x958   : > { %2302 = vpush %v1983_v26  ;;  %v1992_v28 = vrot.slane %v1991_v3, 1 }
 0x95a   : > { %v1993_v29 = vadd.f32 %v1992_v28, %v1991_v3 }
 0x95c   : > { %2304 = vpush %v1993_v29 }
 0x989   : > { %s2303_s30 = spop %2302 }
 0x98d   : > { %s2305_s16 = spop %2304 }
 0x98e   : > { %v1995_v31 = vstv %s2305_s16 }
 0x98f   : > { %2436 = vrcp.f32 %v1995_v31 }
 0x99c   : > { %v2437_v32 = vpop.eup %2436 }
 0x99d   : > { %2306 = vpush %v2437_v32 }
 0x9ce   : > { %s2307_s12 = spop %2306 }
 0x9cf   : > { %s1998_s24 = smul.f32 %s2307_s12, %s2303_s30 }
 0x9d1   : > { %v1999_v35 = vstv %s1998_s24 }
 0x9d2   : > { %2001 = vst.msk [vmem:[%s827_s29] sm:$0x1] %vm2000_vm12, %v1999_v35 }
 0x9d3 PF: > { %p2314_p5 = scmp.ge.s32.totalorder %s2498_s2, 2  ;;  %s2041_s7 = sand.u32 1, %s2486_s5  }
 0x9d4   : > { %s2042_s9 = scalar_lea.sflag [#allocation5], %s2041_s7 }
 0x9d5   : > { %p2311_p13 = pnand %p2314_p5, %p2674_p6 }
 0x9d7   : > { %p2312_p0 = pneg %p2311_p13 }
 0x9d9   : > { %2481 = dma.done.wait (%p2312_p0), %s2042_s9, 128  }
 0x9da   : > { %2483 = vsyncadd (%p2312_p0), %s2042_s9, 4294967168  ;;  %s3116_s4 = sld [smem:[#allocation7_spill]]  ;;  %p38_p1 = scmp.ge.s32.totalorder %s2657_s6, 4  }
 0x9db   : > { %s3117_s5 = smov %s2490_s1  ;;  %s3118_s1 = smov %s2494_s26 }
 0x9dc   : > { %s3120_s2 = smov %s2657_s6  ;;  %40 = sbr.rel (!%p38_p1) target bundleno = 15 (0xf), region = 181 }
 0x9e0   : > { %s3119_s26 = smov %s3116_s4 }
 0x9e1   :  { %2060 = vsyncpa [#allocation5], 1 }
 0x9e2   :  { %2062 = vsyncpa [#allocation5 + $0x1], 1 }

</bundles_post_ra>
